<compile_context>
chip_gen: v7x
topology: tpu7x:2x2x1
jax: 0.10.0
libtpu: 0.0.40
codegen_flags: <defaults>
</compile_context>

<pallas_src>
import functools
import math

import jax
import jax.numpy as jnp
from jax.experimental import pallas as pl
from jax.experimental.pallas import tpu as pltpu

# Keep XLA-side and Mosaic-side f32 matmuls at full f32 accuracy so the kernel and the
# plain-JAX reference agree tightly (and to match PyTorch f32 Linear semantics).
jax.config.update("jax_default_matmul_precision", "highest")

_SQRT_2PI = (2.0 * 3.141593) ** 0.5   # the PyTorch module hard-codes pi = 3.141593


def _gelu_tanh(x):
    # TODO(synk): nn.GELU() default is the exact erf form; we use the tanh approximation
    # (max abs deviation ~1e-3) in both kernel and reference for guaranteed Mosaic lowering.
    c = math.sqrt(2.0 / math.pi)
    return 0.5 * x * (1.0 + jnp.tanh(c * (x + 0.044715 * x * x * x)))


def _attn_bias_kernel(scal_ref, gp_ref, w1_ref, b1_ref, w2_ref, b2_ref,
                      gtok_ref, we_ref, be_ref, bias_ref, merge_ref, *, n):
    """One tile of TM edge rows (TM % (8*n) == 0); edges are ordered (b, i, j), j fastest.

    scal_ref : (TM, 3)  f32  per-edge scalars [x0 = mul*dist+bias, attn_bias, token_flag]
    gp_ref   : (3, K)   f32  gaussian params  [mean, 1/std, 1/(sqrt(2*pi)*std)]
    w1/b1    : (K, K), (1, K)        gbf_proj layer 0
    w2/b2    : (K, LH), (1, LH)      gbf_proj layer 1  (LH = num_heads*num_layers)
    gtok_ref : (1, LH)  f32          graph_token_virtual_dist
    we/be    : (K, hid), (1, hid)    edge_proj
    bias_ref : (TM, LH)    f32 out   attn_bias + graph_token + gbf_proj(edge_feature)
    merge_ref: (TM//n, hid) f32 out  edge_proj(mean_j edge_feature)
    """
    tm = scal_ref.shape[0]
    k = gp_ref.shape[1]

    x0 = scal_ref[:, 0:1]        # (TM, 1)
    attn = scal_ref[:, 1:2]      # (TM, 1)
    tok = scal_ref[:, 2:3]       # (TM, 1)

    mean = gp_ref[0:1, :]        # (1, K)
    inv_std = gp_ref[1:2, :]     # (1, K)
    coef = gp_ref[2:3, :]        # (1, K)  == 1 / (sqrt(2*pi) * std)

    # Gaussian basis expansion of the per-edge scalar (VPU + EUP).
    t = (x0 - mean) * inv_std                                    # (TM, K)
    feat = jnp.exp(-0.5 * t * t) * coef                          # (TM, K)

    # gbf_proj MLP on the MXU.
    h = jnp.dot(feat, w1_ref[...], preferred_element_type=jnp.float32) + b1_ref[...]
    h = _gelu_tanh(h)
    g = jnp.dot(h, w2_ref[...], preferred_element_type=jnp.float32) + b2_ref[...]

    # attn_bias broadcast + graph-token edit folded in -> lane-dense (TM, LH) store.
    bias_ref[...] = g + attn + tok * gtok_ref[...]

    # Mean over j within each node row (rows of a node row are contiguous), then edge_proj.
    fmean = jnp.sum(feat.reshape(tm // n, n, k), axis=1) * (1.0 / n)
    merge_ref[...] = (
        jnp.dot(fmean, we_ref[...], preferred_element_type=jnp.float32) + be_ref[...]
    )


def init_graphormer_params(key, *, edge_types, num_kernel, num_heads, num_layers,
                           hidden_size, initializer_range):
    """Deterministic params matching the PyTorch module's structure (f32 everywhere)."""
    ks = jax.random.split(key, 10)
    K, LH = num_kernel, num_heads * num_layers
    lim = 1.0 / math.sqrt(K)
    return dict(
        # nn.Embedding(edge_types, 1, padding_idx=0): N(0,1) init, row 0 zeroed.
        mul_w=jax.random.normal(ks[0], (edge_types, 1), jnp.float32).at[0].set(0.0),
        bias_w=jax.random.normal(ks[1], (edge_types, 1), jnp.float32).at[0].set(0.0),
        means_w=jax.random.normal(ks[2], (1, K), jnp.float32),
        stds_w=jax.random.normal(ks[3], (1, K), jnp.float32),
        # Linear weights stored as (in, out) so the kernel uses them without transposes.
        w1=jax.random.uniform(ks[4], (K, K), jnp.float32, -lim, lim),
        b1=jax.random.uniform(ks[5], (1, K), jnp.float32, -lim, lim),
        w2=jax.random.uniform(ks[6], (K, LH), jnp.float32, -lim, lim),
        b2=jax.random.uniform(ks[7], (1, LH), jnp.float32, -lim, lim),
        graph_token=initializer_range * jax.random.normal(ks[8], (1, LH), jnp.float32),
        we=jax.random.uniform(ks[9], (K, hidden_size), jnp.float32, -lim, lim),
        be=jnp.zeros((1, hidden_size), jnp.float32),
    )


@functools.partial(jax.jit, static_argnames=("num_heads", "num_layers", "tm_target"))
def graphormer_attention_bias_forward(params, pos, node_type_edge, attn_bias,
                                      *, num_heads, num_layers, tm_target=2048):
    """pos [B,N,3] f32, node_type_edge [B,N,N,2] int32, attn_bias [B,N,N] f32 ->
       (graph_attn_bias [B,L,H,N,N], merge_edge_features [B,N,hidden], delta_pos [B,N,N,3])."""
    B, N, _ = pos.shape
    K = params["means_w"].shape[1]
    LH = params["w2"].shape[1]
    hid = params["we"].shape[1]
    assert LH == num_heads * num_layers

    # --- tiny geometric / embedding-gather preamble (plain JAX; O(B*N^2) scalars) ---
    delta_pos = pos[:, None, :, :] - pos[:, :, None, :]                 # [B,N,N,3]
    dist = jnp.sqrt(jnp.sum(delta_pos * delta_pos, axis=-1))            # [B,N,N]
    delta_pos_out = delta_pos / (dist[..., None] + 1e-6)

    mul = jnp.take(params["mul_w"], node_type_edge, axis=0).sum(axis=-2)[..., 0]
    bias = jnp.take(params["bias_w"], node_type_edge, axis=0).sum(axis=-2)[..., 0]
    x0 = mul * dist + bias                                              # [B,N,N]

    idx = jnp.arange(N)
    tok = ((idx[:, None] == 0) | (idx[None, :] == 0)).astype(jnp.float32)   # row 0 or col 0
    tok = jnp.broadcast_to(tok[None], (B, N, N))

    M = B * N * N
    scal = jnp.stack([x0, attn_bias.astype(jnp.float32), tok], axis=-1).reshape(M, 3)

    # Fused gaussian parameters: [mean; 1/std; 1/(sqrt(2*pi)*std)], std = |w| + 0.01.
    mean = params["means_w"].reshape(1, K)
    std = jnp.abs(params["stds_w"].reshape(1, K)) + 0.01
    gparams = jnp.concatenate([mean, 1.0 / std, 1.0 / (_SQRT_2PI * std)], axis=0)  # (3, K)

    # Row tile: as large as possible (amortize ~0.35us/grid-step overhead), but a multiple
    # of 8*N so the per-node-row reduction output block stays (8,128)-aligned.
    unit = 8 * N
    tm = max(unit, (min(tm_target, M) // unit) * unit)
    m_pad = pl.cdiv(M, tm) * tm
    if m_pad != M:
        scal = jnp.pad(scal, ((0, m_pad - M), (0, 0)))

    kernel = functools.partial(_attn_bias_kernel, n=N)
    bias_out, merge_out = pl.pallas_call(
        kernel,
        out_shape=(
            jax.ShapeDtypeStruct((m_pad, LH), jnp.float32),
            jax.ShapeDtypeStruct((m_pad // N, hid), jnp.float32),
        ),
        grid_spec=pltpu.PrefetchScalarGridSpec(
            num_scalar_prefetch=0,
            grid=(m_pad // tm,),
            in_specs=[
                pl.BlockSpec((tm, 3), lambda t: (t, 0)),      # per-edge scalars
                pl.BlockSpec((3, K), lambda t: (0, 0)),       # gaussian params (resident)
                pl.BlockSpec((K, K), lambda t: (0, 0)),       # gbf_proj W1
                pl.BlockSpec((1, K), lambda t: (0, 0)),       # gbf_proj b1
                pl.BlockSpec((K, LH), lambda t: (0, 0)),      # gbf_proj W2
                pl.BlockSpec((1, LH), lambda t: (0, 0)),      # gbf_proj b2
                pl.BlockSpec((1, LH), lambda t: (0, 0)),      # graph_token_virtual_dist
                pl.BlockSpec((K, hid), lambda t: (0, 0)),     # edge_proj W
                pl.BlockSpec((1, hid), lambda t: (0, 0)),     # edge_proj b
            ],
            out_specs=(
                pl.BlockSpec((tm, LH), lambda t: (t, 0)),
                pl.BlockSpec((tm // N, hid), lambda t: (t, 0)),
            ),
        ),
        compiler_params=pltpu.CompilerParams(
            dimension_semantics=("parallel",),
            vmem_limit_bytes=32 * 1024 * 1024,
        ),
    )(scal, gparams, params["w1"], params["b1"], params["w2"], params["b2"],
      params["graph_token"], params["we"], params["be"])

    graph_attn_bias = (
        bias_out[:M]
        .reshape(B, N, N, LH)
        .transpose(0, 3, 1, 2)
        .reshape(B, num_layers, num_heads, N, N)
    )
    merge_edge_features = merge_out[:B * N].reshape(B, N, hid)
    return graph_attn_bias, merge_edge_features, delta_pos_out


def graphormer_attention_bias_reference(params, pos, node_type_edge, attn_bias,
                                        *, num_heads, num_layers):
    """Plain-JAX mirror of the PyTorch forward."""
    B, N, _ = pos.shape
    K = params["means_w"].shape[1]

    delta_pos = pos[:, None, :, :] - pos[:, :, None, :]
    dist = jnp.sqrt(jnp.sum(delta_pos * delta_pos, axis=-1))
    delta_pos_out = delta_pos / (dist[..., None] + 1e-6)

    mul = jnp.take(params["mul_w"], node_type_edge, axis=0).sum(axis=-2)   # [B,N,N,1]
    bias = jnp.take(params["bias_w"], node_type_edge, axis=0).sum(axis=-2)
    x = mul * dist[..., None] + bias
    x = jnp.broadcast_to(x, (B, N, N, K))
    mean = params["means_w"].reshape(-1)
    std = jnp.abs(params["stds_w"].reshape(-1)) + 0.01
    edge_feature = jnp.exp(-0.5 * ((x - mean) / std) ** 2) / (_SQRT_2PI * std)

    h = _gelu_tanh(edge_feature @ params["w1"] + params["b1"])
    gbf = h @ params["w2"] + params["b2"]                                   # [B,N,N,LH]
    gbf = jnp.transpose(gbf, (0, 3, 1, 2)).reshape(B, num_layers, num_heads, N, N)

    gab = jnp.broadcast_to(attn_bias[:, None, None, :, :],
                           (B, num_layers, num_heads, N, N))
    gtok = params["graph_token"].reshape(1, num_layers, num_heads, 1)
    gab = gab.at[:, :, :, 1:, 0].add(gtok)
    gab = gab.at[:, :, :, 0, :].add(gtok)
    gab = gab + gbf

    sum_edge = edge_feature.mean(axis=-2)                                    # [B,N,K]
    merge = sum_edge @ params["we"] + params["be"]
    return gab, merge, delta_pos_out


if __name__ == "__main__":
    key = jax.random.PRNGKey(0)
    # Small Graphormer-3D style config: 32 heads x (3+1) layers -> 128 bias channels
    # (lane-dense output), 128 gaussian kernels, hidden 64, 16 edge types, 2 graphs x 8 nodes.
    num_heads, num_hidden_layers = 32, 3
    num_layers = num_hidden_layers + 1
    num_kernel, edge_types, hidden_size = 128, 16, 64
    B, N = 2, 8

    k_par, k_pos, k_et, k_ab = jax.random.split(key, 4)
    params = init_graphormer_params(
        k_par, edge_types=edge_types, num_kernel=num_kernel, num_heads=num_heads,
        num_layers=num_layers, hidden_size=hidden_size, initializer_range=0.02)

    pos = jax.random.normal(k_pos, (B, N, 3), jnp.float32)
    node_type_edge = jax.random.randint(k_et, (B, N, N, 2), 0, edge_types, jnp.int32)
    attn_bias = jax.random.normal(k_ab, (B, N, N), jnp.float32)

    ref = graphormer_attention_bias_reference(
        params, pos, node_type_edge, attn_bias,
        num_heads=num_heads, num_layers=num_layers)

    # Default big-tile path (single tile at this size) and a forced multi-tile path.
    for tm_target in (2048, 64):
        out = graphormer_attention_bias_forward(
            params, pos, node_type_edge, attn_bias,
            num_heads=num_heads, num_layers=num_layers, tm_target=tm_target)
        out = jax.block_until_ready(out)
        gab, merge, dpos = out
        assert gab.shape == (B, num_layers, num_heads, N, N), gab.shape
        assert merge.shape == (B, N, hidden_size), merge.shape
        assert dpos.shape == (B, N, N, 3), dpos.shape
        assert jnp.allclose(gab, ref[0], atol=1e-3, rtol=1e-3), "graph_attn_bias mismatch"
        assert jnp.allclose(merge, ref[1], atol=1e-3, rtol=1e-3), "merge_edge_features mismatch"
        assert jnp.allclose(dpos, ref[2], atol=1e-5, rtol=1e-5), "delta_pos mismatch"

    print("KERNEL_OK")
</pallas_src>

<mosaic_0001>
module attributes {stable_mosaic.version = 11 : i64} {
  func.func @_attn_bias_kernel(%arg0: i32, %arg1: memref<128x3xf32, #tpu.memory_space<vmem>>, %arg2: memref<3x128xf32, #tpu.memory_space<vmem>>, %arg3: memref<128x128xf32, #tpu.memory_space<vmem>>, %arg4: memref<1x128xf32, #tpu.memory_space<vmem>>, %arg5: memref<128x128xf32, #tpu.memory_space<vmem>>, %arg6: memref<1x128xf32, #tpu.memory_space<vmem>>, %arg7: memref<1x128xf32, #tpu.memory_space<vmem>>, %arg8: memref<128x64xf32, #tpu.memory_space<vmem>>, %arg9: memref<1x64xf32, #tpu.memory_space<vmem>>, %arg10: memref<128x128xf32, #tpu.memory_space<vmem>>, %arg11: memref<16x64xf32, #tpu.memory_space<vmem>>) attributes {dimension_semantics = [#tpu.dimension_semantics<parallel>], iteration_bounds = array<i64: 1>, scalar_prefetch = 0 : i64, scratch_operands = 0 : i64, tpu.core_type = #tpu.core_type<tc>, window_params = [{transform_indices = @transform_0, window_bounds = array<i64: 128, 3>}, {pipeline_mode = #tpu.pipeline_mode<synchronous>, transform_indices = @transform_1, window_bounds = array<i64: 3, 128>}, {pipeline_mode = #tpu.pipeline_mode<synchronous>, transform_indices = @transform_2, window_bounds = array<i64: 128, 128>}, {pipeline_mode = #tpu.pipeline_mode<synchronous>, transform_indices = @transform_3, window_bounds = array<i64: 1, 128>}, {pipeline_mode = #tpu.pipeline_mode<synchronous>, transform_indices = @transform_4, window_bounds = array<i64: 128, 128>}, {pipeline_mode = #tpu.pipeline_mode<synchronous>, transform_indices = @transform_5, window_bounds = array<i64: 1, 128>}, {pipeline_mode = #tpu.pipeline_mode<synchronous>, transform_indices = @transform_6, window_bounds = array<i64: 1, 128>}, {pipeline_mode = #tpu.pipeline_mode<synchronous>, transform_indices = @transform_7, window_bounds = array<i64: 128, 64>}, {pipeline_mode = #tpu.pipeline_mode<synchronous>, transform_indices = @transform_8, window_bounds = array<i64: 1, 64>}, {transform_indices = @transform_9, window_bounds = array<i64: 128, 128>}, {transform_indices = @transform_10, window_bounds = array<i64: 16, 64>}]} {
    %c0 = arith.constant 0 : index
    %c0_0 = arith.constant 0 : index
    %0 = vector.load %arg1[%c0, %c0_0] : memref<128x3xf32, #tpu.memory_space<vmem>>, vector<128x1xf32>
    %c0_1 = arith.constant 0 : index
    %c1 = arith.constant 1 : index
    %1 = vector.load %arg1[%c0_1, %c1] : memref<128x3xf32, #tpu.memory_space<vmem>>, vector<128x1xf32>
    %c0_2 = arith.constant 0 : index
    %c2 = arith.constant 2 : index
    %2 = vector.load %arg1[%c0_2, %c2] : memref<128x3xf32, #tpu.memory_space<vmem>>, vector<128x1xf32>
    %c0_3 = arith.constant 0 : index
    %c0_4 = arith.constant 0 : index
    %3 = vector.load %arg2[%c0_3, %c0_4] : memref<3x128xf32, #tpu.memory_space<vmem>>, vector<1x128xf32>
    %c1_5 = arith.constant 1 : index
    %c0_6 = arith.constant 0 : index
    %4 = vector.load %arg2[%c1_5, %c0_6] : memref<3x128xf32, #tpu.memory_space<vmem>>, vector<1x128xf32>
    %c2_7 = arith.constant 2 : index
    %c0_8 = arith.constant 0 : index
    %5 = vector.load %arg2[%c2_7, %c0_8] : memref<3x128xf32, #tpu.memory_space<vmem>>, vector<1x128xf32>
    %6 = vector.broadcast %0 : vector<128x1xf32> to vector<128x128xf32>
    %7 = vector.broadcast %3 : vector<1x128xf32> to vector<128x128xf32>
    %8 = arith.subf %6, %7 : vector<128x128xf32>
    %9 = vector.broadcast %4 : vector<1x128xf32> to vector<128x128xf32>
    %10 = arith.mulf %8, %9 : vector<128x128xf32>
    %cst = arith.constant -5.000000e-01 : f32
    %11 = vector.broadcast %cst : f32 to vector<128x128xf32>
    %12 = arith.mulf %11, %10 : vector<128x128xf32>
    %13 = arith.mulf %12, %10 : vector<128x128xf32>
    %14 = math.exp %13 : vector<128x128xf32>
    %15 = vector.broadcast %5 : vector<1x128xf32> to vector<128x128xf32>
    %16 = arith.mulf %14, %15 : vector<128x128xf32>
    %c0_9 = arith.constant 0 : index
    %c0_10 = arith.constant 0 : index
    %17 = vector.load %arg3[%c0_9, %c0_10] : memref<128x128xf32, #tpu.memory_space<vmem>>, vector<128x128xf32>
    %cst_11 = arith.constant dense<0.000000e+00> : vector<128x128xf32>
    %18 = tpu.matmul %16, %17, %cst_11 {dimension_numbers = #tpu.dot_dimension_numbers<[1], [0], [0], [1], [0, 0, 1, 1], [], []>, precision = #tpu.contract_precision<fp32>} : vector<128x128xf32>, vector<128x128xf32>, vector<128x128xf32> -> vector<128x128xf32>
    %c0_12 = arith.constant 0 : index
    %c0_13 = arith.constant 0 : index
    %19 = vector.load %arg4[%c0_12, %c0_13] : memref<1x128xf32, #tpu.memory_space<vmem>>, vector<1x128xf32>
    %20 = vector.broadcast %19 : vector<1x128xf32> to vector<128x128xf32>
    %21 = arith.addf %18, %20 : vector<128x128xf32>
    %cst_14 = arith.constant 5.000000e-01 : f32
    %22 = vector.broadcast %cst_14 : f32 to vector<128x128xf32>
    %23 = arith.mulf %22, %21 : vector<128x128xf32>
    %cst_15 = arith.constant 4.471500e-02 : f32
    %24 = vector.broadcast %cst_15 : f32 to vector<128x128xf32>
    %25 = arith.mulf %24, %21 : vector<128x128xf32>
    %26 = arith.mulf %25, %21 : vector<128x128xf32>
    %27 = arith.mulf %26, %21 : vector<128x128xf32>
    %28 = arith.addf %21, %27 : vector<128x128xf32>
    %cst_16 = arith.constant 0.797884583 : f32
    %29 = vector.broadcast %cst_16 : f32 to vector<128x128xf32>
    %30 = arith.mulf %29, %28 : vector<128x128xf32>
    %31 = math.tanh %30 : vector<128x128xf32>
    %cst_17 = arith.constant 1.000000e+00 : f32
    %32 = vector.broadcast %cst_17 : f32 to vector<128x128xf32>
    %33 = arith.addf %32, %31 : vector<128x128xf32>
    %34 = arith.mulf %23, %33 : vector<128x128xf32>
    %c0_18 = arith.constant 0 : index
    %c0_19 = arith.constant 0 : index
    %35 = vector.load %arg5[%c0_18, %c0_19] : memref<128x128xf32, #tpu.memory_space<vmem>>, vector<128x128xf32>
    %cst_20 = arith.constant dense<0.000000e+00> : vector<128x128xf32>
    %36 = tpu.matmul %34, %35, %cst_20 {dimension_numbers = #tpu.dot_dimension_numbers<[1], [0], [0], [1], [0, 0, 1, 1], [], []>, precision = #tpu.contract_precision<fp32>} : vector<128x128xf32>, vector<128x128xf32>, vector<128x128xf32> -> vector<128x128xf32>
    %c0_21 = arith.constant 0 : index
    %c0_22 = arith.constant 0 : index
    %37 = vector.load %arg6[%c0_21, %c0_22] : memref<1x128xf32, #tpu.memory_space<vmem>>, vector<1x128xf32>
    %38 = vector.broadcast %37 : vector<1x128xf32> to vector<128x128xf32>
    %39 = arith.addf %36, %38 : vector<128x128xf32>
    %40 = vector.broadcast %1 : vector<128x1xf32> to vector<128x128xf32>
    %41 = arith.addf %39, %40 : vector<128x128xf32>
    %c0_23 = arith.constant 0 : index
    %c0_24 = arith.constant 0 : index
    %42 = vector.load %arg7[%c0_23, %c0_24] : memref<1x128xf32, #tpu.memory_space<vmem>>, vector<1x128xf32>
    %43 = vector.broadcast %2 : vector<128x1xf32> to vector<128x128xf32>
    %44 = vector.broadcast %42 : vector<1x128xf32> to vector<128x128xf32>
    %45 = arith.mulf %43, %44 : vector<128x128xf32>
    %46 = arith.addf %41, %45 : vector<128x128xf32>
    %c0_25 = arith.constant 0 : index
    %c0_26 = arith.constant 0 : index
    %47 = vector.load %arg10[%c0_25, %c0_26] : memref<128x128xf32, #tpu.memory_space<vmem>>, vector<128x128xf32>
    tpu.vector_store %arg10[%c0_25, %c0_26], %46 {strides = array<i32>} : memref<128x128xf32, #tpu.memory_space<vmem>>, vector<128x128xf32>,
    %48 = vector.shape_cast %16 : vector<128x128xf32> to vector<16x8x128xf32>
    %cst_27 = arith.constant dense<0.000000e+00> : vector<16x128xf32>
    %49 = vector.multi_reduction <add>, %48, %cst_27 [1] : vector<16x8x128xf32> to vector<16x128xf32>
    %cst_28 = arith.constant 1.250000e-01 : f32
    %50 = vector.broadcast %cst_28 : f32 to vector<16x128xf32>
    %51 = arith.mulf %49, %50 : vector<16x128xf32>
    %c0_29 = arith.constant 0 : index
    %c0_30 = arith.constant 0 : index
    %52 = vector.load %arg8[%c0_29, %c0_30] : memref<128x64xf32, #tpu.memory_space<vmem>>, vector<128x64xf32>
    %cst_31 = arith.constant dense<0.000000e+00> : vector<16x64xf32>
    %53 = tpu.matmul %51, %52, %cst_31 {dimension_numbers = #tpu.dot_dimension_numbers<[1], [0], [0], [1], [0, 0, 1, 1], [], []>, precision = #tpu.contract_precision<fp32>} : vector<16x128xf32>, vector<128x64xf32>, vector<16x64xf32> -> vector<16x64xf32>
    %c0_32 = arith.constant 0 : index
    %c0_33 = arith.constant 0 : index
    %54 = vector.load %arg9[%c0_32, %c0_33] : memref<1x64xf32, #tpu.memory_space<vmem>>, vector<1x64xf32>
    %55 = vector.broadcast %54 : vector<1x64xf32> to vector<16x64xf32>
    %56 = arith.addf %53, %55 : vector<16x64xf32>
    %c0_34 = arith.constant 0 : index
    %c0_35 = arith.constant 0 : index
    %57 = vector.load %arg11[%c0_34, %c0_35] : memref<16x64xf32, #tpu.memory_space<vmem>>, vector<16x64xf32>
    tpu.vector_store %arg11[%c0_34, %c0_35], %56 {strides = array<i32>} : memref<16x64xf32, #tpu.memory_space<vmem>>, vector<16x64xf32>,
    return
  }
  func.func @transform_0(%arg0: i32) -> (i32, i32) {
    %c0_i32 = arith.constant 0 : i32
    %c0_i32_0 = arith.constant 0 : i32
    return %arg0, %c0_i32 : i32, i32
  }
  func.func @transform_1(%arg0: i32) -> (i32, i32) {
    %c0_i32 = arith.constant 0 : i32
    %c0_i32_0 = arith.constant 0 : i32
    %c0_i32_1 = arith.constant 0 : i32
    return %c0_i32, %c0_i32_0 : i32, i32
  }
  func.func @transform_2(%arg0: i32) -> (i32, i32) {
    %c0_i32 = arith.constant 0 : i32
    %c0_i32_0 = arith.constant 0 : i32
    %c0_i32_1 = arith.constant 0 : i32
    return %c0_i32, %c0_i32_0 : i32, i32
  }
  func.func @transform_3(%arg0: i32) -> (i32, i32) {
    %c0_i32 = arith.constant 0 : i32
    %c0_i32_0 = arith.constant 0 : i32
    %c0_i32_1 = arith.constant 0 : i32
    return %c0_i32, %c0_i32_0 : i32, i32
  }
  func.func @transform_4(%arg0: i32) -> (i32, i32) {
    %c0_i32 = arith.constant 0 : i32
    %c0_i32_0 = arith.constant 0 : i32
    %c0_i32_1 = arith.constant 0 : i32
    return %c0_i32, %c0_i32_0 : i32, i32
  }
  func.func @transform_5(%arg0: i32) -> (i32, i32) {
    %c0_i32 = arith.constant 0 : i32
    %c0_i32_0 = arith.constant 0 : i32
    %c0_i32_1 = arith.constant 0 : i32
    return %c0_i32, %c0_i32_0 : i32, i32
  }
  func.func @transform_6(%arg0: i32) -> (i32, i32) {
    %c0_i32 = arith.constant 0 : i32
    %c0_i32_0 = arith.constant 0 : i32
    %c0_i32_1 = arith.constant 0 : i32
    return %c0_i32, %c0_i32_0 : i32, i32
  }
  func.func @transform_7(%arg0: i32) -> (i32, i32) {
    %c0_i32 = arith.constant 0 : i32
    %c0_i32_0 = arith.constant 0 : i32
    %c0_i32_1 = arith.constant 0 : i32
    return %c0_i32, %c0_i32_0 : i32, i32
  }
  func.func @transform_8(%arg0: i32) -> (i32, i32) {
    %c0_i32 = arith.constant 0 : i32
    %c0_i32_0 = arith.constant 0 : i32
    %c0_i32_1 = arith.constant 0 : i32
    return %c0_i32, %c0_i32_0 : i32, i32
  }
  func.func @transform_9(%arg0: i32) -> (i32, i32) {
    %c0_i32 = arith.constant 0 : i32
    %c0_i32_0 = arith.constant 0 : i32
    return %arg0, %c0_i32 : i32, i32
  }
  func.func @transform_10(%arg0: i32) -> (i32, i32) {
    %c0_i32 = arith.constant 0 : i32
    %c0_i32_0 = arith.constant 0 : i32
    return %arg0, %c0_i32 : i32, i32
  }
}

</mosaic_0001>

<bundles_post_ra>
// kernel: graphormer_attention_bias_forward.1
= control target key start
LH: loop header
LB: loop body
LE: loop exit
PB: predicated region body
PF: predicated region fallthrough
CT: control target
= control target key end

     0   :  { %v6379_v2 = vmov 0   ;;  %s8569_s0 = inlined_call_operand.vmem [shape: f32[128,3], index: 0, kind: input, shape index: {}]   ;;  %s8570_s1 = inlined_call_operand.vmem [shape: f32[3,128], index: 1, kind: input, shape index: {}]   ;;  %s8571_s2 = inlined_call_operand.vmem [shape: f32[128,128], index: 2, kind: input, shape index: {}]   ;;  %s8572_s3 = inlined_call_operand.vmem [shape: f32[1,128], index: 3, kind: input, shape index: {}]   ;;  %s8573_s4 = inlined_call_operand.vmem [shape: f32[128,128], index: 4, kind: input, shape index: {}]   ;;  %s8574_s5 = inlined_call_operand.vmem [shape: f32[1,128], index: 5, kind: input, shape index: {}]   ;;  %s8575_s6 = inlined_call_operand.vmem [shape: f32[1,128], index: 6, kind: input, shape index: {}]   ;;  %s8576_s7 = inlined_call_operand.vmem [shape: f32[128,64], index: 7, kind: input, shape index: {}]   ;;  %s8577_s8 = inlined_call_operand.vmem [shape: f32[1,64], index: 8, kind: input, shape index: {}]   ;;  %s8578_s9 = inlined_call_operand.vmem [shape: f32[128,128], index: 9, kind: output, shape index: {0}]   ;;  %s8579_s10 = inlined_call_operand.hbm [shape: f32[16,64], index: 10, kind: output, shape index: {1}]  }
   0x1   :  { %v37_v0 = vld [vmem:[%s8569_s0 + $0x10] sm:$0xff]  ;;  %v35_v1 = vld [vmem:[%s8569_s0] sm:$0xff]  ;;  %6268 = vset.pattern.permute.xlu1 %v6379_v2  ;;  %6267 = vset.pattern.permute.xlu0 %v6379_v2  ;;  %v38_v3 = vld [vmem:[%s8569_s0 + $0x18] sm:$0xff] }
   0x2   :  { %66 = vperm.xlu1 %6268, %v37_v0   ;;  %56 = vperm.xlu0 %6267, %v35_v1   ;;  %v36_v4 = vld [vmem:[%s8569_s0 + $0x8] sm:$0xff]  ;;  %v258_v5 = vld [vmem:[%s8571_s2] sm:$0xff]  ;;  %v260_v11 = vld [vmem:[%s8571_s2 + $0x10] sm:$0xff] }
   0x3   :  { %v259_v6 = vld [vmem:[%s8571_s2 + $0x8] sm:$0xff]  ;;  %v39_v8 = vld [vmem:[%s8569_s0 + $0x20] sm:$0xff]  ;;  %v282_v9 = vand.u32 4294901760, %v258_v5  ;;  %v261_v12 = vld [vmem:[%s8571_s2 + $0x18] sm:$0xff]  ;;  %v288_v17 = vand.u32 4294901760, %v260_v11 }
   0x4   :  { %v40_v7 = vld [vmem:[%s8569_s0 + $0x28] sm:$0xff]  ;;  %v285_v10 = vand.u32 4294901760, %v259_v6  ;;  %v262_v13 = vld [vmem:[%s8571_s2 + $0x20] sm:$0xff]  ;;  %v264_v19 = vld [vmem:[%s8571_s2 + $0x30] sm:$0xff]  ;;  %v291_v21 = vand.u32 4294901760, %v261_v12 }
   0x5   :  { %v6475_v15 = vsub.f32 %v258_v5, %v282_v9  ;;  %v263_v18 = vld [vmem:[%s8571_s2 + $0x28] sm:$0xff]  ;;  %v265_v20 = vld [vmem:[%s8571_s2 + $0x38] sm:$0xff]  ;;  %v294_v22 = vand.u32 4294901760, %v262_v13 }
   0x6   :  { %71 = vperm.xlu1 %6268, %v38_v3   ;;  %61 = vperm.xlu0 %6267, %v36_v4   ;;  %v6473_v14 = vpack.c.bf16 %v285_v10, %v282_v9  ;;  %v6477_v16 = vsub.f32 %v259_v6, %v285_v10  ;;  %v297_v23 = vand.u32 4294901760, %v263_v18 }
   0x8   :  { %8742 = vst [vmem:[#allocation5_spill] sm:$0xff] %v6473_v14 }
   0x9   :  { %16 = vsyncpa [#allocation3], 0  ;;  %v5545_v24 = vpack.c.bf16 %v6477_v16, %v6475_v15  ;;  %v6490_v25 = vsub.f32 %v260_v11, %v288_v17  ;;  %v300_v26 = vand.u32 4294901760, %v264_v19  ;;  %v303_v27 = vand.u32 4294901760, %v265_v20  ;;  %v42_v28 = vld [vmem:[%s8569_s0 + $0x38] sm:$0xff]  ;;  %v41_v29 = vld [vmem:[%s8569_s0 + $0x30] sm:$0xff]  ;;  %5482 = vmatprep.subr.bf16.mxu1 %v6473_v14 }
   0xa   :  { %81 = vperm.xlu1 %6268, %v40_v7   ;;  %76 = vperm.xlu0 %6267, %v39_v8   ;;  %v6498_v30 = vpack.c.bf16 %v291_v21, %v288_v17  ;;  %v6500_v31 = vsub.f32 %v261_v12, %v291_v21  ;;  %v6503_v32 = vsub.f32 %v262_v13, %v294_v22  ;;  %v266_v34 = vld [vmem:[%s8571_s2 + $0x40] sm:$0xff]  ;;  %v267_v35 = vld [vmem:[%s8571_s2 + $0x48] sm:$0xff]  ;;  %v268_v45 = vld [vmem:[%s8571_s2 + $0x50] sm:$0xff]  ;;  %v532_v21 = vand.u32 4294901760, %v6477_v16 }
   0xb   :  { %v6505_v33 = vsub.f32 %v263_v18, %v297_v23  ;;  %5546 = vmatprep.subr.bf16.mxu0 %v5545_v24  ;;  %5484 = vmatpush3.bf16.msra.mxu1 %v6473_v14  ;;  %v6517_v37 = vpack.c.bf16 %v297_v23, %v294_v22  ;;  %v6519_v38 = vsub.f32 %v264_v19, %v300_v26  ;;  %v306_v40 = vand.u32 4294901760, %v266_v34  ;;  %v44_v41 = vld [vmem:[%s8569_s0 + $0x48] sm:$0xff]  ;;  %v43_v42 = vld [vmem:[%s8569_s0 + $0x40] sm:$0xff]  ;;  %v269_v46 = vld [vmem:[%s8571_s2 + $0x58] sm:$0xff] }
   0xc   :  { %8743 = vst [vmem:[#allocation6_spill] sm:$0xff] %v6498_v30  ;;  %5548 = vmatpush3.bf16.msra.mxu0 %v5545_v24  ;;  %v5549_v36 = vpack.c.bf16 %v6500_v31, %v6490_v25  ;;  %5486 = vmatprep.subr.bf16.mxu1 %v6498_v30  ;;  %v6521_v39 = vsub.f32 %v265_v20, %v303_v27  ;;  %v309_v44 = vand.u32 4294901760, %v267_v35  ;;  %v46_v47 = vld [vmem:[%s8569_s0 + $0x58] sm:$0xff]  ;;  %v45_v50 = vld [vmem:[%s8569_s0 + $0x50] sm:$0xff]  ;;  %v312_v53 = vand.u32 4294901760, %v268_v45  ;;  %v270_v55 = vld [vmem:[%s8571_s2 + $0x60] sm:$0xff] }
   0xd   :  { %8744 = vst [vmem:[#allocation7_spill] sm:$0xff] %v6517_v37  ;;  %v5553_v43 = vpack.c.bf16 %v6505_v33, %v6503_v32  ;;  %v6544_v49 = vsub.f32 %v266_v34, %v306_v40  ;;  %v6549_v51 = vpack.c.bf16 %v303_v27, %v300_v26  ;;  %v315_v54 = vand.u32 4294901760, %v269_v46  ;;  %v271_v56 = vld [vmem:[%s8571_s2 + $0x68] sm:$0xff]  ;;  %v47_v60 = vld [vmem:[%s8569_s0 + $0x60] sm:$0xff]  ;;  %v272_v1 = vld [vmem:[%s8571_s2 + $0x70] sm:$0xff] }
   0xe   :  { %91 = vperm.xlu1 %6268, %v42_v28   ;;  %86 = vperm.xlu0 %6267, %v41_v29   ;;  %v5557_v48 = vpack.c.bf16 %v6521_v39, %v6519_v38  ;;  %v6551_v52 = vsub.f32 %v267_v35, %v309_v44  ;;  %v48_v57 = vld [vmem:[%s8569_s0 + $0x68] sm:$0xff]  ;;  %v318_v58 = vand.u32 4294901760, %v270_v55  ;;  %v321_v59 = vand.u32 4294901760, %v271_v56  ;;  %v273_v2 = vld [vmem:[%s8571_s2 + $0x78] sm:$0xff]  ;;  %v49_v8 = vld [vmem:[%s8569_s0 + $0x70] sm:$0xff] }
   0xf   :  { %5550 = vmatprep.subr.bf16.mxu0 %v5549_v36  ;;  %5488 = vmatpush3.bf16.msra.mxu1 %v6498_v30  ;;  %8745 = vst [vmem:[#allocation8_spill] sm:$0xff] %v6549_v51  ;;  %v6567_v61 = vpack.c.bf16 %v309_v44, %v306_v40  ;;  %v6571_v63 = vsub.f32 %v268_v45, %v312_v53  ;;  %v324_v5 = vand.u32 4294901760, %v272_v1  ;;  %v327_v6 = vand.u32 4294901760, %v273_v2  ;;  %v50_v7 = vld [vmem:[%s8569_s0 + $0x78] sm:$0xff] }
  0x10   :  { %5552 = vmatpush3.bf16.msra.mxu0 %v5549_v36  ;;  %5490 = vmatprep.subr.bf16.mxu1 %v6517_v37  ;;  %v5561_v62 = vpack.c.bf16 %v6551_v52, %v6544_v49  ;;  %v6573_v0 = vsub.f32 %v269_v46, %v315_v54  ;;  %v6583_v3 = vsub.f32 %v270_v55, %v318_v58  ;;  %v525_v20 = vand.u32 4294901760, %v6475_v15 }
  0x11   :  { %5554 = vmatprep.subr.bf16.mxu0 %v5553_v43  ;;  %8746 = vst [vmem:[#allocation9_spill] sm:$0xff] %v6567_v61  ;;  %v6585_v4 = vsub.f32 %v271_v56, %v321_v59  ;;  %v6593_v9 = vpack.c.bf16 %v315_v54, %v312_v53  ;;  %v6601_v12 = vsub.f32 %v272_v1, %v324_v5  ;;  %v539_v28 = vand.u32 4294901760, %v6490_v25 }
  0x12   :  { %101 = vperm.xlu1 %6268, %v44_v41   ;;  %96 = vperm.xlu0 %6267, %v43_v42   ;;  %v5565_v10 = vpack.c.bf16 %v6573_v0, %v6571_v63  ;;  %v6603_v13 = vsub.f32 %v273_v2, %v327_v6  ;;  %v6605_v17 = vpack.c.bf16 %v321_v59, %v318_v58  ;;  %v546_v29 = vand.u32 4294901760, %v6500_v31 }
  0x13   :  { %5492 = vmatpush3.bf16.msra.mxu1 %v6517_v37  ;;  %8747 = vst [vmem:[#allocation10_spill] sm:$0xff] %v6593_v9  ;;  %v5569_v11 = vpack.c.bf16 %v6585_v4, %v6583_v3  ;;  %v6611_v19 = vpack.c.bf16 %v327_v6, %v324_v5  ;;  %v526_v22 = vsub.f32 %v6475_v15, %v525_v20  ;;  %v553_v15 = vand.u32 4294901760, %v6503_v32 }
  0x14   :  { %5556 = vmatpush3.bf16.msra.mxu0 %v5553_v43  ;;  %5494 = vmatprep.subr.bf16.mxu1 %v6549_v51  ;;  %8748 = vst [vmem:[#allocation11_spill] sm:$0xff] %v6605_v17  ;;  %v5573_v18 = vpack.c.bf16 %v6603_v13, %v6601_v12  ;;  %v533_v23 = vsub.f32 %v6477_v16, %v532_v21  ;;  %v560_v16 = vand.u32 4294901760, %v6505_v33  ;;  %v567_v46 = vand.u32 4294901760, %v6519_v38 }
  0x15   :  { %5558 = vmatprep.subr.bf16.mxu0 %v5557_v48  ;;  %8749 = vst [vmem:[#allocation12_spill] sm:$0xff] %v6611_v19  ;;  %v527_v24 = vand.u32 4294901760, %v526_v22  ;;  %v540_v34 = vsub.f32 %v6490_v25, %v539_v28  ;;  %v547_v35 = vsub.f32 %v6500_v31, %v546_v29  ;;  %v554_v42 = vsub.f32 %v6503_v32, %v553_v15 }
  0x16   :  { %111 = vperm.xlu1 %6268, %v46_v47   ;;  %106 = vperm.xlu0 %6267, %v45_v50   ;;  %v534_v26 = vand.u32 4294901760, %v533_v23  ;;  %v561_v43 = vsub.f32 %v6505_v33, %v560_v16  ;;  %v574_v25 = vand.u32 4294901760, %v6521_v39  ;;  %v568_v31 = vsub.f32 %v6519_v38, %v567_v46 }
  0x17   :  { %5496 = vmatpush3.bf16.msra.mxu1 %v6549_v51  ;;  %v541_v36 = vand.u32 4294901760, %v540_v34  ;;  %v548_v40 = vand.u32 4294901760, %v547_v35  ;;  %v555_v44 = vand.u32 4294901760, %v554_v42  ;;  %v581_v32 = vand.u32 4294901760, %v6544_v49 }
  0x18   :  { %5560 = vmatpush3.bf16.msra.mxu0 %v5557_v48  ;;  %5498 = vmatprep.subr.bf16.mxu1 %v6567_v61  ;;  %v6621_v27 = vpack.c.bf16 %v534_v26, %v527_v24  ;;  %v562_v45 = vand.u32 4294901760, %v561_v43  ;;  %v575_v48 = vsub.f32 %v6521_v39, %v574_v25  ;;  %v569_v50 = vand.u32 4294901760, %v568_v31 }
  0x19   :  { %5562 = vmatprep.subr.bf16.mxu0 %v5561_v62  ;;  %v6630_v41 = vpack.c.bf16 %v548_v40, %v541_v36  ;;  %v588_v33 = vand.u32 4294901760, %v6551_v52  ;;  %v582_v55 = vsub.f32 %v6544_v49, %v581_v32  ;;  %v595_v38 = vand.u32 4294901760, %v6571_v63 }
  0x1a   :  { %121 = vperm.xlu1 %6268, %v48_v57   ;;  %116 = vperm.xlu0 %6267, %v47_v60   ;;  %v6636_v47 = vpack.c.bf16 %v562_v45, %v555_v44  ;;  %v576_v53 = vand.u32 4294901760, %v575_v48  ;;  %v602_v39 = vand.u32 4294901760, %v6573_v0  ;;  %v609_v5 = vand.u32 4294901760, %v6583_v3 }
  0x1b   :  { %5500 = vmatpush3.bf16.msra.mxu1 %v6567_v61  ;;  %v589_v56 = vsub.f32 %v6551_v52, %v588_v33  ;;  %v583_v57 = vand.u32 4294901760, %v582_v55  ;;  %v596_v60 = vsub.f32 %v6571_v63, %v595_v38  ;;  %v616_v49 = vand.u32 4294901760, %v6585_v4 }
  0x1c   :  { %5564 = vmatpush3.bf16.msra.mxu0 %v5561_v62  ;;  %5502 = vmatprep.subr.bf16.mxu1 %v6593_v9  ;;  %v6640_v54 = vpack.c.bf16 %v576_v53, %v569_v50  ;;  %v603_v62 = vsub.f32 %v6573_v0, %v602_v39  ;;  %v610_v52 = vsub.f32 %v6583_v3, %v609_v5  ;;  %v623_v63 = vand.u32 4294901760, %v6601_v12 }
  0x1d   :  { %5566 = vmatprep.subr.bf16.mxu0 %v5565_v10  ;;  %v590_v58 = vand.u32 4294901760, %v589_v56  ;;  %v597_v1 = vand.u32 4294901760, %v596_v60  ;;  %v630_v0 = vand.u32 4294901760, %v6603_v13  ;;  %v6666_v34 = vpack.c.bf16 %v546_v29, %v539_v28 }
  0x1e   :  { %131 = vperm.xlu1 %6268, %v50_v7   ;;  %126 = vperm.xlu0 %6267, %v49_v8   ;;  %v604_v2 = vand.u32 4294901760, %v603_v62  ;;  %v617_v7 = vsub.f32 %v6585_v4, %v616_v49  ;;  %v611_v8 = vand.u32 4294901760, %v610_v52  ;;  %v624_v22 = vsub.f32 %v6601_v12, %v623_v63  ;;  %v6685_v12 = vld [vmem:[%s8570_s1] ss:$0 sm:$0xff] }
  0x1f   :  { %5504 = vmatpush3.bf16.msra.mxu1 %v6593_v9  ;;  %v6646_v59 = vpack.c.bf16 %v590_v58, %v583_v57  ;;  %v631_v23 = vsub.f32 %v6603_v13, %v630_v0  ;;  %v6670_v4 = vpack.c.bf16 %v560_v16, %v553_v15  ;;  %v6676_v35 = vpack.c.bf16 %v602_v39, %v595_v38  ;;  %v6690_v13 = vld [vmem:[%s8570_s1 + $0x1] ss:$0 sm:$0xff]  ;;  %v6708_v38 = vld [vmem:[%s8576_s7 + $0x8] sm:$0xff] }
  0x20   :  { %5568 = vmatpush3.bf16.msra.mxu0 %v5565_v10  ;;  %5506 = vmatprep.subr.bf16.mxu1 %v6605_v17  ;;  %v6654_v6 = vpack.c.bf16 %v604_v2, %v597_v1  ;;  %v618_v10 = vand.u32 4294901760, %v617_v7  ;;  %v625_v24 = vand.u32 4294901760, %v624_v22  ;;  %v6678_v36 = vpack.c.bf16 %v616_v49, %v609_v5  ;;  %v6703_v58 = vld [vmem:[%s8576_s7] sm:$0xff]  ;;  %8753 = vst [vmem:[#allocation16_spill] sm:$0xff] %v6708_v38 }
  0x21   :  { %5570 = vmatprep.subr.bf16.mxu0 %v5569_v11  ;;  %v632_v26 = vand.u32 4294901760, %v631_v23  ;;  %v6680_v40 = vpack.c.bf16 %v630_v0, %v623_v63  ;;  %8752 = vst [vmem:[#allocation15_spill] sm:$0xff] %v6703_v58  ;;  %v8581_v52 = vand.u32 4294901760, %v6703_v58  ;;  %v8580_v7 = vand.u32 4294901760, %v6708_v38 }
  0x22   :  { %8750 = vst [vmem:[#allocation13_spill] sm:$0xff] %v6678_v36  ;;  %vm3370_vm0 = vcmask 1041409   ;;  %vm3372_vm1 = vcmask 1042434   ;;  %vm3374_vm2 = vcmask 1043459   ;;  %vm3376_vm3 = vcmask 1044484  }
  0x23   :  { %5508 = vmatpush3.bf16.msra.mxu1 %v6605_v17  ;;  %v6668_v3 = vpack.c.bf16 %v632_v26, %v625_v24  ;;  %8751 = vst [vmem:[#allocation14_spill] sm:$0xff] %v6680_v40  ;;  %v6721_v24 = vpack.c.bf16 %v8580_v7, %v8581_v52  ;;  %vm3378_vm4 = vcmask 1045509   ;;  %vm3380_vm5 = vcmask 1046534  }
  0x24   :  { %5572 = vmatpush3.bf16.msra.mxu0 %v5569_v11  ;;  %5510 = vmatprep.subr.bf16.mxu1 %v6611_v19  ;;  %v6658_v11 = vpack.c.bf16 %v532_v21, %v525_v20  ;;  %v6672_v20 = vpack.c.bf16 %v574_v25, %v567_v46  ;;  %v6674_v21 = vpack.c.bf16 %v588_v33, %v581_v32  ;;  %vm3382_vm6 = vcmask 1047559  }
  0x25   :  { %5574 = vmatprep.subr.bf16.mxu0 %v5573_v18  ;;  %8754 = vst [vmem:[#allocation17_spill] sm:$0xff] %v6721_v24  ;;  %vm4077_vm7 = vcmask 523264  }
  0x27   :  { %5512 = vmatpush3.bf16.msra.mxu1 %v6611_v19 }
  0x28   :  { %5576 = vmatpush3.bf16.msra.mxu0 %v5573_v18  ;;  %5514 = vmatprep.subr.bf16.mxu1 %v6621_v27  ;;  %v6662_v18 = vpack.c.bf16 %v618_v10, %v611_v8 }
  0x29   :  { %5578 = vmatprep.subr.bf16.mxu0 %v6473_v14 }
  0x81   :  { %v67_v28 = vpop.permute.xlu1 %66  ;;  %v57_v29 = vpop.permute.xlu0 %56 }
  0x82   :  { %v140_v15 = vsub.f32 %v67_v28, %v6685_v12  ;;  %v138_v16 = vsub.f32 %v57_v29, %v6685_v12 }
  0x84   :  { %v160_v42 = vmul.f32 %v6690_v13, %v140_v15  ;;  %v158_v43 = vmul.f32 %v6690_v13, %v138_v16 }
  0x85   :  { %v72_v44 = vpop.permute.xlu1 %71  ;;  %v62_v45 = vpop.permute.xlu0 %61 }
  0x86   :  { %v174_v46 = vmul.f32 -0.5, %v158_v43  ;;  %v141_v25 = vsub.f32 %v72_v44, %v6685_v12  ;;  %v139_v31 = vsub.f32 %v62_v45, %v6685_v12  ;;  %v176_v48 = vmul.f32 -0.5, %v160_v42 }
  0x88   :  { %v190_v50 = vmul.f32 %v174_v46, %v158_v43  ;;  %v159_v53 = vmul.f32 %v6690_v13, %v139_v31  ;;  %v161_v56 = vmul.f32 %v6690_v13, %v141_v25  ;;  %v192_v39 = vmul.f32 %v176_v48, %v160_v42 }
  0x89   :  { %v82_v32 = vpop.permute.xlu1 %81  ;;  %v77_v33 = vpop.permute.xlu0 %76 }
  0x8a   :  { %v206_v55 = vmul.f32 1.442695, %v190_v50  ;;  %v175_v57 = vmul.f32 -0.5, %v159_v53  ;;  %v143_v60 = vsub.f32 %v82_v32, %v6685_v12  ;;  %v142_v62 = vsub.f32 %v77_v33, %v6685_v12 }
  0x8b   :  { %v177_v8 = vmul.f32 -0.5, %v161_v56  ;;  %v210_v0 = vmul.f32 1.442695, %v192_v39 }
  0x8c   :  { %v191_v1 = vmul.f32 %v175_v57, %v159_v53  ;;  %6273 = vpow2.f32 %v206_v55  ;;  %v162_v2 = vmul.f32 %v6690_v13, %v142_v62  ;;  %v163_v22 = vmul.f32 %v6690_v13, %v143_v60  ;;  %v6732_v53 = vld [vmem:[%s8570_s1 + $0x2] ss:$0 sm:$0xff] }
  0x8d   :  { %v92_v5 = vpop.permute.xlu1 %91  ;;  %v87_v49 = vpop.permute.xlu0 %86  ;;  %v193_v16 = vmul.f32 %v177_v8, %v161_v56 }
  0x8e   :  { %v208_v10 = vmul.f32 1.442695, %v191_v1  ;;  %v144_v63 = vsub.f32 %v87_v49, %v6685_v12  ;;  %v178_v23 = vmul.f32 -0.5, %v162_v2  ;;  %v145_v26 = vsub.f32 %v92_v5, %v6685_v12 }
  0x8f   :  { %v179_v44 = vmul.f32 -0.5, %v163_v22  ;;  %v212_v32 = vmul.f32 1.442695, %v193_v16 }
  0x90   :  { %v164_v28 = vmul.f32 %v6690_v13, %v144_v63  ;;  %6275 = vpow2.f32 %v208_v10  ;;  %v194_v45 = vmul.f32 %v178_v23, %v162_v2  ;;  %v165_v46 = vmul.f32 %v6690_v13, %v145_v26 }
  0x91   :  { %v102_v29 = vpop.permute.xlu1 %101  ;;  %v97_v15 = vpop.permute.xlu0 %96  ;;  %6277 = vpow2.f32 %v210_v0  ;;  %v195_v56 = vmul.f32 %v179_v44, %v163_v22 }
  0x92   :  { %v147_v42 = vsub.f32 %v102_v29, %v6685_v12  ;;  %v146_v43 = vsub.f32 %v97_v15, %v6685_v12  ;;  %v180_v25 = vmul.f32 -0.5, %v164_v28  ;;  %v214_v57 = vmul.f32 1.442695, %v194_v45 }
  0x93   :  { %v181_v60 = vmul.f32 -0.5, %v165_v46  ;;  %6279 = vpow2.f32 %v212_v32  ;;  %v216_v22 = vmul.f32 1.442695, %v195_v56 }
  0x94   :  { %v166_v31 = vmul.f32 %v6690_v13, %v146_v43  ;;  %v167_v33 = vmul.f32 %v6690_v13, %v147_v42  ;;  %v196_v62 = vmul.f32 %v180_v25, %v164_v28  ;;  %6281 = vpow2.f32 %v214_v57 }
  0x95   :  { %v112_v48 = vpop.permute.xlu1 %111  ;;  %v107_v50 = vpop.permute.xlu0 %106  ;;  %v197_v29 = vmul.f32 %v181_v60, %v165_v46  ;;  %6283 = vpow2.f32 %v216_v22 }
  0x96   :  { %v6274_v55 = vpop.eup %6273  ;;  %v148_v39 = vsub.f32 %v107_v50, %v6685_v12  ;;  %v149_v1 = vsub.f32 %v112_v48, %v6685_v12  ;;  %v182_v5 = vmul.f32 -0.5, %v166_v31  ;;  %v183_v10 = vmul.f32 -0.5, %v167_v33 }
  0x97   :  { %v6738_v2 = vmul.f32 %v6274_v55, %v6732_v53  ;;  %v218_v15 = vmul.f32 1.442695, %v196_v62  ;;  %v220_v55 = vmul.f32 1.442695, %v197_v29 }
  0x98   :  { %v168_v49 = vmul.f32 %v6690_v13, %v148_v39  ;;  %v169_v16 = vmul.f32 %v6690_v13, %v149_v1  ;;  %v198_v44 = vmul.f32 %v182_v5, %v166_v31  ;;  %v199_v25 = vmul.f32 %v183_v10, %v167_v33 }
  0x99   :  { %v117_v8 = vpop.permute.xlu0 %116  ;;  %v122_v63 = vpop.permute.xlu1 %121  ;;  %v6742_v0 = vand.u32 4294901760, %v6738_v2  ;;  %6285 = vpow2.f32 %v218_v15 }
  0x9a   :  { %v184_v23 = vmul.f32 -0.5, %v168_v49  ;;  %v150_v26 = vsub.f32 %v117_v8, %v6685_v12  ;;  %v6276_v28 = vpop.eup %6275  ;;  %v151_v45 = vsub.f32 %v122_v63, %v6685_v12  ;;  %v185_v56 = vmul.f32 -0.5, %v169_v16 }
  0x9b   :  { %v6748_v42 = vsub.f32 %v6738_v2, %v6742_v0  ;;  %v6278_v43 = vpop.eup %6277  ;;  %v6754_v46 = vmul.f32 %v6276_v28, %v6732_v53  ;;  %v222_v31 = vmul.f32 1.442695, %v198_v44  ;;  %v224_v62 = vmul.f32 1.442695, %v199_v25 }
  0x9c   :  { %v200_v50 = vmul.f32 %v184_v23, %v168_v49  ;;  %v170_v32 = vmul.f32 %v6690_v13, %v150_v26  ;;  %v6757_v57 = vmul.f32 %v6278_v43, %v6732_v53  ;;  %v171_v39 = vmul.f32 %v6690_v13, %v151_v45 }
  0x9d   :  { %4743 = vmatprep.mubr.f32.mxu0 %v6748_v42  ;;  %v127_v48 = vpop.permute.xlu0 %126  ;;  %v6762_v60 = vand.u32 4294901760, %v6754_v46  ;;  %v6280_v8 = vpop.eup %6279  ;;  %6287 = vpow2.f32 %v220_v55  ;;  %v201_v10 = vmul.f32 %v185_v56, %v169_v16  ;;  %v8585_v15 = vand.u32 4294901760, %v6748_v42 }
  0x9e   :  { %v152_v33 = vsub.f32 %v127_v48, %v6685_v12  ;;  %v226_v1 = vmul.f32 1.442695, %v200_v50  ;;  %v186_v5 = vmul.f32 -0.5, %v170_v32  ;;  %v132_v63 = vpop.permute.xlu1 %131  ;;  %v6769_v22 = vand.u32 4294901760, %v6757_v57  ;;  %v6282_v23 = vpop.eup %6281 }
  0x9f   :  { %v6766_v49 = vsub.f32 %v6754_v46, %v6762_v60  ;;  %6289 = vpow2.f32 %v222_v31  ;;  %v187_v26 = vmul.f32 -0.5, %v171_v39  ;;  %v153_v43 = vsub.f32 %v132_v63, %v6685_v12  ;;  %v6284_v50 = vpop.eup %6283 }
  0xa0   :  { %v172_v28 = vmul.f32 %v6690_v13, %v152_v33  ;;  %6291 = vpow2.f32 %v224_v62  ;;  %v6776_v29 = vsub.f32 %v6757_v57, %v6769_v22  ;;  %v202_v16 = vmul.f32 %v186_v5, %v170_v32 }
  0xa1   :  { %4744 = vmatmul.mubr.f32.vlgmr.msra.gmra.mrb[0].mxu0 %v6766_v49  ;;  %6293 = vpow2.f32 %v226_v1  ;;  %v6782_v44 = vmul.f32 %v6280_v8, %v6732_v53  ;;  %v228_v45 = vmul.f32 1.442695, %v201_v10  ;;  %v365_v25 = vsub.f32 %v6748_v42, %v8585_v15 }
  0xa2   :  { %5580 = vmatpush3.bf16.msra.mxu0 %v6473_v14  ;;  %4746 = vmatprep.mubr.f32.mxu0 %v6776_v29  ;;  %v6789_v48 = vmul.f32 %v6282_v23, %v6732_v53  ;;  %v203_v55 = vmul.f32 %v187_v26, %v171_v39  ;;  %v188_v32 = vmul.f32 -0.5, %v172_v28  ;;  %v230_v62 = vmul.f32 1.442695, %v202_v16 }
  0xa3   :  { %5582 = vmatprep.subr.bf16.mxu0 %v6498_v30  ;;  %v6792_v12 = vand.u32 4294901760, %v6782_v44  ;;  %v6286_v56 = vpop.eup %6285  ;;  %v366_v31 = vand.u32 4294901760, %v365_v25  ;;  %v173_v1 = vmul.f32 %v6690_v13, %v153_v43  ;;  %v8583_v39 = vand.u32 4294901760, %v6766_v49 }
  0xa4   :  { %v6796_v33 = vand.u32 4294901760, %v6789_v48  ;;  %6295 = vpow2.f32 %v228_v45  ;;  %v8582_v10 = vand.u32 4294901760, %v6776_v29  ;;  %v232_v63 = vmul.f32 1.442695, %v203_v55 }
  0xa5   :  { %v6801_v5 = vsub.f32 %v6782_v44, %v6792_v12  ;;  %4631 = vmatprep.mubr.f32.mxu1 %v366_v31  ;;  %v204_v23 = vmul.f32 %v188_v32, %v172_v28  ;;  %v375_v13 = vsub.f32 %v6766_v49, %v8583_v39  ;;  %v6815_v26 = vmul.f32 %v6284_v50, %v6732_v53 }
  0xa6   :  { %5584 = vmatpush3.bf16.msra.mxu0 %v6498_v30  ;;  %v6807_v8 = vsub.f32 %v6789_v48, %v6796_v33  ;;  %v385_v43 = vsub.f32 %v6776_v29, %v8582_v10  ;;  %v6823_v28 = vmul.f32 %v6286_v56, %v6732_v53  ;;  %6297 = vpow2.f32 %v230_v62 }
  0xa7   :  { %5586 = vmatprep.subr.bf16.mxu0 %v6517_v37  ;;  %4747 = vmatmul.mubr.f32.gmra.mrb[2].mxu0 %v6801_v5  ;;  %v6288_v16 = vpop.eup %6287  ;;  %v189_v25 = vmul.f32 -0.5, %v173_v1  ;;  %v376_v55 = vand.u32 4294901760, %v375_v13  ;;  %v6826_v32 = vand.u32 4294901760, %v6815_v26  ;;  %6299 = vpow2.f32 %v232_v63 }
  0xa8   :  { %4749 = vmatprep.mubr.f32.mxu0 %v6807_v8  ;;  %v386_v31 = vand.u32 4294901760, %v385_v43  ;;  %v6830_v7 = vand.u32 4294901760, %v6823_v28  ;;  %v234_v10 = vmul.f32 1.442695, %v204_v23  ;;  %v8584_v62 = vand.u32 4294901760, %v6801_v5 }
  0xa9   :  { %v6290_v45 = vpop.eup %6289  ;;  %4632 = vmatmul.mubr.f32.vlgmr.msra.gmra.mrb[0].mxu1 %v376_v55  ;;  %v6834_v56 = vsub.f32 %v6815_v26, %v6826_v32  ;;  %v8586_v43 = vand.u32 4294901760, %v6807_v8  ;;  %v6844_v39 = vmul.f32 %v6288_v16, %v6732_v53  ;;  %v205_v23 = vmul.f32 %v189_v25, %v173_v1 }
  0xaa   :  { %5588 = vmatpush3.bf16.msra.mxu0 %v6517_v37  ;;  %v6292_v50 = vpop.eup %6291  ;;  %4634 = vmatprep.mubr.f32.mxu1 %v386_v31  ;;  %v6840_v13 = vsub.f32 %v6823_v28, %v6830_v7  ;;  %v6847_v63 = vmul.f32 %v6290_v45, %v6732_v53  ;;  %v395_v55 = vsub.f32 %v6801_v5, %v8584_v62  ;;  %6301 = vpow2.f32 %v234_v10 }
  0xab   :  { %5590 = vmatprep.subr.bf16.mxu0 %v6549_v51  ;;  %v6294_v52 = vpop.eup %6293  ;;  %5516 = vmatpush3.bf16.msra.mxu1 %v6621_v27  ;;  %v8590_v27 = vand.u32 4294901760, %v6834_v56  ;;  %v6856_v31 = vmul.f32 %v6292_v50, %v6732_v53  ;;  %v405_v16 = vsub.f32 %v6807_v8, %v8586_v43  ;;  %v6863_v1 = vand.u32 4294901760, %v6844_v39 }
  0xac   :  { %4750 = vmatmul.mubr.f32.gmra.mrb[4].mxu0 %v6834_v56  ;;  %5518 = vmatprep.subr.bf16.mxu1 %v6630_v41  ;;  %v6867_v45 = vand.u32 4294901760, %v6847_v63  ;;  %v6870_v25 = vmul.f32 %v6294_v52, %v6732_v53  ;;  %v396_v50 = vand.u32 4294901760, %v395_v55  ;;  %v8595_v15 = vand.u32 4294901760, %v6840_v13 }
  0xad   :  { %4752 = vmatprep.mubr.f32.mxu0 %v6840_v13  ;;  %v415_v62 = vsub.f32 %v6834_v56, %v8590_v27  ;;  %v406_v24 = vand.u32 4294901760, %v405_v16  ;;  %v6887_v10 = vand.u32 4294901760, %v6856_v31  ;;  %v236_v55 = vmul.f32 1.442695, %v205_v23 }
  0xae   :  { %5592 = vmatpush3.bf16.msra.mxu0 %v6549_v51  ;;  %v6296_v43 = vpop.eup %6295  ;;  %v6880_v51 = vsub.f32 %v6844_v39, %v6863_v1  ;;  %v6884_v52 = vsub.f32 %v6847_v63, %v6867_v45  ;;  %4635 = vmatmul.mubr.f32.gmra.mrb[2].mxu1 %v396_v50  ;;  %v425_v16 = vsub.f32 %v6840_v13, %v8595_v15  ;;  %v3219_v50 = vrot.slane %v6738_v2, 4 }
  0xaf   :  { %5594 = vmatprep.subr.bf16.mxu0 %v6567_v61  ;;  %5520 = vmatpush3.bf16.msra.mxu1 %v6630_v41  ;;  %8755 = vst [vmem:[#allocation18_spill] sm:$0xff] %v6887_v10  ;;  %v6895_v41 = vand.u32 4294901760, %v6870_v25  ;;  %v416_v58 = vand.u32 4294901760, %v415_v62  ;;  %v6902_v37 = vmul.f32 %v6296_v43, %v6732_v53  ;;  %6303 = vpow2.f32 %v236_v55 }
  0xb0   :  { %5522 = vmatprep.subr.bf16.mxu1 %v6636_v47  ;;  %4637 = vmatprep.mubr.f32.mxu1 %v406_v24  ;;  %v8600_v27 = vand.u32 4294901760, %v6880_v51  ;;  %v6298_v38 = vpop.eup %6297  ;;  %v426_v23 = vand.u32 4294901760, %v425_v16  ;;  %v6907_v24 = vsub.f32 %v6856_v31, %v6887_v10 }
  0xb1   :  { %4753 = vmatmul.mubr.f32.gmra.mrb[6].mxu0 %v6880_v51  ;;  %8756 = vst [vmem:[#allocation19_spill] sm:$0xff] %v6895_v41  ;;  %v6911_v15 = vsub.f32 %v6870_v25, %v6895_v41  ;;  %v6300_v16 = vpop.eup %6299  ;;  %v6926_v30 = vmul.f32 %v6298_v38, %v6732_v53  ;;  %v3220_v38 = vadd.f32 %v3219_v50, %v6738_v2  ;;  %v3225_v50 = vrot.slane %v6754_v46, 4 }
  0xb2   :  { %4755 = vmatprep.mubr.f32.mxu0 %v6884_v52  ;;  %5596 = vmatpush3.bf16.msra.mxu0 %v6567_v61  ;;  %v435_v62 = vsub.f32 %v6880_v51, %v8600_v27  ;;  %v6922_v61 = vand.u32 4294901760, %v6902_v37 }
  0xb3   :  { %5524 = vmatpush3.bf16.msra.mxu1 %v6636_v47  ;;  %v8757_v47 = vand.u32 4294901760, %v6884_v52  ;;  %5598 = vmatprep.subr.bf16.mxu0 %v6593_v9 }
  0xb4   :  { %4638 = vmatmul.mubr.f32.gmra.mrb[4].mxu1 %v416_v58  ;;  %5526 = vmatprep.subr.bf16.mxu1 %v6640_v54  ;;  %8758 = vst [vmem:[#allocation20_spill] sm:$0xff] %v6922_v61  ;;  %v436_v55 = vand.u32 4294901760, %v435_v62  ;;  %v6933_v58 = vsub.f32 %v6902_v37, %v6922_v61  ;;  %v8603_v62 = vand.u32 4294901760, %v6907_v24  ;;  %v3231_v61 = vrot.slane %v6757_v57, 4 }
  0xb5   :  { %v445_v43 = vsub.f32 %v6884_v52, %v8757_v47  ;;  %4640 = vmatprep.mubr.f32.mxu1 %v426_v23  ;;  %4756 = vmatmul.mubr.f32.gmra.mrb[8].mxu0 %v6907_v24  ;;  %v6937_v23 = vand.u32 4294901760, %v6926_v30  ;;  %v6302_v47 = vpop.eup %6301 }
  0xb6   :  { %4758 = vmatprep.mubr.f32.mxu0 %v6911_v15  ;;  %8759 = vst [vmem:[#allocation21_spill] sm:$0xff] %v6933_v58  ;;  %5600 = vmatpush3.bf16.msra.mxu0 %v6593_v9  ;;  %v455_v9 = vsub.f32 %v6907_v24, %v8603_v62  ;;  %v6967_v62 = vld [vmem:[%s8576_s7 + $0x10] sm:$0xff]  ;;  %v7020_v10 = vadd.f32 %v3231_v61, %v6757_v57  ;;  %v7038_v57 = vld [vmem:[%s8576_s7 + $0x20] sm:$0xff] }
  0xb7   :  { %v446_v27 = vand.u32 4294901760, %v445_v43  ;;  %5528 = vmatpush3.bf16.msra.mxu1 %v6640_v54  ;;  %8760 = vst [vmem:[#allocation22_spill] sm:$0xff] %v6937_v23  ;;  %v8604_v43 = vand.u32 4294901760, %v6911_v15  ;;  %v6946_v54 = vsub.f32 %v6926_v30, %v6937_v23  ;;  %5602 = vmatprep.subr.bf16.mxu0 %v6605_v17  ;;  %8762 = vst [vmem:[#allocation24_spill] sm:$0xff] %v6967_v62 }
  0xb8   :  { %4641 = vmatmul.mubr.f32.gmra.mrb[6].mxu1 %v436_v55  ;;  %5530 = vmatprep.subr.bf16.mxu1 %v6646_v59  ;;  %v6962_v55 = vmul.f32 %v6302_v47, %v6732_v53  ;;  %v456_v14 = vand.u32 4294901760, %v455_v9 }
  0xb9   :  { %4643 = vmatprep.mubr.f32.mxu1 %v446_v27  ;;  %4759 = vmatmul.mubr.f32.gmra.mrb[10].mxu0 %v6933_v58  ;;  %8761 = vst [vmem:[#allocation23_spill] sm:$0xff] %v6946_v54  ;;  %v465_v2 = vsub.f32 %v6911_v15, %v8604_v43  ;;  %v6959_v27 = vmul.f32 %v6300_v16, %v6732_v53  ;;  %v3221_v43 = vrot.slane %v3220_v38, 2  ;;  %v6978_v16 = vld [vmem:[%s8576_s7 + $0x18] sm:$0xff]  ;;  %v6304_v47 = vpop.eup %6303  ;;  %v8626_v36 = vand.u32 4294901760, %v6946_v54 }
  0xba   :  { %4761 = vmatprep.mubr.f32.mxu0 %v6946_v54  ;;  %5604 = vmatpush3.bf16.msra.mxu0 %v6605_v17  ;;  %8764 = vst [vmem:[#allocation26_spill] sm:$0xff] %v6978_v16  ;;  %v6981_v40 = vand.u32 4294901760, %v6962_v55  ;;  %v3226_v17 = vadd.f32 %v3225_v50, %v6754_v46  ;;  %v3267_v50 = vrot.slane %v6847_v63, 4 }
  0xbb   :  { %5532 = vmatpush3.bf16.msra.mxu1 %v6646_v59  ;;  %v466_v23 = vand.u32 4294901760, %v465_v2  ;;  %v6972_v59 = vand.u32 4294901760, %v6959_v27  ;;  %5606 = vmatprep.subr.bf16.mxu0 %v6611_v19  ;;  %v8768_v2 = vand.u32 4294901760, %v6933_v58 }
  0xbc   :  { %5534 = vmatprep.subr.bf16.mxu1 %v6654_v6  ;;  %4644 = vmatmul.mubr.f32.gmra.mrb[8].mxu1 %v456_v14  ;;  %8765 = vst [vmem:[#allocation27_spill] sm:$0xff] %v6981_v40  ;;  %v6993_v14 = vadd.f32 %v3221_v43, %v3220_v38  ;;  %v6997_v9 = vsub.f32 %v6962_v55, %v6981_v40 }
  0xbd   :  { %8763 = vst [vmem:[#allocation25_spill] sm:$0xff] %v6972_v59  ;;  %4646 = vmatprep.mubr.f32.mxu1 %v466_v23  ;;  %v6989_v41 = vsub.f32 %v6959_v27, %v6972_v59  ;;  %v475_v46 = vsub.f32 %v6933_v58, %v8768_v2  ;;  %v485_v38 = vsub.f32 %v6946_v54, %v8626_v36  ;;  %v3279_v2 = vrot.slane %v6870_v25, 4  ;;  %v7060_v54 = vld [vmem:[%s8576_s7 + $0x30] sm:$0xff] }
  0xbe   :  { %8767 = vst [vmem:[#allocation29_spill] sm:$0xff] %v6997_v9  ;;  %5608 = vmatpush3.bf16.msra.mxu0 %v6611_v19  ;;  %v7012_v43 = vmul.f32 %v6304_v47, %v6732_v53  ;;  %v8627_v40 = vand.u32 4294901760, %v6997_v9  ;;  %v3227_v59 = vrot.slane %v3226_v17, 2  ;;  %v3237_v53 = vrot.slane %v6782_v44, 4 }
  0xbf   :  { %8766 = vst [vmem:[#allocation28_spill] sm:$0xff] %v6989_v41  ;;  %5536 = vmatpush3.bf16.msra.mxu1 %v6654_v6  ;;  %v3273_v6 = vrot.slane %v6856_v31, 4  ;;  %4762 = vmatmul.mubr.f32.gmra.mrb[12].mxu0 %v6989_v41  ;;  %v476_v23 = vand.u32 4294901760, %v475_v46  ;;  %v8628_v19 = vand.u32 4294901760, %v6989_v41  ;;  %v486_v58 = vand.u32 4294901760, %v485_v38 }
  0xc0   :  { %5538 = vmatprep.subr.bf16.mxu1 %v6662_v18  ;;  %5610 = vmatprep.subr.bf16.mxu0 %v6658_v11  ;;  %v7023_v36 = vand.u32 4294901760, %v7012_v43  ;;  %v3243_v47 = vrot.slane %v6789_v48, 4  ;;  %v505_v61 = vsub.f32 %v6997_v9, %v8627_v40 }
  0xc1   :  { %4764 = vmatprep.mubr.f32.mxu0 %v6997_v9  ;;  %4647 = vmatmul.mubr.f32.gmra.mrb[10].mxu1 %v476_v23  ;;  %v495_v46 = vsub.f32 %v6989_v41, %v8628_v19  ;;  %v3268_v23 = vadd.f32 %v3267_v50, %v6847_v63  ;;  %v3274_v38 = vadd.f32 %v3273_v6, %v6856_v31  ;;  %v8771_v19 = vand.u32 4294901760, %v6967_v62  ;;  %v7065_v63 = vld [vmem:[%s8576_s7 + $0x38] sm:$0xff] }
  0xc2   :  { %8769 = vst [vmem:[#allocation30_spill] sm:$0xff] %v7023_v36  ;;  %4649 = vmatprep.mubr.f32.mxu1 %v486_v58  ;;  %v7049_v40 = vsub.f32 %v7012_v43, %v7023_v36  ;;  %v8772_v9 = vand.u32 4294901760, %v6978_v16  ;;  %8774 = vst [vmem:[#allocation33_spill] sm:$0xff] %v7065_v63  ;;  %v3280_v31 = vadd.f32 %v3279_v2, %v6870_v25  ;;  %v3285_v58 = vrot.slane %v6902_v37, 4 }
  0xc3   :  { %5540 = vmatpush3.bf16.msra.mxu1 %v6662_v18  ;;  %v7043_v18 = vld [vmem:[%s8576_s7 + $0x28] sm:$0xff]  ;;  %v496_v50 = vand.u32 4294901760, %v495_v46  ;;  %v506_v6 = vand.u32 4294901760, %v505_v61  ;;  %v3291_v36 = vrot.slane %v6926_v30, 4  ;;  %v3228_v16 = vadd.f32 %v3227_v59, %v3226_v17  ;;  %v7083_v61 = vld [vmem:[%s8576_s7 + $0x40] sm:$0xff] }
  0xc4   :  { %5542 = vmatprep.subr.bf16.mxu1 %v6668_v3  ;;  %8770 = vst [vmem:[#allocation31_spill] sm:$0xff] %v7043_v18  ;;  %v7055_v41 = vpack.c.bf16 %v8772_v9, %v8771_v19  ;;  %4765 = vmatmul.mubr.f32.gmra.mrb[14].mxu0 %v7049_v40  ;;  %v8639_v19 = vand.u32 4294901760, %v7049_v40  ;;  %v8643_v9 = vand.u32 4294901760, %v7038_v57  ;;  %v3238_v62 = vadd.f32 %v3237_v53, %v6782_v44 }
  0xc5   :  { %v8775_v25 = vand.u32 4294901760, %v6748_v42  ;;  %4650 = vmatmul.mubr.f32.gmra.mrb[12].mxu1 %v496_v50  ;;  %v8645_v2 = vand.u32 4294901760, %v7060_v54  ;;  %v8644_v46 = vand.u32 4294901760, %v7065_v63  ;;  %v3244_v17 = vadd.f32 %v3243_v47, %v6789_v48 }
  0xc6   :  { %8773 = vst [vmem:[#allocation32_spill] sm:$0xff] %v7055_v41  ;;  %v8642_v41 = vand.u32 4294901760, %v7043_v18  ;;  %v3269_v44 = vrot.slane %v3268_v23, 2  ;;  %4652 = vmatprep.mubr.f32.mxu1 %v506_v6  ;;  %v515_v42 = vsub.f32 %v7049_v40, %v8639_v19  ;;  %v3275_v53 = vrot.slane %v3274_v38, 2 }
  0xc7   :  { %5544 = vmatpush3.bf16.msra.mxu1 %v6668_v3  ;;  %4799 = vmatprep.mubr.f32.mxu0 %v8775_v25  ;;  %v7088_v3 = vld [vmem:[%s8576_s7 + $0x48] sm:$0xff]  ;;  %v3281_v50 = vrot.slane %v3280_v31, 2  ;;  %v3286_v25 = vadd.f32 %v3285_v58, %v6902_v37  ;;  %v7105_v48 = vpack.c.bf16 %v8644_v46, %v8645_v2  ;;  %v3292_v47 = vadd.f32 %v3291_v36, %v6926_v30  ;;  %v7121_v30 = vld [vmem:[%s8576_s7 + $0x50] sm:$0xff]  ;;  %v7126_v36 = vld [vmem:[%s8576_s7 + $0x58] sm:$0xff] }
  0xc8   :  { %8776 = vst [vmem:[#allocation34_spill] sm:$0xff] %v7088_v3  ;;  %v7098_v59 = vpack.c.bf16 %v8642_v41, %v8643_v9  ;;  %v8779_v6 = vand.u32 4294901760, %v6766_v49  ;;  %v516_v19 = vand.u32 4294901760, %v515_v42  ;;  %v8653_v18 = vand.u32 4294901760, %v7083_v61 }
  0xc9   :  { %8778 = vst [vmem:[#allocation36_spill] sm:$0xff] %v7105_v48  ;;  %v8652_v41 = vand.u32 4294901760, %v7088_v3  ;;  %v3223_v9 = vrot.slane %v6993_v14, 1  ;;  %v3233_v37 = vrot.slane %v7020_v10, 2  ;;  %v3297_v58 = vrot.slane %v6959_v27, 4 }
  0xca   :  { %8777 = vst [vmem:[#allocation35_spill] sm:$0xff] %v7098_v59  ;;  %4800 = vmatmul.mubr.f32.vlgmr.msra.gmra.mrb[0].mxu0 %v8779_v6  ;;  %v8780_v46 = vand.u32 4294901760, %v6776_v29  ;;  %v3229_v49 = vrot.slane %v3228_v16, 1  ;;  %v3239_v42 = vrot.slane %v3238_v62, 2  ;;  %v3270_v6 = vadd.f32 %v3269_v44, %v3268_v23  ;;  %4653 = vmatmul.mubr.f32.gmra.mrb[14].mxu1 %v516_v19 }
  0xcb   :  { %5612 = vmatpush3.bf16.msra.mxu0 %v6658_v11  ;;  %v7133_v11 = vpack.c.bf16 %v8652_v41, %v8653_v18  ;;  %v3245_v29 = vrot.slane %v3244_v17, 2  ;;  %v3276_v2 = vadd.f32 %v3275_v53, %v3274_v38  ;;  %v3282_v48 = vadd.f32 %v3281_v50, %v3280_v31  ;;  %4687 = vmatprep.mubr.f32.mxu1 %v6742_v0 }
  0xcc   :  { %4802 = vmatprep.mubr.f32.mxu0 %v8780_v46  ;;  %5614 = vmatprep.subr.bf16.mxu0 %v6666_v34  ;;  %v3249_v46 = vrot.slane %v6815_v26, 4  ;;  %v3287_v59 = vrot.slane %v3286_v25, 2  ;;  %v3293_v63 = vrot.slane %v3292_v47, 2  ;;  %v8782_v23 = vand.u32 4294901760, %v6801_v5  ;;  %v7151_v5 = vld [vmem:[%s8576_s7 + $0x60] sm:$0xff] }
  0xcd   :  { %8781 = vst [vmem:[#allocation37_spill] sm:$0xff] %v7133_v11  ;;  %v8655_v19 = vand.u32 4294901760, %v7121_v30  ;;  %v8654_v44 = vand.u32 4294901760, %v7126_v36  ;;  %v3224_v3 = vadd.f32 %v3223_v9, %v6993_v14  ;;  %v3234_v41 = vadd.f32 %v3233_v37, %v7020_v10  ;;  %v7156_v14 = vld [vmem:[%s8576_s7 + $0x68] sm:$0xff] }
  0xce   :  { %4803 = vmatmul.mubr.f32.gmra.mrb[2].mxu0 %v8782_v23  ;;  %v3298_v18 = vadd.f32 %v3297_v58, %v6959_v27  ;;  %v3303_v38 = vrot.slane %v6962_v55, 4  ;;  %v8783_v31 = vand.u32 4294901760, %v6807_v8  ;;  %v3230_v10 = vadd.f32 %v3229_v49, %v3228_v16  ;;  %4688 = vmatmul.mubr.f32.vlgmr.msra.gmra.mrb[0].mxu1 %v6762_v60  ;;  %v7169_v8 = vld [vmem:[%s8576_s7 + $0x70] sm:$0xff] }
  0xcf   :  { %5616 = vmatpush3.bf16.msra.mxu0 %v6666_v34  ;;  %v3240_v9 = vadd.f32 %v3239_v42, %v3238_v62  ;;  %v3271_v27 = vrot.slane %v3270_v6, 1  ;;  %v7164_v34 = vpack.c.bf16 %v8654_v44, %v8655_v19  ;;  %v7174_v62 = vld [vmem:[%s8576_s7 + $0x78] sm:$0xff]  ;;  %v3246_v16 = vadd.f32 %v3245_v29, %v3244_v17  ;;  %4690 = vmatprep.mubr.f32.mxu1 %v6769_v22 }
  0xd0   :  { %4805 = vmatprep.mubr.f32.mxu0 %v8783_v31  ;;  %5618 = vmatprep.subr.bf16.mxu0 %v6670_v4  ;;  %v3250_v53 = vadd.f32 %v3249_v46, %v6815_v26  ;;  %v3277_v50 = vrot.slane %v3276_v2, 1  ;;  %v3283_v37 = vrot.slane %v3282_v48, 1  ;;  %v3288_v58 = vadd.f32 %v3287_v59, %v3286_v25 }
  0xd1   :  { %8784 = vst [vmem:[#allocation38_spill] sm:$0xff] %v7164_v34  ;;  %v3294_v49 = vadd.f32 %v3293_v63, %v3292_v47  ;;  %v8785_v42 = vand.u32 4294901760, %v6834_v56  ;;  %v8659_v23 = vand.u32 4294901760, %v7151_v5  ;;  %v8656_v31 = vand.u32 4294901760, %v7156_v14 }
  0xd2   :  { %v3299_v44 = vrot.slane %v3298_v18, 2  ;;  %v3304_v19 = vadd.f32 %v3303_v38, %v6962_v55  ;;  %v8786_v26 = vand.u32 4294901760, %v6840_v13  ;;  %v8658_v17 = vand.u32 4294901760, %v7169_v8  ;;  %4691 = vmatmul.mubr.f32.gmra.mrb[2].mxu1 %v6792_v12 }
  0xd3   :  { %4806 = vmatmul.mubr.f32.gmra.mrb[4].mxu0 %v8785_v42  ;;  %v8657_v63 = vand.u32 4294901760, %v7174_v62  ;;  %v3235_v56 = vrot.slane %v3234_v41, 1  ;;  %v3255_v59 = vrot.slane %v6823_v28, 4  ;;  %v3272_v25 = vadd.f32 %v3271_v27, %v3270_v6  ;;  %4693 = vmatprep.mubr.f32.mxu1 %v6796_v33 }
  0xd4   :  { %5620 = vmatpush3.bf16.msra.mxu0 %v6670_v4  ;;  %4808 = vmatprep.mubr.f32.mxu0 %v8786_v26  ;;  %v7195_v4 = vpack.c.bf16 %v8656_v31, %v8659_v23  ;;  %v3315_v13 = vmul.f32 0.125, %v3224_v3  ;;  %v3241_v55 = vrot.slane %v3240_v9, 1  ;;  %v3278_v47 = vadd.f32 %v3277_v50, %v3276_v2 }
  0xd5   :  { %5622 = vmatprep.subr.bf16.mxu0 %v6672_v20  ;;  %v7202_v6 = vpack.c.bf16 %v8657_v63, %v8658_v17  ;;  %v3316_v29 = vmul.f32 0.125, %v3230_v10  ;;  %v3284_v46 = vadd.f32 %v3283_v37, %v3282_v48  ;;  %v3289_v38 = vrot.slane %v3288_v58, 1 }
  0xd6   :  { %8787 = vst [vmem:[#allocation39_spill] sm:$0xff] %v7195_v4  ;;  %v3295_v27 = vrot.slane %v3294_v49, 1  ;;  %v8789_v42 = vand.u32 4294901760, %v6880_v51  ;;  %v3300_v3 = vadd.f32 %v3299_v44, %v3298_v18  ;;  %v3305_v26 = vrot.slane %v3304_v19, 2  ;;  %4694 = vmatmul.mubr.f32.gmra.mrb[4].mxu1 %v6826_v32 }
  0xd7   :  { %8788 = vst [vmem:[#allocation40_spill] sm:$0xff] %v7202_v6  ;;  %v8790_v2 = vand.u32 4294901760, %v6884_v52  ;;  %v3247_v50 = vrot.slane %v3246_v16, 1  ;;  %v3251_v31 = vrot.slane %v3250_v53, 2  ;;  %v3236_v63 = vadd.f32 %v3235_v56, %v3234_v41  ;;  %4696 = vmatprep.mubr.f32.mxu1 %v6830_v7 }
  0xd8   :  { %4809 = vmatmul.mubr.f32.gmra.mrb[6].mxu0 %v8789_v42  ;;  %v3323_v17 = vmul.f32 0.125, %v3272_v25  ;;  %v3309_v10 = vrot.slane %v7012_v43, 4  ;;  %v3256_v51 = vadd.f32 %v3255_v59, %v6823_v28  ;;  %v3324_v48 = vmul.f32 0.125, %v3278_v47  ;;  %v8793_v59 = vld [vmem:[#allocation21_spill] sm:$0xff] }
  0xd9   :  { %5624 = vmatpush3.bf16.msra.mxu0 %v6672_v20  ;;  %4811 = vmatprep.mubr.f32.mxu0 %v8790_v2  ;;  %v3242_v18 = vadd.f32 %v3241_v55, %v3240_v9  ;;  %v3248_v20 = vadd.f32 %v3247_v50, %v3246_v16  ;;  %v3252_v44 = vadd.f32 %v3251_v31, %v3250_v53  ;;  %v3325_v52 = vmul.f32 0.125, %v3284_v46 }
  0xda   :  { %5626 = vmatprep.subr.bf16.mxu0 %v6674_v21  ;;  %v3290_v37 = vadd.f32 %v3289_v38, %v3288_v58  ;;  %v8791_v41 = vand.u32 4294901760, %v6907_v24  ;;  %v3257_v56 = vrot.slane %v3256_v51, 2  ;;  %v3261_v25 = vrot.slane %v6844_v39, 4  ;;  %4697 = vmatmul.mubr.f32.gmra.mrb[6].mxu1 %v6863_v1  ;;  %v8795_v38 = vld [vmem:[#allocation23_spill] sm:$0xff] }
  0xdb   :  { %v3296_v42 = vadd.f32 %v3295_v27, %v3294_v49  ;;  %v3301_v2 = vrot.slane %v3300_v3, 1  ;;  %v3306_v23 = vadd.f32 %v3305_v26, %v3304_v19  ;;  %v8792_v28 = vand.u32 4294901760, %v6911_v15  ;;  %4699 = vmatprep.mubr.f32.mxu1 %v6867_v45 }
  0xdc   :  { %4812 = vmatmul.mubr.f32.gmra.mrb[8].mxu0 %v8791_v41  ;;  %v3253_v9 = vrot.slane %v3252_v44, 1  ;;  %v3310_v16 = vadd.f32 %v3309_v10, %v7012_v43  ;;  %v3258_v24 = vadd.f32 %v3257_v56, %v3256_v51  ;;  %v3262_v53 = vadd.f32 %v3261_v25, %v6844_v39  ;;  %v8797_v10 = vld [vmem:[#allocation18_spill] sm:$0xff]  ;;  %v8800_v25 = vld [vmem:[#allocation28_spill] sm:$0xff] }
  0xdd   :  { %5628 = vmatpush3.bf16.msra.mxu0 %v6674_v21  ;;  %4814 = vmatprep.mubr.f32.mxu0 %v8792_v28  ;;  %v3317_v58 = vmul.f32 0.125, %v3236_v63  ;;  %v3318_v19 = vmul.f32 0.125, %v3242_v18  ;;  %v3319_v31 = vmul.f32 0.125, %v3248_v20  ;;  %v3371_v21 = vsel %vm3370_vm0, %v3316_v29, %v3315_v13  ;;  %v8798_v13 = vld [vmem:[#allocation13_spill] sm:$0xff] }
  0xde   :  { %5630 = vmatprep.subr.bf16.mxu0 %v6676_v35  ;;  %v3254_v49 = vadd.f32 %v3253_v9, %v3252_v44  ;;  %v3326_v15 = vmul.f32 0.125, %v3290_v37  ;;  %v8794_v55 = vand.u32 4294901760, %v8793_v59  ;;  %v3259_v43 = vrot.slane %v3258_v24, 1  ;;  %4700 = vmatmul.mubr.f32.gmra.mrb[8].mxu1 %v8797_v10  ;;  %v8799_v44 = vld [vmem:[#allocation19_spill] sm:$0xff] }
  0xdf   :  { %v3263_v47 = vrot.slane %v3262_v53, 2  ;;  %v3373_v46 = vsel %vm3372_vm1, %v3317_v58, %v3371_v21  ;;  %v8796_v39 = vand.u32 4294901760, %v8795_v38  ;;  %v3302_v26 = vadd.f32 %v3301_v2, %v3300_v3  ;;  %4702 = vmatprep.mubr.f32.mxu1 %v8799_v44 }
  0xe0   :  { %4815 = vmatmul.mubr.f32.gmra.mrb[10].mxu0 %v8794_v55  ;;  %v3320_v63 = vmul.f32 0.125, %v3254_v49  ;;  %v3375_v27 = vsel %vm3374_vm2, %v3318_v19, %v3373_v46  ;;  %v3307_v50 = vrot.slane %v3306_v23, 1  ;;  %v3260_v29 = vadd.f32 %v3259_v43, %v3258_v24  ;;  %v8802_v24 = vld [vmem:[#allocation29_spill] sm:$0xff]  ;;  %v8806_v55 = vld [vmem:[#allocation22_spill] sm:$0xff] }
  0xe1   :  { %5632 = vmatpush3.bf16.msra.mxu0 %v6676_v35  ;;  %4817 = vmatprep.mubr.f32.mxu0 %v8796_v39  ;;  %v3264_v51 = vadd.f32 %v3263_v47, %v3262_v53  ;;  %v3377_v18 = vsel %vm3376_vm3, %v3319_v31, %v3375_v27  ;;  %v3311_v20 = vrot.slane %v3310_v16, 2  ;;  %v3327_v41 = vmul.f32 0.125, %v3296_v42  ;;  %v8804_v31 = vld [vmem:[#allocation20_spill] sm:$0xff]  ;;  %v8809_v47 = vld [vmem:[#allocation26_spill] sm:$0xff] }
  0xe2   :  { %5634 = vmatprep.subr.bf16.mxu0 %v8798_v13  ;;  %v3379_v35 = vsel %vm3378_vm4, %v3320_v63, %v3377_v18  ;;  %v3308_v37 = vadd.f32 %v3307_v50, %v3306_v23  ;;  %v3328_v56 = vmul.f32 0.125, %v3302_v26  ;;  %v8801_v28 = vand.u32 4294901760, %v8800_v25  ;;  %4703 = vmatmul.mubr.f32.gmra.mrb[10].mxu1 %v8804_v31  ;;  %v8805_v23 = vld [vmem:[#allocation14_spill] sm:$0xff]  ;;  %v8812_v50 = vld [vmem:[#allocation25_spill] sm:$0xff] }
  0xe3   :  { %v3265_v3 = vrot.slane %v3264_v51, 1  ;;  %v3321_v2 = vmul.f32 0.125, %v3260_v29  ;;  %v3312_v9 = vadd.f32 %v3311_v20, %v3310_v16  ;;  %v3384_v58 = vsel %vm3370_vm0, %v3324_v48, %v3323_v17  ;;  %4705 = vmatprep.mubr.f32.mxu1 %v8806_v55  ;;  %v8807_v17 = vld [vmem:[#allocation24_spill] sm:$0xff] }
  0xe4   :  { %4818 = vmatmul.mubr.f32.gmra.mrb[12].mxu0 %v8801_v28  ;;  %v8803_v53 = vand.u32 4294901760, %v8802_v24  ;;  %v3329_v49 = vmul.f32 0.125, %v3308_v37  ;;  %v3385_v19 = vsel %vm3372_vm1, %v3325_v52, %v3384_v58  ;;  %v8808_v48 = vand.u32 4294901760, %v8807_v17 }
  0xe5   :  { %5636 = vmatpush3.bf16.msra.mxu0 %v8798_v13  ;;  %v3266_v42 = vadd.f32 %v3265_v3, %v3264_v51  ;;  %v3381_v21 = vsel %vm3380_vm5, %v3321_v2, %v3379_v35  ;;  %v3313_v59 = vrot.slane %v3312_v9, 1  ;;  %v3386_v16 = vsel %vm3374_vm2, %v3326_v15, %v3385_v19  ;;  %v8813_v13 = vld [vmem:[#allocation5_spill] sm:$0xff]  ;;  %v8818_v3 = vld [vmem:[#allocation30_spill] sm:$0xff] }
  0xe6   :  { %4820 = vmatprep.mubr.f32.mxu0 %v8803_v53  ;;  %5638 = vmatprep.subr.bf16.mxu0 %v8805_v23  ;;  %v7253_v43 = vsub.f32 %v8807_v17, %v8808_v48  ;;  %v8810_v46 = vand.u32 4294901760, %v8809_v47  ;;  %v3387_v38 = vsel %vm3376_vm3, %v3327_v41, %v3386_v16  ;;  %v8811_v39 = vand.u32 4294901760, %v7049_v40  ;;  %v8814_v40 = vld [vmem:[#allocation27_spill] sm:$0xff]  ;;  %v8819_v2 = vld [vmem:[#allocation6_spill] sm:$0xff] }
  0xe7   :  { %v3322_v63 = vmul.f32 0.125, %v3266_v42  ;;  %v3314_v15 = vadd.f32 %v3313_v59, %v3312_v9  ;;  %v3388_v27 = vsel %vm3378_vm4, %v3328_v56, %v3387_v38  ;;  %4706 = vmatmul.mubr.f32.gmra.mrb[12].mxu1 %v8812_v50  ;;  %v8815_v35 = vand.u32 4294901760, %v7038_v57  ;;  %v8816_v41 = vld [vmem:[#allocation31_spill] sm:$0xff]  ;;  %v8825_v48 = vld [vmem:[#allocation34_spill] sm:$0xff] }
  0xe8   :  { %v7258_v52 = vsub.f32 %v8809_v47, %v8810_v46  ;;  %4821 = vmatmul.mubr.f32.gmra.mrb[14].mxu0 %v8811_v39  ;;  %v3389_v26 = vsel %vm3380_vm5, %v3329_v49, %v3388_v27  ;;  %4708 = vmatprep.mubr.f32.mxu1 %v8814_v40  ;;  %v3511_v18 = vand.u32 4294901760, %v7253_v43  ;;  %v8817_v56 = vand.u32 4294901760, %v8816_v41  ;;  %v8821_v49 = vld [vmem:[#allocation33_spill] sm:$0xff]  ;;  %v6337_v38 = vld [vmem:[%s8576_s7] sm:$0xff]  ;;  %v8829_v27 = vld [vmem:[#allocation16_spill] sm:$0xff] }
  0xe9   :  { %5640 = vmatpush3.bf16.msra.mxu0 %v8805_v23  ;;  %4855 = vmatprep.mubr.f32.mxu0 %v6742_v0  ;;  %v7270_v29 = vsel %vm3382_vm6, %v3322_v63, %v3381_v21  ;;  %v3330_v51 = vmul.f32 0.125, %v3314_v15  ;;  %v7278_v37 = vsub.f32 %v7038_v57, %v8815_v35  ;;  %v8820_v24 = vand.u32 4294901760, %v7060_v54  ;;  %v8823_v21 = vld [vmem:[#allocation7_spill] sm:$0xff]  ;;  %v8831_v35 = vld [vmem:[#allocation8_spill] sm:$0xff] }
  0xea   :  { %5642 = vmatprep.subr.bf16.mxu0 %v8813_v13  ;;  %v3518_v20 = vand.u32 4294901760, %v7258_v52  ;;  %v7283_v25 = vsub.f32 %v8816_v41, %v8817_v56  ;;  %v8822_v19 = vand.u32 4294901760, %v8821_v49  ;;  %v8824_v16 = vand.u32 4294901760, %v7083_v61  ;;  %v8827_v39 = vld [vmem:[#allocation15_spill] sm:$0xff] }
  0xeb   :  { %v7287_v28 = vsel %vm3382_vm6, %v3330_v51, %v3389_v26  ;;  %4709 = vmatmul.mubr.f32.gmra.mrb[14].mxu1 %v8818_v3  ;;  %v3525_v9 = vand.u32 4294901760, %v7278_v37  ;;  %v7304_v53 = vsub.f32 %v7060_v54, %v8820_v24  ;;  %v8826_v47 = vand.u32 4294901760, %v8825_v48 }
  0xec   :  { %4856 = vmatmul.mubr.f32.vlgmr.msra.gmra.mrb[0].mxu0 %v6762_v60  ;;  %v7295_v57 = vpack.c.bf16 %v3518_v20, %v3511_v18  ;;  %v3532_v58 = vand.u32 4294901760, %v7283_v25  ;;  %v7309_v23 = vsub.f32 %v8821_v49, %v8822_v19  ;;  %v7326_v17 = vsub.f32 %v7083_v61, %v8824_v16  ;;  %v6338_v61 = vld [vmem:[%s8576_s7 + $0x8] sm:$0xff] }
  0xed   :  { %5644 = vmatpush3.bf16.msra.mxu0 %v8813_v13  ;;  %4858 = vmatprep.mubr.f32.mxu0 %v6769_v22  ;;  %v8665_v54 = vand.u32 4294901760, %v7304_v53  ;;  %v7331_v46 = vsub.f32 %v8825_v48, %v8826_v47  ;;  %v8828_v63 = vand.u32 4294901760, %v8827_v39  ;;  %v8830_v26 = vand.u32 4294901760, %v8829_v27  ;;  %v8834_v48 = vld [vmem:[#allocation9_spill] sm:$0xff] }
  0xee   :  { %5646 = vmatprep.subr.bf16.mxu0 %v8819_v2  ;;  %v7318_v42 = vpack.c.bf16 %v3532_v58, %v3525_v9  ;;  %v8664_v59 = vand.u32 4294901760, %v7309_v23  ;;  %v8663_v41 = vand.u32 4294901760, %v7326_v17  ;;  %v8833_v49 = vand.u32 4294901760, %v7126_v36 }
  0xef   :  { %v7341_v15 = vsub.f32 %v6337_v38, %v8828_v63  ;;  %v7348_v13 = vsub.f32 %v6338_v61, %v8830_v26  ;;  %v8662_v56 = vand.u32 4294901760, %v7331_v46  ;;  %v8835_v38 = vand.u32 4294901760, %v7151_v5 }
  0xf0   :  { %4859 = vmatmul.mubr.f32.gmra.mrb[2].mxu0 %v6792_v12  ;;  %v7354_v51 = vpack.c.bf16 %v8664_v59, %v8665_v54  ;;  %v7367_v19 = vsub.f32 %v7126_v36, %v8833_v49  ;;  %v8836_v63 = vand.u32 4294901760, %v7156_v14  ;;  %v8838_v49 = vand.u32 4294901760, %v7169_v8 }
  0xf1   :  { %5648 = vmatpush3.bf16.msra.mxu0 %v8819_v2  ;;  %4861 = vmatprep.mubr.f32.mxu0 %v6796_v33  ;;  %v8832_v2 = vand.u32 4294901760, %v7121_v30  ;;  %v8660_v16 = vand.u32 4294901760, %v7348_v13  ;;  %v7386_v39 = vsub.f32 %v7151_v5, %v8835_v38  ;;  %v8839_v38 = vand.u32 4294901760, %v7174_v62 }
  0xf2   :  { %5650 = vmatprep.subr.bf16.mxu0 %v8823_v21  ;;  %v3574_v47 = vand.u32 4294901760, %v7367_v19  ;;  %v7391_v61 = vsub.f32 %v7156_v14, %v8836_v63  ;;  %v3533_v54 = vsub.f32 %v7283_v25, %v3532_v58 }
  0xf3   :  { %v7362_v24 = vsub.f32 %v7121_v30, %v8832_v2  ;;  %v7378_v30 = vpack.c.bf16 %v8662_v56, %v8663_v41  ;;  %v3505_v5 = vsub.f32 %v7348_v13, %v8660_v16  ;;  %v3581_v14 = vand.u32 4294901760, %v7386_v39  ;;  %v8841_v41 = vld [vmem:[#allocation11_spill] sm:$0xff] }
  0xf4   :  { %4862 = vmatmul.mubr.f32.gmra.mrb[4].mxu0 %v6826_v32  ;;  %v3588_v2 = vand.u32 4294901760, %v7391_v61  ;;  %v7415_v63 = vsub.f32 %v7174_v62, %v8839_v38  ;;  %v3519_v62 = vsub.f32 %v7258_v52, %v3518_v20  ;;  %v8843_v38 = vld [vmem:[#allocation12_spill] sm:$0xff]  ;;  %v3526_v20 = vsub.f32 %v7278_v37, %v3525_v9 }
  0xf5   :  { %5652 = vmatpush3.bf16.msra.mxu0 %v8823_v21  ;;  %4864 = vmatprep.mubr.f32.mxu0 %v6830_v7  ;;  %v8661_v21 = vand.u32 4294901760, %v7341_v15  ;;  %v3567_v36 = vand.u32 4294901760, %v7362_v24  ;;  %v8845_v9 = vand.u32 4294901760, %v7309_v23 }
  0xf6   :  { %5654 = vmatprep.subr.bf16.mxu0 %v8831_v35  ;;  %v7420_v56 = vpack.c.bf16 %v3588_v2, %v3581_v14  ;;  %v3520_v59 = vand.u32 4294901760, %v3519_v62  ;;  %v3534_v62 = vand.u32 4294901760, %v3533_v54 }
  0xf7   :  { %v3498_v27 = vsub.f32 %v7341_v15, %v8661_v21  ;;  %v7402_v26 = vpack.c.bf16 %v3574_v47, %v3567_v36  ;;  %v3506_v21 = vand.u32 4294901760, %v3505_v5 }
  0xf8   :  { %4865 = vmatmul.mubr.f32.gmra.mrb[6].mxu0 %v6863_v1  ;;  %8840 = vst [vmem:[#allocation21_spill] sm:$0xff] %v7420_v56  ;;  %v8846_v56 = vand.u32 4294901760, %v7326_v17 }
  0xf9   :  { %5656 = vmatpush3.bf16.msra.mxu0 %v8831_v35  ;;  %4867 = vmatprep.mubr.f32.mxu0 %v6867_v45  ;;  %v8837_v35 = vld [vmem:[#allocation10_spill] sm:$0xff]  ;;  %v3499_v16 = vand.u32 4294901760, %v3498_v27 }
  0xfa   :  { %5658 = vmatprep.subr.bf16.mxu0 %v8834_v48 }
  0xfb   :  { %v5897_v27 = vpack.c.bf16 %v3506_v21, %v3499_v16 }
  0xfc   :  { %4868 = vmatmul.mubr.f32.gmra.mrb[8].mxu0 %v8797_v10 }
  0xfd   :  { %5660 = vmatpush3.bf16.msra.mxu0 %v8834_v48  ;;  %4870 = vmatprep.mubr.f32.mxu0 %v8799_v44  ;;  %v7410_v48 = vsub.f32 %v7169_v8, %v8838_v49  ;;  %v3512_v8 = vsub.f32 %v7253_v43, %v3511_v18 }
  0xfe   :  { %5662 = vmatprep.subr.bf16.mxu0 %v8837_v35 }
  0xff   :  { %v3595_v49 = vand.u32 4294901760, %v7410_v48  ;;  %v3513_v18 = vand.u32 4294901760, %v3512_v8  ;;  %v3527_v8 = vand.u32 4294901760, %v3526_v20 }
 0x100   :  { %4871 = vmatmul.mubr.f32.gmra.mrb[10].mxu0 %v8804_v31 }
 0x101   :  { %5664 = vmatpush3.bf16.msra.mxu0 %v8837_v35  ;;  %4873 = vmatprep.mubr.f32.mxu0 %v8806_v55  ;;  %v3602_v35 = vand.u32 4294901760, %v7415_v63  ;;  %v5901_v16 = vpack.c.bf16 %v3520_v59, %v3513_v18  ;;  %v8847_v59 = vand.u32 4294901760, %v7331_v46 }
 0x102   :  { %5666 = vmatprep.subr.bf16.mxu0 %v8841_v41 }
 0x103   :  { %v7434_v5 = vpack.c.bf16 %v3602_v35, %v3595_v49  ;;  %v3561_v54 = vsub.f32 %v7331_v46, %v8847_v59 }
 0x104   :  { %4874 = vmatmul.mubr.f32.gmra.mrb[12].mxu0 %v8812_v50 }
 0x105   :  { %5668 = vmatpush3.bf16.msra.mxu0 %v8841_v41  ;;  %4876 = vmatprep.mubr.f32.mxu0 %v8814_v40  ;;  %8842 = vst [vmem:[#allocation23_spill] sm:$0xff] %v7434_v5  ;;  %v8844_v41 = vand.u32 4294901760, %v7304_v53  ;;  %v3547_v5 = vsub.f32 %v7309_v23, %v8845_v9  ;;  %v3562_v18 = vand.u32 4294901760, %v3561_v54 }
 0x106   :  { %5670 = vmatprep.subr.bf16.mxu0 %v8843_v38 }
 0x107   :  { %v3540_v21 = vsub.f32 %v7304_v53, %v8844_v41  ;;  %v3554_v41 = vsub.f32 %v7326_v17, %v8846_v56 }
 0x108   :  { %4877 = vmatmul.mubr.f32.gmra.mrb[14].mxu0 %v8818_v3 }
 0x109   :  { %5672 = vmatpush3.bf16.msra.mxu0 %v8843_v38  ;;  %4911 = vmatprep.mubr.f32.mxu0 %v6742_v0  ;;  %v3541_v58 = vand.u32 4294901760, %v3540_v21  ;;  %v5905_v0 = vpack.c.bf16 %v3534_v62, %v3527_v8  ;;  %v3548_v38 = vand.u32 4294901760, %v3547_v5  ;;  %v3555_v5 = vand.u32 4294901760, %v3554_v41  ;;  %v8856_v41 = vld [vmem:[#allocation21_spill] sm:$0xff] }
 0x10a   :  { %5898 = vmatprep.subr.bf16.mxu0 %v5897_v27  ;;  %v3582_v21 = vsub.f32 %v7386_v39, %v3581_v14 }
 0x10c   :  { %4912 = vmatmul.mubr.f32.vlgmr.msra.gmra.mrb[0].mxu0 %v6762_v60  ;;  %v3568_v60 = vsub.f32 %v7362_v24, %v3567_v36 }
 0x10d   :  { %5900 = vmatpush3.bf16.msra.mxu0 %v5897_v27  ;;  %4914 = vmatprep.mubr.f32.mxu0 %v6769_v22  ;;  %v3575_v22 = vsub.f32 %v7367_v19, %v3574_v47  ;;  %v5909_v27 = vpack.c.bf16 %v3548_v38, %v3541_v58  ;;  %v3583_v47 = vand.u32 4294901760, %v3582_v21  ;;  %v7580_v38 = vld [vmem:[%s8573_s4 + $0x30] sm:$0xff] }
 0x10e   :  { %5902 = vmatprep.subr.bf16.mxu0 %v5901_v16  ;;  %v3569_v56 = vand.u32 4294901760, %v3568_v60  ;;  %v1753_v54 = vand.u32 4294901760, %v7580_v38 }
 0x10f   :  { %v3576_v20 = vand.u32 4294901760, %v3575_v22  ;;  %v7608_v22 = vld [vmem:[%s8573_s4 + $0x48] sm:$0xff] }
 0x110   :  { %4915 = vmatmul.mubr.f32.gmra.mrb[2].mxu0 %v6792_v12  ;;  %v5913_v12 = vpack.c.bf16 %v3562_v18, %v3555_v5 }
 0x111   :  { %5904 = vmatpush3.bf16.msra.mxu0 %v5901_v16  ;;  %4917 = vmatprep.mubr.f32.mxu0 %v6796_v33  ;;  %v3589_v33 = vsub.f32 %v7391_v61, %v3588_v2  ;;  %v5917_v36 = vpack.c.bf16 %v3576_v20, %v3569_v56  ;;  %v3596_v16 = vsub.f32 %v7410_v48, %v3595_v49  ;;  %v7562_v49 = vld [vmem:[%s8573_s4 + $0x20] sm:$0xff]  ;;  %v1762_v56 = vand.u32 4294901760, %v7608_v22  ;;  %v7625_v20 = vld [vmem:[%s8573_s4 + $0x50] sm:$0xff] }
 0x112   :  { %5906 = vmatprep.subr.bf16.mxu0 %v5905_v0  ;;  %v1747_v9 = vand.u32 4294901760, %v7562_v49  ;;  %v1765_v21 = vand.u32 4294901760, %v7625_v20 }
 0x113   :  { %v3597_v2 = vand.u32 4294901760, %v3596_v16  ;;  %v7652_v16 = vld [vmem:[%s8573_s4 + $0x60] sm:$0xff] }
 0x114   :  { %4918 = vmatmul.mubr.f32.gmra.mrb[4].mxu0 %v6826_v32  ;;  %v3590_v32 = vand.u32 4294901760, %v3589_v33 }
 0x115   :  { %5908 = vmatpush3.bf16.msra.mxu0 %v5905_v0  ;;  %4920 = vmatprep.mubr.f32.mxu0 %v6830_v7  ;;  %v3603_v7 = vsub.f32 %v7415_v63, %v3602_v35  ;;  %v7567_v35 = vld [vmem:[%s8573_s4 + $0x28] sm:$0xff] }
 0x116   :  { %5910 = vmatprep.subr.bf16.mxu0 %v5909_v27  ;;  %v5921_v14 = vpack.c.bf16 %v3590_v32, %v3583_v47  ;;  %v1750_v58 = vand.u32 4294901760, %v7567_v35 }
 0x118   :  { %4921 = vmatmul.mubr.f32.gmra.mrb[6].mxu0 %v6863_v1  ;;  %v3604_v1 = vand.u32 4294901760, %v3603_v7  ;;  %v7596_v59 = vpack.c.bf16 %v1750_v58, %v1747_v9  ;;  %v7657_v7 = vld [vmem:[%s8573_s4 + $0x68] sm:$0xff] }
 0x119   :  { %5912 = vmatpush3.bf16.msra.mxu0 %v5909_v27  ;;  %4923 = vmatprep.mubr.f32.mxu0 %v6867_v45  ;;  %v8857_v27 = vld [vmem:[#allocation23_spill] sm:$0xff] }
 0x11a   :  { %5914 = vmatprep.subr.bf16.mxu0 %v5913_v12  ;;  %v5925_v45 = vpack.c.bf16 %v3604_v1, %v3597_v2  ;;  %v7672_v2 = vld [vmem:[%s8573_s4 + $0x70] sm:$0xff]  ;;  %v7677_v1 = vld [vmem:[%s8573_s4 + $0x78] sm:$0xff] }
 0x11c   :  { %4924 = vmatmul.mubr.f32.gmra.mrb[8].mxu0 %v8797_v10  ;;  %v5929_v10 = vpack.c.bf16 %v7348_v13, %v7341_v15 }
 0x11d   :  { %5916 = vmatpush3.bf16.msra.mxu0 %v5913_v12  ;;  %4926 = vmatprep.mubr.f32.mxu0 %v8799_v44  ;;  %v7481_v44 = vand.u32 4294901760, %v7270_v29  ;;  %v7630_v12 = vld [vmem:[%s8573_s4 + $0x58] sm:$0xff] }
 0x11e   :  { %5918 = vmatprep.subr.bf16.mxu0 %v5917_v36  ;;  %v1768_v33 = vand.u32 4294901760, %v7630_v12 }
 0x120   :  { %4927 = vmatmul.mubr.f32.gmra.mrb[10].mxu0 %v8804_v31  ;;  %v7486_v31 = vand.u32 4294901760, %v7287_v28 }
 0x121   :  { %5920 = vmatpush3.bf16.msra.mxu0 %v5917_v36  ;;  %4929 = vmatprep.mubr.f32.mxu0 %v8806_v55  ;;  %v5933_v55 = vpack.c.bf16 %v7258_v52, %v7253_v43  ;;  %v5945_v43 = vpack.c.bf16 %v7331_v46, %v7326_v17  ;;  %v5949_v52 = vpack.c.bf16 %v7367_v19, %v7362_v24  ;;  %v8851_v17 = vld [vmem:[#allocation32_spill] sm:$0xff]  ;;  %v8852_v46 = vld [vmem:[#allocation35_spill] sm:$0xff]  ;;  %v8854_v24 = vand.u32 4294901760, %v7341_v15 }
 0x122   :  { %5922 = vmatprep.subr.bf16.mxu0 %v5921_v14  ;;  %v8855_v19 = vand.u32 4294901760, %v7348_v13  ;;  %v1711_v15 = vld [vmem:[%s8573_s4] sm:$0xff]  ;;  %v1712_v13 = vld [vmem:[%s8573_s4 + $0x8] sm:$0xff] }
 0x124   :  { %4930 = vmatmul.mubr.f32.gmra.mrb[12].mxu0 %v8812_v50  ;;  %v7492_v50 = vsub.f32 %v7270_v29, %v7481_v44  ;;  %v5953_v29 = vpack.c.bf16 %v7391_v61, %v7386_v39  ;;  %v5993_v39 = vpack.c.bf16 %v8855_v19, %v8854_v24 }
 0x125   :  { %5924 = vmatpush3.bf16.msra.mxu0 %v5921_v14  ;;  %4932 = vmatprep.mubr.f32.mxu0 %v8814_v40  ;;  %v5937_v40 = vpack.c.bf16 %v7283_v25, %v7278_v37  ;;  %v5957_v37 = vpack.c.bf16 %v7415_v63, %v7410_v48  ;;  %v7510_v25 = vsub.f32 %v7287_v28, %v7486_v31  ;;  %v8853_v28 = vld [vmem:[#allocation36_spill] sm:$0xff]  ;;  %v1735_v48 = vand.u32 4294901760, %v1711_v15 }
 0x126   :  { %5926 = vmatprep.subr.bf16.mxu0 %v5925_v45  ;;  %8848 = vst [vmem:[#allocation18_spill] sm:$0xff] %v7492_v50  ;;  %v7667_v14 = vpack.c.bf16 %v1768_v33, %v1765_v21 }
 0x127   :  { %8849 = vst [vmem:[#allocation13_spill] sm:$0xff] %v7510_v25  ;;  %v8668_v61 = vand.u32 4294901760, %v7510_v25  ;;  %v7644_v47 = vsub.f32 %v1711_v15, %v1735_v48 }
 0x128   :  { %4933 = vmatmul.mubr.f32.gmra.mrb[14].mxu0 %v8818_v3  ;;  %v5941_v3 = vpack.c.bf16 %v7309_v23, %v7304_v53  ;;  %v8850_v53 = vld [vmem:[#allocation17_spill] sm:$0xff]  ;;  %v8669_v23 = vand.u32 4294901760, %v7492_v50  ;;  %8860 = vst [vmem:[#allocation29_spill] sm:$0xff] %v7667_v14 }
 0x129   :  { %5928 = vmatpush3.bf16.msra.mxu0 %v5925_v45  ;;  %5338 = vmatprep.mubr.f32.mxu0 %v7481_v44  ;;  %8858 = vst [vmem:[#allocation19_spill] sm:$0xff] %v7644_v47  ;;  %v1771_v45 = vand.u32 4294901760, %v7652_v16 }
 0x12a   :  { %5930 = vmatprep.subr.bf16.mxu0 %v5929_v10 }
 0x12c   :  { %5339 = vmatmul.mubr.f32.vlgmr.msra.gmra.mrb[16].mxu0 %v7486_v31 }
 0x12d   :  { %5932 = vmatpush3.bf16.msra.mxu0 %v5929_v10  ;;  %5373 = vmatprep.mubr.f32.mxu0 %v7492_v50  ;;  %v1774_v10 = vand.u32 4294901760, %v7657_v7  ;;  %v4103_v50 = vld [vmem:[%s8572_s3] ss:$0 sm:$0xff] }
 0x12e   :  { %5934 = vmatprep.subr.bf16.mxu0 %v5933_v55 }
 0x12f   :  { %v7700_v24 = vpack.c.bf16 %v1774_v10, %v1771_v45 }
 0x131   :  { %5936 = vmatpush3.bf16.msra.mxu0 %v5933_v55  ;;  %8863 = vst [vmem:[#allocation22_spill] sm:$0xff] %v7700_v24 }
 0x132   :  { %5938 = vmatprep.subr.bf16.mxu0 %v5937_v40 }
 0x135   :  { %5940 = vmatpush3.bf16.msra.mxu0 %v5937_v40 }
 0x136   :  { %5942 = vmatprep.subr.bf16.mxu0 %v5941_v3 }
 0x139   :  { %5944 = vmatpush3.bf16.msra.mxu0 %v5941_v3 }
 0x13a   :  { %5946 = vmatprep.subr.bf16.mxu0 %v5945_v43 }
 0x13d   :  { %5948 = vmatpush3.bf16.msra.mxu0 %v5945_v43  ;;  %v1777_v43 = vand.u32 4294901760, %v7672_v2 }
 0x13e   :  { %5950 = vmatprep.subr.bf16.mxu0 %v5949_v52 }
 0x141   :  { %5952 = vmatpush3.bf16.msra.mxu0 %v5949_v52  ;;  %v1780_v52 = vand.u32 4294901760, %v7677_v1 }
 0x142   :  { %5954 = vmatprep.subr.bf16.mxu0 %v5953_v29 }
 0x145   :  { %5956 = vmatpush3.bf16.msra.mxu0 %v5953_v29 }
 0x146   :  { %5958 = vmatprep.subr.bf16.mxu0 %v5957_v37 }
 0x149   :  { %5960 = vmatpush3.bf16.msra.mxu0 %v5957_v37 }
 0x14a   :  { %5962 = vmatprep.subr.bf16.mxu0 %v8850_v53 }
 0x14c   :  { %5374 = vmatmul.mubr.f32.vlgmr.msra.gmra.mrb[16].mxu0 %v7510_v25 }
 0x14d   :  { %5964 = vmatpush3.bf16.msra.mxu0 %v8850_v53  ;;  %5408 = vmatprep.mubr.f32.mxu0 %v8669_v23 }
 0x14e   :  { %5966 = vmatprep.subr.bf16.mxu0 %v8851_v17 }
 0x151   :  { %5968 = vmatpush3.bf16.msra.mxu0 %v8851_v17 }
 0x152   :  { %5970 = vmatprep.subr.bf16.mxu0 %v8852_v46 }
 0x155   :  { %5972 = vmatpush3.bf16.msra.mxu0 %v8852_v46 }
 0x156   :  { %5974 = vmatprep.subr.bf16.mxu0 %v8853_v28 }
 0x159   :  { %5976 = vmatpush3.bf16.msra.mxu0 %v8853_v28 }
 0x15a   :  { %5978 = vmatprep.subr.bf16.mxu0 %v7133_v11 }
 0x15d   :  { %5980 = vmatpush3.bf16.msra.mxu0 %v7133_v11 }
 0x15e   :  { %5982 = vmatprep.subr.bf16.mxu0 %v7164_v34 }
 0x161   :  { %5984 = vmatpush3.bf16.msra.mxu0 %v7164_v34 }
 0x162   :  { %5986 = vmatprep.subr.bf16.mxu0 %v7195_v4 }
 0x165   :  { %5988 = vmatpush3.bf16.msra.mxu0 %v7195_v4 }
 0x166   :  { %5990 = vmatprep.subr.bf16.mxu0 %v7202_v6 }
 0x169   :  { %5992 = vmatpush3.bf16.msra.mxu0 %v7202_v6 }
 0x16a   :  { %5994 = vmatprep.subr.bf16.mxu0 %v5993_v39 }
 0x16c   :  { %5409 = vmatmul.mubr.f32.vlgmr.msra.gmra.mrb[16].mxu0 %v8668_v61 }
 0x16d   :  { %5996 = vmatpush3.bf16.msra.mxu0 %v5993_v39  ;;  %5443 = vmatprep.mubr.f32.mxu0 %v7481_v44 }
 0x16e   :  { %5998 = vmatprep.subr.bf16.mxu0 %v7295_v57 }
 0x171   :  { %6000 = vmatpush3.bf16.msra.mxu0 %v7295_v57  ;;  %v1713_v57 = vld [vmem:[%s8573_s4 + $0x10] sm:$0xff] }
 0x172   :  { %6002 = vmatprep.subr.bf16.mxu0 %v7318_v42  ;;  %v1741_v63 = vand.u32 4294901760, %v1713_v57 }
 0x174   :  { %v7684_v40 = vsub.f32 %v1713_v57, %v1741_v63  ;;  %v7717_v57 = vsub.f32 %v7562_v49, %v1747_v9 }
 0x175   :  { %6004 = vmatpush3.bf16.msra.mxu0 %v7318_v42  ;;  %v1738_v42 = vand.u32 4294901760, %v1712_v13 }
 0x176   :  { %6006 = vmatprep.subr.bf16.mxu0 %v7354_v51  ;;  %8861 = vst [vmem:[#allocation20_spill] sm:$0xff] %v7684_v40  ;;  %v8683_v29 = vand.u32 4294901760, %v7684_v40  ;;  %8864 = vst [vmem:[#allocation24_spill] sm:$0xff] %v7717_v57  ;;  %v8681_v49 = vand.u32 4294901760, %v7717_v57 }
 0x177   :  { %v7571_v62 = vpack.c.bf16 %v1738_v42, %v1735_v48  ;;  %v7646_v32 = vsub.f32 %v1712_v13, %v1738_v42  ;;  %v7722_v48 = vsub.f32 %v7567_v35, %v1750_v58  ;;  %v7729_v42 = vpack.c.bf16 %v1780_v52, %v1777_v43 }
 0x178   :  { %v1993_v15 = vsub.f32 %v7684_v40, %v8683_v29  ;;  %v7739_v58 = vsub.f32 %v7580_v38, %v1753_v54 }
 0x179   :  { %6008 = vmatpush3.bf16.msra.mxu0 %v7354_v51  ;;  %v1714_v51 = vld [vmem:[%s8573_s4 + $0x18] sm:$0xff]  ;;  %5674 = vmatprep.subr.bf16.mxu1 %v7571_v62  ;;  %8859 = vst [vmem:[#allocation28_spill] sm:$0xff] %v7646_v32  ;;  %v8684_v55 = vand.u32 4294901760, %v7646_v32  ;;  %8865 = vst [vmem:[#allocation26_spill] sm:$0xff] %v7722_v48 }
 0x17a   :  { %6010 = vmatprep.subr.bf16.mxu0 %v7378_v30  ;;  %v1744_v8 = vand.u32 4294901760, %v1714_v51  ;;  %5676 = vmatpush3.bf16.msra.mxu1 %v7571_v62  ;;  %8866 = vst [vmem:[#allocation25_spill] sm:$0xff] %v7729_v42  ;;  %8867 = vst [vmem:[#allocation5_spill] sm:$0xff] %v7739_v58  ;;  %v8677_v38 = vand.u32 4294901760, %v7739_v58 }
 0x17b   :  { %v1986_v39 = vsub.f32 %v7646_v32, %v8684_v55 }
 0x17c   :  { %v7575_v0 = vpack.c.bf16 %v1744_v8, %v1741_v63  ;;  %v7686_v3 = vsub.f32 %v1714_v51, %v1744_v8  ;;  %v1994_v51 = vand.u32 4294901760, %v1993_v15  ;;  %v8679_v8 = vand.u32 4294901760, %v7722_v48 }
 0x17d   :  { %6012 = vmatpush3.bf16.msra.mxu0 %v7378_v30  ;;  %v7585_v30 = vld [vmem:[%s8573_s4 + $0x38] sm:$0xff]  ;;  %v1987_v9 = vand.u32 4294901760, %v1986_v39  ;;  %v2007_v15 = vsub.f32 %v7717_v57, %v8681_v49  ;;  %v7872_v49 = vpack.c.bf16 %v7722_v48, %v7717_v57 }
 0x17e   :  { %6014 = vmatprep.subr.bf16.mxu0 %v7402_v26  ;;  %5678 = vmatprep.subr.bf16.mxu1 %v7575_v0  ;;  %v1756_v60 = vand.u32 4294901760, %v7585_v30  ;;  %8862 = vst [vmem:[#allocation14_spill] sm:$0xff] %v7686_v3  ;;  %v8682_v37 = vand.u32 4294901760, %v7686_v3 }
 0x17f   :  { %5680 = vmatpush3.bf16.msra.mxu1 %v7575_v0 }
 0x180   :  { %5682 = vmatprep.subr.bf16.mxu1 %v7596_v59  ;;  %v7618_v5 = vpack.c.bf16 %v1756_v60, %v1753_v54  ;;  %v2000_v13 = vsub.f32 %v7686_v3, %v8682_v37 }
 0x181   :  { %6016 = vmatpush3.bf16.msra.mxu0 %v7402_v26  ;;  %v7603_v26 = vld [vmem:[%s8573_s4 + $0x40] sm:$0xff] }
 0x182   :  { %6018 = vmatprep.subr.bf16.mxu0 %v8856_v41  ;;  %v1759_v18 = vand.u32 4294901760, %v7603_v26  ;;  %v2001_v63 = vand.u32 4294901760, %v2000_v13  ;;  %v7767_v13 = vsub.f32 %v7608_v22, %v1762_v56 }
 0x183   :  { %5684 = vmatpush3.bf16.msra.mxu1 %v7596_v59 }
 0x184   :  { %5686 = vmatprep.subr.bf16.mxu1 %v7618_v5  ;;  %v7642_v36 = vpack.c.bf16 %v1762_v56, %v1759_v18  ;;  %v7762_v39 = vsub.f32 %v7603_v26, %v1759_v18  ;;  %8870 = vst [vmem:[#allocation30_spill] sm:$0xff] %v7767_v13  ;;  %v8670_v18 = vand.u32 4294901760, %v7767_v13 }
 0x185   :  { %6020 = vmatpush3.bf16.msra.mxu0 %v8856_v41  ;;  %v7744_v41 = vsub.f32 %v7585_v30, %v1756_v60  ;;  %v2008_v30 = vand.u32 4294901760, %v2007_v15 }
 0x186   :  { %6022 = vmatprep.subr.bf16.mxu0 %v8857_v27  ;;  %8869 = vst [vmem:[#allocation31_spill] sm:$0xff] %v7762_v39  ;;  %v8675_v26 = vand.u32 4294901760, %v7762_v39 }
 0x187   :  { %5688 = vmatpush3.bf16.msra.mxu1 %v7618_v5  ;;  %8868 = vst [vmem:[#allocation27_spill] sm:$0xff] %v7744_v41  ;;  %v8676_v54 = vand.u32 4294901760, %v7744_v41 }
 0x188   :  { %5690 = vmatprep.subr.bf16.mxu1 %v7642_v36 }
 0x189   :  { %6024 = vmatpush3.bf16.msra.mxu0 %v8857_v27  ;;  %v7746_v27 = vpack.c.bf16 %v2001_v63, %v1994_v51  ;;  %v2021_v63 = vsub.f32 %v7739_v58, %v8677_v38  ;;  %v2028_v15 = vsub.f32 %v7744_v41, %v8676_v54 }
 0x18a   :  { %6026 = vmatprep.subr.bf16.mxu0 %v8850_v53 }
 0x18b   :  { %5692 = vmatpush3.bf16.msra.mxu1 %v7642_v36  ;;  %v2022_v22 = vand.u32 4294901760, %v2021_v63  ;;  %v2029_v56 = vand.u32 4294901760, %v2028_v15  ;;  %v7802_v63 = vsub.f32 %v7630_v12, %v1768_v33  ;;  %v7824_v33 = vsub.f32 %v7657_v7, %v1774_v10 }
 0x18c   :  { %5444 = vmatmul.mubr.f32.vlgmr.msra.gmra.mrb[16].mxu0 %v7486_v31  ;;  %5694 = vmatprep.subr.bf16.mxu1 %v7667_v14  ;;  %v7838_v7 = vsub.f32 %v7677_v1, %v1780_v52 }
 0x18d   :  { %6028 = vmatpush3.bf16.msra.mxu0 %v8850_v53  ;;  %5478 = vmatprep.mubr.f32.mxu0 %v7481_v44  ;;  %v8685_v44 = vand.u32 4294901760, %v7644_v47  ;;  %8872 = vst [vmem:[#allocation33_spill] sm:$0xff] %v7802_v63  ;;  %8874 = vst [vmem:[#allocation34_spill] sm:$0xff] %v7824_v33 }
 0x18e   :  { %6030 = vmatprep.subr.bf16.mxu0 %v8851_v17  ;;  %8876 = vst [vmem:[#allocation16_spill] sm:$0xff] %v7838_v7 }
 0x18f   :  { %v1979_v19 = vsub.f32 %v7644_v47, %v8685_v44  ;;  %5696 = vmatpush3.bf16.msra.mxu1 %v7667_v14 }
 0x190   :  { %5698 = vmatprep.subr.bf16.mxu1 %v7700_v24 }
 0x191   :  { %6032 = vmatpush3.bf16.msra.mxu0 %v8851_v17  ;;  %v1980_v35 = vand.u32 4294901760, %v1979_v19  ;;  %v2014_v19 = vsub.f32 %v7722_v48, %v8679_v8 }
 0x192   :  { %6034 = vmatprep.subr.bf16.mxu0 %v8852_v46 }
 0x193   :  { %5700 = vmatpush3.bf16.msra.mxu1 %v7700_v24  ;;  %v2015_v60 = vand.u32 4294901760, %v2014_v19  ;;  %v7770_v51 = vpack.c.bf16 %v1987_v9, %v1980_v35  ;;  %v2035_v35 = vsub.f32 %v7762_v39, %v8675_v26  ;;  %v2042_v9 = vsub.f32 %v7767_v13, %v8670_v18 }
 0x194   :  { %5702 = vmatprep.subr.bf16.mxu1 %v7729_v42  ;;  %v8671_v18 = vand.u32 4294901760, %v7802_v63 }
 0x195   :  { %6036 = vmatpush3.bf16.msra.mxu0 %v8852_v46  ;;  %v7778_v19 = vpack.c.bf16 %v2015_v60, %v2008_v30  ;;  %v7792_v30 = vpack.c.bf16 %v2029_v56, %v2022_v22  ;;  %v7797_v60 = vsub.f32 %v7625_v20, %v1765_v21  ;;  %v2036_v15 = vand.u32 4294901760, %v2035_v35 }
 0x196   :  { %6038 = vmatprep.subr.bf16.mxu0 %v8853_v28  ;;  %v2043_v61 = vand.u32 4294901760, %v2042_v9  ;;  %v2056_v12 = vsub.f32 %v7802_v63, %v8671_v18  ;;  %v7819_v21 = vsub.f32 %v7652_v16, %v1771_v45  ;;  %v7833_v16 = vsub.f32 %v7672_v2, %v1777_v43 }
 0x197   :  { %5704 = vmatpush3.bf16.msra.mxu1 %v7729_v42  ;;  %8871 = vst [vmem:[#allocation6_spill] sm:$0xff] %v7797_v60  ;;  %v8672_v23 = vand.u32 4294901760, %v7797_v60  ;;  %v8680_v2 = vand.u32 4294901760, %v7838_v7  ;;  %v7884_v29 = vpack.c.bf16 %v7802_v63, %v7797_v60 }
 0x198   :  { %5706 = vmatprep.subr.bf16.mxu1 %v7770_v51  ;;  %v7808_v22 = vpack.c.bf16 %v2043_v61, %v2036_v15  ;;  %8873 = vst [vmem:[#allocation7_spill] sm:$0xff] %v7819_v21  ;;  %v2057_v35 = vand.u32 4294901760, %v2056_v12  ;;  %v8674_v9 = vand.u32 4294901760, %v7819_v21  ;;  %v8673_v15 = vand.u32 4294901760, %v7824_v33  ;;  %8875 = vst [vmem:[#allocation15_spill] sm:$0xff] %v7833_v16 }
 0x199   :  { %6040 = vmatpush3.bf16.msra.mxu0 %v8853_v28  ;;  %v2049_v20 = vsub.f32 %v7797_v60, %v8672_v23  ;;  %v8678_v12 = vand.u32 4294901760, %v7833_v16  ;;  %v7892_v25 = vpack.c.bf16 %v7838_v7, %v7833_v16 }
 0x19a   :  { %6042 = vmatprep.subr.bf16.mxu0 %v7133_v11  ;;  %v2063_v10 = vsub.f32 %v7819_v21, %v8674_v9 }
 0x19b   :  { %v2050_v56 = vand.u32 4294901760, %v2049_v20  ;;  %v2070_v20 = vsub.f32 %v7824_v33, %v8673_v15  ;;  %v7859_v15 = vpack.c.bf16 %v7646_v32, %v7644_v47 }
 0x19c   :  { %v2064_v23 = vand.u32 4294901760, %v2063_v10 }
 0x19d   :  { %6044 = vmatpush3.bf16.msra.mxu0 %v7133_v11  ;;  %v7840_v45 = vpack.c.bf16 %v2057_v35, %v2050_v56  ;;  %v2071_v1 = vand.u32 4294901760, %v2070_v20  ;;  %v2077_v56 = vsub.f32 %v7833_v16, %v8678_v12  ;;  %v2084_v35 = vsub.f32 %v7838_v7, %v8680_v2 }
 0x19e   :  { %6046 = vmatprep.subr.bf16.mxu0 %v7164_v34  ;;  %v7868_v12 = vpack.c.bf16 %v7686_v3, %v7684_v40 }
 0x19f   :  { %v7861_v9 = vpack.c.bf16 %v2071_v1, %v2064_v23  ;;  %v2078_v26 = vand.u32 4294901760, %v2077_v56  ;;  %v2085_v10 = vand.u32 4294901760, %v2084_v35 }
 0x1a1   :  { %6048 = vmatpush3.bf16.msra.mxu0 %v7164_v34  ;;  %v4689_v61 = vpop.f32.mrb[0].mxu1  ;;  %v7864_v38 = vpack.c.bf16 %v2085_v10, %v2078_v26  ;;  %v7880_v26 = vpack.c.bf16 %v7767_v13, %v7762_v39 }
 0x1a2   :  { %6050 = vmatprep.subr.bf16.mxu0 %v7195_v4  ;;  %v669_v18 = vpop.f32.mrb[1].mxu1 }
 0x1a3   :  { %v6059_v34 = vadd.f32 %v4103_v50, %v669_v18 }
 0x1a5   :  { %6052 = vmatpush3.bf16.msra.mxu0 %v7195_v4  ;;  %v4692_v43 = vpop.f32.mrb[2].mxu1  ;;  %v6057_v4 = vadd.f32 %v4689_v61, %v4103_v50 }
 0x1a6   :  { %6054 = vmatprep.subr.bf16.mxu0 %v7202_v6  ;;  %v681_v52 = vpop.f32.mrb[3].mxu1  ;;  %v6061_v17 = vadd.f32 %v4692_v43, %v4103_v50 }
 0x1a7   :  { %v6063_v53 = vadd.f32 %v4103_v50, %v681_v52 }
 0x1a9   :  { %6056 = vmatpush3.bf16.msra.mxu0 %v7202_v6  ;;  %v4695_v20 = vpop.f32.mrb[4].mxu1  ;;  %v7888_v6 = vpack.c.bf16 %v7824_v33, %v7819_v21 }
 0x1aa   :  { %v693_v54 = vpop.f32.mrb[5].mxu1  ;;  %v6065_v60 = vadd.f32 %v4695_v20, %v4103_v50 }
 0x1ab   :  { %v6067_v13 = vadd.f32 %v4103_v50, %v693_v54 }
 0x1ac   :  { %5479 = vmatmul.mubr.f32.vlgmr.msra.gmra.mrb[16].mxu0 %v7486_v31  ;;  %v7876_v31 = vpack.c.bf16 %v7744_v41, %v7739_v58 }
 0x1ad   :  { %v4698_v8 = vpop.f32.mrb[6].mxu1 }
 0x1ae   :  { %v705_v2 = vpop.f32.mrb[7].mxu1  ;;  %v6069_v33 = vadd.f32 %v4698_v8, %v4103_v50 }
 0x1af   :  { %v6071_v39 = vadd.f32 %v4103_v50, %v705_v2 }
 0x1b1   :  { %v4701_v23 = vpop.f32.mrb[8].mxu1 }
 0x1b2   :  { %v717_v1 = vpop.f32.mrb[9].mxu1  ;;  %v6073_v41 = vadd.f32 %v4701_v23, %v4103_v50 }
 0x1b3   :  { %v7897_v7 = vadd.f32 %v4103_v50, %v717_v1 }
 0x1b5   :  { %v4704_v56 = vpop.f32.mrb[10].mxu1 }
 0x1b6   :  { %v729_v35 = vpop.f32.mrb[11].mxu1  ;;  %v7899_v48 = vadd.f32 %v4704_v56, %v4103_v50 }
 0x1b7   :  { %v7901_v61 = vadd.f32 %v4103_v50, %v729_v35 }
 0x1ba   :  { %v4707_v10 = vpop.f32.mrb[12].mxu1 }
 0x1bb   :  { %v741_v37 = vpop.f32.mrb[13].mxu1  ;;  %v7903_v43 = vadd.f32 %v4707_v10, %v4103_v50 }
 0x1be   :  { %v4710_v55 = vpop.f32.mrb[14].mxu1 }
 0x1bf   :  { %v753_v44 = vpop.f32.mrb[15].mxu1  ;;  %v7907_v54 = vadd.f32 %v4710_v55, %v4103_v50 }
 0x1c0   :  { %v7909_v2 = vadd.f32 %v4103_v50, %v753_v44 }
 0x1df   :  { %v4913_v11 = vpop.f32.mrb[0].mxu0 }
 0x1e0   :  { %v6058_v28 = vadd.f32 %v6057_v4, %v4913_v11  ;;  %v1473_v46 = vpop.f32.mrb[1].mxu0 }
 0x1e1   :  { %v6060_v63 = vadd.f32 %v6059_v34, %v1473_v46  ;;  %v7905_v34 = vadd.f32 %v4103_v50, %v741_v37 }
 0x1e2   :  { %v1584_v21 = vmul.f32 0.044715, %v6058_v28  ;;  %v7911_v23 = vmul.f32 0.5, %v6058_v28 }
 0x1e3   :  { %v1583_v16 = vmul.f32 0.044715, %v6060_v63  ;;  %v4916_v58 = vpop.f32.mrb[2].mxu0 }
 0x1e4   :  { %v1600_v18 = vmul.f32 %v6058_v28, %v1584_v21  ;;  %v6062_v11 = vadd.f32 %v6061_v17, %v4916_v58  ;;  %v1485_v4 = vpop.f32.mrb[3].mxu0  ;;  %v7913_v21 = vmul.f32 0.5, %v6060_v63 }
 0x1e5   :  { %v1599_v46 = vmul.f32 %v6060_v63, %v1583_v16  ;;  %v6064_v8 = vadd.f32 %v6063_v53, %v1485_v4 }
 0x1e6   :  { %v1616_v52 = vmul.f32 %v6058_v28, %v1600_v18  ;;  %v1586_v20 = vmul.f32 0.044715, %v6062_v11  ;;  %v7915_v57 = vmul.f32 0.5, %v6062_v11 }
 0x1e7   :  { %v1615_v1 = vmul.f32 %v6060_v63, %v1599_v46  ;;  %v1585_v56 = vmul.f32 0.044715, %v6064_v8  ;;  %v4919_v35 = vpop.f32.mrb[4].mxu0  ;;  %v7917_v50 = vmul.f32 0.5, %v6064_v8 }
 0x1e8   :  { %v1632_v17 = vadd.f32 %v6058_v28, %v1616_v52  ;;  %v1602_v58 = vmul.f32 %v6062_v11, %v1586_v20  ;;  %v6066_v10 = vadd.f32 %v6065_v60, %v4919_v35  ;;  %v1497_v37 = vpop.f32.mrb[5].mxu0 }
 0x1e9   :  { %v1631_v53 = vadd.f32 %v6060_v63, %v1615_v1  ;;  %v1601_v55 = vmul.f32 %v6064_v8, %v1585_v56  ;;  %v6068_v16 = vadd.f32 %v6067_v13, %v1497_v37 }
 0x1ea   :  { %v1648_v44 = vmul.f32 0.7978846, %v1632_v17  ;;  %v1618_v18 = vmul.f32 %v6062_v11, %v1602_v58  ;;  %v1588_v4 = vmul.f32 0.044715, %v6066_v10  ;;  %v7919_v3 = vmul.f32 0.5, %v6066_v10 }
 0x1eb   :  { %v1647_v46 = vmul.f32 0.7978846, %v1631_v53  ;;  %v1617_v40 = vmul.f32 %v6064_v8, %v1601_v55  ;;  %v1587_v32 = vmul.f32 0.044715, %v6068_v16  ;;  %v4922_v47 = vpop.f32.mrb[6].mxu0  ;;  %v7921_v28 = vmul.f32 0.5, %v6068_v16 }
 0x1ec   :  { %6305 = vtanh.f32 %v1648_v44  ;;  %v1634_v60 = vadd.f32 %v6062_v11, %v1618_v18  ;;  %v1604_v52 = vmul.f32 %v6066_v10, %v1588_v4  ;;  %v6070_v20 = vadd.f32 %v6069_v33, %v4922_v47  ;;  %v1509_v63 = vpop.f32.mrb[7].mxu0 }
 0x1ed   :  { %6307 = vtanh.f32 %v1647_v46  ;;  %v1633_v13 = vadd.f32 %v6064_v8, %v1617_v40  ;;  %v1603_v1 = vmul.f32 %v6068_v16, %v1587_v32  ;;  %v6072_v56 = vadd.f32 %v6071_v39, %v1509_v63 }
 0x1ee   :  { %v1650_v35 = vmul.f32 0.7978846, %v1634_v60  ;;  %v1620_v17 = vmul.f32 %v6066_v10, %v1604_v52  ;;  %v1590_v58 = vmul.f32 0.044715, %v6070_v20  ;;  %v7923_v37 = vmul.f32 0.5, %v6070_v20 }
 0x1ef   :  { %v1649_v53 = vmul.f32 0.7978846, %v1633_v13  ;;  %v1619_v55 = vmul.f32 %v6068_v16, %v1603_v1  ;;  %v1589_v42 = vmul.f32 0.044715, %v6072_v56  ;;  %v4925_v24 = vpop.f32.mrb[8].mxu0  ;;  %v7925_v14 = vmul.f32 0.5, %v6072_v56 }
 0x1f0   :  { %6309 = vtanh.f32 %v1650_v35  ;;  %v1636_v11 = vadd.f32 %v6066_v10, %v1620_v17  ;;  %v1606_v44 = vmul.f32 %v6070_v20, %v1590_v58  ;;  %v6074_v47 = vadd.f32 %v6073_v41, %v4925_v24  ;;  %v1521_v33 = vpop.f32.mrb[9].mxu0 }
 0x1f1   :  { %6311 = vtanh.f32 %v1649_v53  ;;  %v1635_v40 = vadd.f32 %v6068_v16, %v1619_v55  ;;  %v1605_v32 = vmul.f32 %v6072_v56, %v1589_v42  ;;  %v6076_v39 = vadd.f32 %v7897_v7, %v1521_v33 }
 0x1f2   :  { %v1652_v8 = vmul.f32 0.7978846, %v1636_v11  ;;  %v1622_v18 = vmul.f32 %v6070_v20, %v1606_v44  ;;  %v1592_v4 = vmul.f32 0.044715, %v6074_v47  ;;  %v7928_v46 = vmul.f32 0.5, %v6074_v47 }
 0x1f3   :  { %v1651_v60 = vmul.f32 0.7978846, %v1635_v40  ;;  %v1621_v52 = vmul.f32 %v6072_v56, %v1605_v32  ;;  %v1591_v63 = vmul.f32 0.044715, %v6076_v39  ;;  %v4928_v13 = vpop.f32.mrb[10].mxu0  ;;  %v7930_v1 = vmul.f32 0.5, %v6076_v39 }
 0x1f4   :  { %6313 = vtanh.f32 %v1652_v8  ;;  %v1638_v10 = vadd.f32 %v6070_v20, %v1622_v18  ;;  %v1608_v24 = vmul.f32 %v6074_v47, %v1592_v4  ;;  %v6078_v41 = vadd.f32 %v7899_v48, %v4928_v13  ;;  %v1533_v16 = vpop.f32.mrb[11].mxu0 }
 0x1f5   :  { %6315 = vtanh.f32 %v1651_v60  ;;  %v1637_v42 = vadd.f32 %v6072_v56, %v1621_v52  ;;  %v1607_v7 = vmul.f32 %v6076_v39, %v1591_v63  ;;  %v7934_v35 = vadd.f32 %v7901_v61, %v1533_v16 }
 0x1f6   :  { %v6306_v17 = vpop.eup %6305  ;;  %v1654_v58 = vmul.f32 0.7978846, %v1638_v10  ;;  %v1624_v53 = vmul.f32 %v6074_v47, %v1608_v24  ;;  %v1594_v55 = vmul.f32 0.044715, %v6078_v41  ;;  %v7936_v11 = vmul.f32 0.5, %v6078_v41 }
 0x1f7   :  { %v6308_v44 = vpop.eup %6307  ;;  %v1680_v33 = vadd.f32 1.0, %v6306_v17  ;;  %v1653_v40 = vmul.f32 0.7978846, %v1637_v42  ;;  %v1623_v20 = vmul.f32 %v6076_v39, %v1607_v7  ;;  %v1593_v32 = vmul.f32 0.044715, %v7934_v35  ;;  %v4931_v48 = vpop.f32.mrb[12].mxu0 }
 0x1f8   :  { %6317 = vtanh.f32 %v1654_v58  ;;  %v1640_v8 = vadd.f32 %v6074_v47, %v1624_v53  ;;  %v1610_v56 = vmul.f32 %v6078_v41, %v1594_v55  ;;  %v7940_v18 = vadd.f32 %v7903_v43, %v4931_v48  ;;  %v1545_v61 = vpop.f32.mrb[13].mxu0 }
 0x1f9   :  { %v1696_v4 = vmul.f32 %v1680_v33, %v7911_v23  ;;  %6319 = vtanh.f32 %v1653_v40  ;;  %v1639_v60 = vadd.f32 %v6076_v39, %v1623_v20  ;;  %v1609_v52 = vmul.f32 %v7934_v35, %v1593_v32 }
 0x1fa   :  { %v6310_v63 = vpop.eup %6309  ;;  %v1656_v13 = vmul.f32 0.7978846, %v1640_v8  ;;  %v1626_v10 = vmul.f32 %v6078_v41, %v1610_v56  ;;  %v1596_v24 = vmul.f32 0.044715, %v7940_v18  ;;  %v7946_v16 = vadd.f32 %v7905_v34, %v1545_v61 }
 0x1fb   :  { %v6312_v47 = vpop.eup %6311  ;;  %v7948_v42 = vand.u32 4294901760, %v1696_v4  ;;  %v1655_v43 = vmul.f32 0.7978846, %v1639_v60  ;;  %v1625_v7 = vmul.f32 %v7934_v35, %v1609_v52  ;;  %v4934_v17 = vpop.f32.mrb[14].mxu0  ;;  %v1679_v23 = vadd.f32 1.0, %v6308_v44 }
 0x1fc   :  { %6321 = vtanh.f32 %v1656_v13  ;;  %v1642_v39 = vadd.f32 %v6078_v41, %v1626_v10  ;;  %v1612_v58 = vmul.f32 %v7940_v18, %v1596_v24  ;;  %v1595_v53 = vmul.f32 0.044715, %v7946_v16  ;;  %v1557_v55 = vpop.f32.mrb[15].mxu0 }
 0x1fd   :  { %6323 = vtanh.f32 %v1655_v43  ;;  %v1641_v33 = vadd.f32 %v7934_v35, %v1625_v7  ;;  %v7955_v34 = vadd.f32 %v7907_v54, %v4934_v17  ;;  %v7958_v40 = vadd.f32 %v7909_v2, %v1557_v55 }
 0x1fe   :  { %v6314_v20 = vpop.eup %6313  ;;  %v1658_v32 = vmul.f32 0.7978846, %v1642_v39  ;;  %v1628_v44 = vmul.f32 %v7940_v18, %v1612_v58  ;;  %v1611_v41 = vmul.f32 %v7946_v16, %v1595_v53  ;;  %v1695_v48 = vmul.f32 %v1679_v23, %v7913_v21 }
 0x1ff   :  { %v6316_v8 = vpop.eup %6315  ;;  %v1657_v56 = vmul.f32 0.7978846, %v1641_v33  ;;  %v1598_v61 = vmul.f32 0.044715, %v7955_v34  ;;  %v1597_v60 = vmul.f32 0.044715, %v7958_v40  ;;  %v7966_v54 = vsub.f32 %v1696_v4, %v7948_v42 }
 0x200   :  { %6325 = vtanh.f32 %v1658_v32  ;;  %v1644_v2 = vadd.f32 %v7940_v18, %v1628_v44  ;;  %v1627_v52 = vmul.f32 %v7946_v16, %v1611_v41  ;;  %v7970_v13 = vand.u32 4294901760, %v1695_v48 }
 0x201   :  { %6327 = vtanh.f32 %v1657_v56  ;;  %v1614_v10 = vmul.f32 %v7955_v34, %v1598_v61  ;;  %v1613_v21 = vmul.f32 %v7958_v40, %v1597_v60  ;;  %v8728_v24 = vand.u32 4294901760, %v7966_v54 }
 0x202   :  { %v6318_v43 = vpop.eup %6317  ;;  %v1660_v7 = vmul.f32 0.7978846, %v1644_v2  ;;  %v1643_v17 = vadd.f32 %v7946_v16, %v1627_v52  ;;  %v7977_v4 = vsub.f32 %v1695_v48, %v7970_v13  ;;  %v1681_v23 = vadd.f32 1.0, %v6312_v47 }
 0x203   :  { %v6320_v39 = vpop.eup %6319  ;;  %v1630_v58 = vmul.f32 %v7955_v34, %v1614_v10  ;;  %v1629_v53 = vmul.f32 %v7958_v40, %v1613_v21  ;;  %v1828_v55 = vsub.f32 %v7966_v54, %v8728_v24  ;;  %v1682_v33 = vadd.f32 1.0, %v6310_v63 }
 0x204   :  { %6329 = vtanh.f32 %v1660_v7  ;;  %v1659_v32 = vmul.f32 0.7978846, %v1643_v17  ;;  %v8729_v44 = vand.u32 4294901760, %v7977_v4  ;;  %v1697_v41 = vmul.f32 %v1681_v23, %v7917_v50 }
 0x205   :  { %v1646_v48 = vadd.f32 %v7955_v34, %v1630_v58  ;;  %v1645_v47 = vadd.f32 %v7958_v40, %v1629_v53  ;;  %v1829_v56 = vand.u32 4294901760, %v1828_v55  ;;  %v1698_v61 = vmul.f32 %v1682_v33, %v7915_v57 }
 0x206   :  { %v6322_v60 = vpop.eup %6321  ;;  %6331 = vtanh.f32 %v1659_v32  ;;  %v1818_v2 = vsub.f32 %v7977_v4, %v8729_v44  ;;  %v7992_v63 = vand.u32 4294901760, %v1697_v41  ;;  %v1683_v52 = vadd.f32 1.0, %v6316_v8 }
 0x207   :  { %v6324_v10 = vpop.eup %6323  ;;  %v1662_v21 = vmul.f32 0.7978846, %v1646_v48  ;;  %v1661_v7 = vmul.f32 0.7978846, %v1645_v47  ;;  %v7994_v50 = vand.u32 4294901760, %v1698_v61  ;;  %v1684_v17 = vadd.f32 1.0, %v6314_v20 }
 0x208   :  { %v1819_v23 = vand.u32 4294901760, %v1818_v2  ;;  %v7997_v58 = vsub.f32 %v1697_v41, %v7992_v63  ;;  %v1699_v57 = vmul.f32 %v1683_v52, %v7921_v28  ;;  %v1685_v53 = vadd.f32 1.0, %v6320_v39 }
 0x209   :  { %6333 = vtanh.f32 %v1662_v21  ;;  %v8001_v55 = vsub.f32 %v1698_v61, %v7994_v50  ;;  %v1700_v33 = vmul.f32 %v1684_v17, %v7919_v3  ;;  %v1686_v8 = vadd.f32 1.0, %v6318_v43 }
 0x20a   :  { %v6326_v32 = vpop.eup %6325  ;;  %6335 = vtanh.f32 %v1661_v7  ;;  %4967 = vmatprep.mubr.f32.mxu1 %v1819_v23  ;;  %v8726_v48 = vand.u32 4294901760, %v7997_v58  ;;  %v8005_v20 = vand.u32 4294901760, %v1699_v57  ;;  %v1701_v41 = vmul.f32 %v1685_v53, %v7925_v14 }
 0x20b   :  { %v6328_v47 = vpop.eup %6327  ;;  %4968 = vmatmul.mubr.f32.vlgmr.msra.gmra.mrb[16].mxu1 %v1829_v56  ;;  %v8724_v28 = vand.u32 4294901760, %v8001_v55  ;;  %v8009_v39 = vand.u32 4294901760, %v1700_v33  ;;  %v1702_v61 = vmul.f32 %v1686_v8, %v7923_v37  ;;  %v1687_v2 = vadd.f32 1.0, %v6324_v10 }
 0x20c   :  { %5708 = vmatpush3.bf16.msra.mxu1 %v7770_v51  ;;  %v1838_v3 = vsub.f32 %v7997_v58, %v8726_v48  ;;  %v8017_v43 = vsub.f32 %v1699_v57, %v8005_v20  ;;  %v8019_v52 = vand.u32 4294901760, %v1701_v41  ;;  %v1688_v14 = vadd.f32 1.0, %v6322_v60 }
 0x20d   :  { %5710 = vmatprep.subr.bf16.mxu1 %v7746_v27  ;;  %v1848_v56 = vsub.f32 %v8001_v55, %v8724_v28  ;;  %v8026_v37 = vsub.f32 %v1700_v33, %v8009_v39  ;;  %v8028_v51 = vand.u32 4294901760, %v1702_v61  ;;  %v1703_v10 = vmul.f32 %v1687_v2, %v7930_v1 }
 0x20e   :  { %v6330_v21 = vpop.eup %6329  ;;  %v1839_v7 = vand.u32 4294901760, %v1838_v3  ;;  %v8725_v17 = vand.u32 4294901760, %v8017_v43  ;;  %v8033_v23 = vsub.f32 %v1701_v41, %v8019_v52  ;;  %v1704_v60 = vmul.f32 %v1688_v14, %v7928_v46 }
 0x20f   :  { %v1849_v57 = vand.u32 4294901760, %v1848_v56  ;;  %v8727_v53 = vand.u32 4294901760, %v8026_v37  ;;  %v8038_v8 = vsub.f32 %v1702_v61, %v8028_v51  ;;  %v8040_v33 = vand.u32 4294901760, %v1703_v10 }
 0x210   :  { %v6332_v28 = vpop.eup %6331  ;;  %4970 = vmatprep.mubr.f32.mxu1 %v1839_v7  ;;  %5712 = vmatpush3.bf16.msra.mxu1 %v7746_v27  ;;  %v1858_v1 = vsub.f32 %v8017_v43, %v8725_v17  ;;  %v8739_v41 = vand.u32 4294901760, %v8033_v23  ;;  %v8047_v2 = vand.u32 4294901760, %v1704_v60  ;;  %v1577_v46 = vmul.f32 0.5, %v7934_v35 }
 0x211   :  { %4971 = vmatmul.mubr.f32.gmra.mrb[18].mxu1 %v1849_v57  ;;  %5714 = vmatprep.subr.bf16.mxu1 %v7778_v19  ;;  %v1868_v61 = vsub.f32 %v8026_v37, %v8727_v53  ;;  %v8730_v3 = vand.u32 4294901760, %v8038_v8  ;;  %v8056_v27 = vsub.f32 %v1703_v10, %v8040_v33  ;;  %v1689_v14 = vadd.f32 1.0, %v6328_v47 }
 0x212   :  { %v1859_v56 = vand.u32 4294901760, %v1858_v1  ;;  %v1878_v7 = vsub.f32 %v8033_v23, %v8739_v41  ;;  %v8062_v35 = vsub.f32 %v1704_v60, %v8047_v2  ;;  %v1690_v57 = vadd.f32 1.0, %v6326_v32 }
 0x213   :  { %v6334_v17 = vpop.eup %6333  ;;  %v1869_v48 = vand.u32 4294901760, %v1868_v61  ;;  %v1888_v53 = vsub.f32 %v8038_v8, %v8730_v3  ;;  %v8731_v24 = vand.u32 4294901760, %v8056_v27  ;;  %v1705_v10 = vmul.f32 %v1689_v14, %v1577_v46 }
 0x214   :  { %v6336_v44 = vpop.eup %6335  ;;  %4973 = vmatprep.mubr.f32.mxu1 %v1859_v56  ;;  %5716 = vmatpush3.bf16.msra.mxu1 %v7778_v19  ;;  %v1879_v47 = vand.u32 4294901760, %v1878_v7  ;;  %v8738_v1 = vand.u32 4294901760, %v8062_v35  ;;  %v1706_v60 = vmul.f32 %v1690_v57, %v7936_v11  ;;  %v1579_v46 = vmul.f32 0.5, %v7946_v16 }
 0x215   :  { %4974 = vmatmul.mubr.f32.gmra.mrb[20].mxu1 %v1869_v48  ;;  %5718 = vmatprep.subr.bf16.mxu1 %v7792_v30  ;;  %v1898_v32 = vsub.f32 %v8056_v27, %v8731_v24  ;;  %v8075_v61 = vand.u32 4294901760, %v1705_v10  ;;  %v1691_v14 = vadd.f32 1.0, %v6332_v28  ;;  %v1889_v56 = vand.u32 4294901760, %v1888_v53 }
 0x216   :  { %4976 = vmatprep.mubr.f32.mxu1 %v1879_v47  ;;  %v8078_v19 = vand.u32 4294901760, %v1706_v60  ;;  %v1580_v7 = vmul.f32 0.5, %v7940_v18  ;;  %v1692_v3 = vadd.f32 1.0, %v6330_v21  ;;  %v1908_v48 = vsub.f32 %v8062_v35, %v8738_v1  ;;  %v8888_v1 = vld [vmem:[#allocation14_spill] sm:$0xff] }
 0x217   :  { %v1899_v11 = vand.u32 4294901760, %v1898_v32  ;;  %v8085_v57 = vsub.f32 %v1705_v10, %v8075_v61  ;;  %v1707_v24 = vmul.f32 %v1691_v14, %v1579_v46  ;;  %v1581_v53 = vmul.f32 0.5, %v7958_v40 }
 0x218   :  { %5720 = vmatpush3.bf16.msra.mxu1 %v7792_v30  ;;  %v8089_v16 = vsub.f32 %v1706_v60, %v8078_v19  ;;  %v1708_v28 = vmul.f32 %v1692_v3, %v1580_v7  ;;  %v1693_v47 = vadd.f32 1.0, %v6336_v44  ;;  %v1582_v10 = vmul.f32 0.5, %v7955_v34 }
 0x219   :  { %4977 = vmatmul.mubr.f32.gmra.mrb[22].mxu1 %v1889_v56  ;;  %5722 = vmatprep.subr.bf16.mxu1 %v7808_v22  ;;  %v8737_v18 = vand.u32 4294901760, %v8085_v57  ;;  %v8094_v21 = vand.u32 4294901760, %v1707_v24  ;;  %v1694_v32 = vadd.f32 1.0, %v6334_v17  ;;  %v1909_v3 = vand.u32 4294901760, %v1908_v48 }
 0x21a   :  { %4979 = vmatprep.mubr.f32.mxu1 %v1899_v11  ;;  %v8736_v30 = vand.u32 4294901760, %v8089_v16  ;;  %v8098_v46 = vand.u32 4294901760, %v1708_v28  ;;  %v1709_v60 = vmul.f32 %v1693_v47, %v1581_v53  ;;  %v8889_v41 = vand.u32 4294901760, %v8888_v1  ;;  %v8898_v1 = vld [vmem:[#allocation5_spill] sm:$0xff] }
 0x21b   :  { %v1918_v40 = vsub.f32 %v8085_v57, %v8737_v18  ;;  %v8104_v44 = vsub.f32 %v1707_v24, %v8094_v21  ;;  %v1710_v14 = vmul.f32 %v1694_v32, %v1582_v10 }
 0x21c   :  { %5724 = vmatpush3.bf16.msra.mxu1 %v7808_v22  ;;  %v1928_v34 = vsub.f32 %v8089_v16, %v8736_v30  ;;  %v8111_v17 = vsub.f32 %v1708_v28, %v8098_v46  ;;  %v8113_v56 = vand.u32 4294901760, %v1709_v60 }
 0x21d   :  { %4980 = vmatmul.mubr.f32.gmra.mrb[24].mxu1 %v1909_v3  ;;  %v1919_v7 = vand.u32 4294901760, %v1918_v40  ;;  %5726 = vmatprep.subr.bf16.mxu1 %v7840_v45  ;;  %v8735_v11 = vand.u32 4294901760, %v8104_v44  ;;  %v8117_v24 = vand.u32 4294901760, %v1710_v14 }
 0x21e   :  { %v8734_v48 = vand.u32 4294901760, %v8111_v17  ;;  %v8121_v22 = vsub.f32 %v1709_v60, %v8113_v56  ;;  %v1929_v53 = vand.u32 4294901760, %v1928_v34 }
 0x21f   :  { %8877 = vst [vmem:[#allocation8_spill] sm:$0xff] %v8117_v24  ;;  %4982 = vmatprep.mubr.f32.mxu1 %v1919_v7  ;;  %v1938_v28 = vsub.f32 %v8104_v44, %v8735_v11  ;;  %v8127_v47 = vsub.f32 %v1710_v14, %v8117_v24  ;;  %v8883_v11 = vld [vmem:[#allocation28_spill] sm:$0xff] }
 0x220   :  { %5728 = vmatpush3.bf16.msra.mxu1 %v7840_v45  ;;  %v1948_v10 = vsub.f32 %v8111_v17, %v8734_v48  ;;  %v8733_v32 = vand.u32 4294901760, %v8121_v22  ;;  %v8884_v30 = vand.u32 4294901760, %v8883_v11  ;;  %v8891_v11 = vand.u32 4294901760, %v7997_v58 }
 0x221   :  { %4983 = vmatmul.mubr.f32.gmra.mrb[26].mxu1 %v1929_v53  ;;  %v1939_v60 = vand.u32 4294901760, %v1938_v28  ;;  %5730 = vmatprep.subr.bf16.mxu1 %v7861_v9  ;;  %v8732_v3 = vand.u32 4294901760, %v8127_v47  ;;  %v8235_v53 = vld [vmem:[%s8569_s0 + $0x48] sm:$0xff]  ;;  %v6349_v28 = vld [vmem:[%s8569_s0 + $0x50] sm:$0xff] }
 0x222   :  { %v1958_v40 = vsub.f32 %v8121_v22, %v8733_v32  ;;  %v1949_v14 = vand.u32 4294901760, %v1948_v10  ;;  %v8248_v10 = vld [vmem:[%s8569_s0 + $0x58] sm:$0xff]  ;;  %v8881_v32 = vld [vmem:[#allocation19_spill] sm:$0xff] }
 0x223   :  { %4985 = vmatprep.mubr.f32.mxu1 %v1939_v60  ;;  %v1968_v45 = vsub.f32 %v8127_v47, %v8732_v3  ;;  %v6351_v60 = vld [vmem:[%s8569_s0 + $0x60] sm:$0xff]  ;;  %v8880_v3 = vld [vmem:[#allocation25_spill] sm:$0xff]  ;;  %v8882_v48 = vand.u32 4294901760, %v8881_v32  ;;  %v8894_v32 = vld [vmem:[#allocation26_spill] sm:$0xff] }
 0x224   :  { %5732 = vmatpush3.bf16.msra.mxu1 %v7861_v9  ;;  %v1959_v34 = vand.u32 4294901760, %v1958_v40  ;;  %v8180_v9 = vld [vmem:[%s8569_s0] sm:$0xff]  ;;  %v8261_v40 = vld [vmem:[%s8569_s0 + $0x68] sm:$0xff] }
 0x225   :  { %4986 = vmatmul.mubr.f32.gmra.mrb[28].mxu1 %v1949_v14  ;;  %5734 = vmatprep.subr.bf16.mxu1 %v7864_v38  ;;  %v1969_v7 = vand.u32 4294901760, %v1968_v45  ;;  %v6353_v14 = vld [vmem:[%s8569_s0 + $0x70] sm:$0xff]  ;;  %v5801_v18 = vpack.c.bf16 %v8884_v30, %v8882_v48  ;;  %v8890_v30 = vand.u32 4294901760, %v7966_v54  ;;  %v8892_v48 = vld [vmem:[#allocation24_spill] sm:$0xff] }
 0x226   :  { %4988 = vmatprep.mubr.f32.mxu1 %v1959_v34  ;;  %v8878_v45 = vld [vmem:[#allocation29_spill] sm:$0xff]  ;;  %v8274_v34 = vld [vmem:[%s8569_s0 + $0x78] sm:$0xff] }
 0x228   :  { %5736 = vmatpush3.bf16.msra.mxu1 %v7864_v38  ;;  %v8171_v38 = vld [vmem:[%s8569_s0 + $0x8] sm:$0xff] }
 0x229   :  { %4989 = vmatmul.mubr.f32.gmra.mrb[30].mxu1 %v1969_v7  ;;  %5738 = vmatprep.subr.bf16.mxu1 %v7859_v15  ;;  %v6381_v7 = vmov 2  }
 0x22a   :  { %5023 = vmatprep.mubr.f32.mxu1 %v7970_v13 }
 0x22d   :  { %5024 = vmatmul.mubr.f32.vlgmr.msra.gmra.mrb[16].mxu1 %v7948_v42 }
 0x22e   :  { %5740 = vmatpush3.bf16.msra.mxu1 %v7859_v15  ;;  %5026 = vmatprep.mubr.f32.mxu1 %v7992_v63  ;;  %v8187_v15 = vld [vmem:[%s8569_s0 + $0x10] sm:$0xff] }
 0x22f   :  { %5742 = vmatprep.subr.bf16.mxu1 %v7868_v12 }
 0x231   :  { %5027 = vmatmul.mubr.f32.gmra.mrb[18].mxu1 %v7994_v50 }
 0x232   :  { %5744 = vmatpush3.bf16.msra.mxu1 %v7868_v12  ;;  %5029 = vmatprep.mubr.f32.mxu1 %v8005_v20  ;;  %v6343_v12 = vld [vmem:[%s8569_s0 + $0x20] sm:$0xff] }
 0x233   :  { %5746 = vmatprep.subr.bf16.mxu1 %v7872_v49 }
 0x235   :  { %5030 = vmatmul.mubr.f32.gmra.mrb[20].mxu1 %v8009_v39 }
 0x236   :  { %5748 = vmatpush3.bf16.msra.mxu1 %v7872_v49  ;;  %5032 = vmatprep.mubr.f32.mxu1 %v8019_v52  ;;  %v6380_v49 = vmov 1  }
 0x237   :  { %5750 = vmatprep.subr.bf16.mxu1 %v7876_v31  ;;  %6270 = vset.pattern.permute.xlu1 %v6380_v49 }
 0x238   :  { %6269 = vset.pattern.permute.xlu0 %v6380_v49  ;;  %3025 = vperm.xlu1 %6270, %v8171_v38   ;;  %v8879_v49 = vld [vmem:[#allocation22_spill] sm:$0xff] }
 0x239   :  { %5033 = vmatmul.mubr.f32.gmra.mrb[22].mxu1 %v8028_v51  ;;  %3021 = vperm.xlu0 %6269, %v8180_v9  }
 0x23a   :  { %5752 = vmatpush3.bf16.msra.mxu1 %v7876_v31  ;;  %5035 = vmatprep.mubr.f32.mxu1 %v8040_v33  ;;  %v6345_v31 = vld [vmem:[%s8569_s0 + $0x30] sm:$0xff] }
 0x23b   :  { %5754 = vmatprep.subr.bf16.mxu1 %v7880_v26 }
 0x23c   :  { %3029 = vperm.xlu1 %6270, %v8187_v15  }
 0x23d   :  { %5036 = vmatmul.mubr.f32.gmra.mrb[24].mxu1 %v8047_v2 }
 0x23e   :  { %5756 = vmatpush3.bf16.msra.mxu1 %v7880_v26  ;;  %5038 = vmatprep.mubr.f32.mxu1 %v8075_v61  ;;  %v6347_v26 = vld [vmem:[%s8569_s0 + $0x40] sm:$0xff] }
 0x23f   :  { %5758 = vmatprep.subr.bf16.mxu1 %v7884_v29 }
 0x240   :  { %3037 = vperm.xlu1 %6270, %v6343_v12  }
 0x241   :  { %5039 = vmatmul.mubr.f32.gmra.mrb[26].mxu1 %v8078_v19 }
 0x242   :  { %5760 = vmatpush3.bf16.msra.mxu1 %v7884_v29  ;;  %5041 = vmatprep.mubr.f32.mxu1 %v8094_v21  ;;  %v8196_v29 = vld [vmem:[%s8569_s0 + $0x18] sm:$0xff] }
 0x243   :  { %5762 = vmatprep.subr.bf16.mxu1 %v7888_v6  ;;  %3033 = vperm.xlu0 %6269, %v8196_v29  }
 0x244   :  { %3045 = vperm.xlu1 %6270, %v6345_v31  }
 0x245   :  { %5042 = vmatmul.mubr.f32.gmra.mrb[28].mxu1 %v8098_v46 }
 0x246   :  { %5764 = vmatpush3.bf16.msra.mxu1 %v7888_v6  ;;  %5044 = vmatprep.mubr.f32.mxu1 %v8113_v56  ;;  %v8209_v6 = vld [vmem:[%s8569_s0 + $0x28] sm:$0xff] }
 0x247   :  { %5766 = vmatprep.subr.bf16.mxu1 %v7892_v25  ;;  %3041 = vperm.xlu0 %6269, %v8209_v6  }
 0x248   :  { %3053 = vperm.xlu1 %6270, %v6347_v26  }
 0x249   :  { %5045 = vmatmul.mubr.f32.gmra.mrb[30].mxu1 %v8117_v24 }
 0x24a   :  { %5768 = vmatpush3.bf16.msra.mxu1 %v7892_v25  ;;  %5079 = vmatprep.mubr.f32.mxu1 %v7977_v4  ;;  %v8222_v25 = vld [vmem:[%s8569_s0 + $0x38] sm:$0xff] }
 0x24b   :  { %5770 = vmatprep.subr.bf16.mxu1 %v7571_v62  ;;  %3049 = vperm.xlu0 %6269, %v8222_v25  }
 0x24c   :  { %3061 = vperm.xlu1 %6270, %v6349_v28  }
 0x24d   :  { %5080 = vmatmul.mubr.f32.vlgmr.msra.gmra.mrb[16].mxu1 %v7966_v54  ;;  %v8897_v54 = vand.u32 4294901760, %v8017_v43 }
 0x24e   :  { %5772 = vmatpush3.bf16.msra.mxu1 %v7571_v62  ;;  %5082 = vmatprep.mubr.f32.mxu1 %v7997_v58  ;;  %v8899_v58 = vand.u32 4294901760, %v8898_v1 }
 0x24f   :  { %5774 = vmatprep.subr.bf16.mxu1 %v7575_v0  ;;  %3057 = vperm.xlu0 %6269, %v8235_v53  }
 0x250   :  { %3069 = vperm.xlu1 %6270, %v6351_v60  }
 0x251   :  { %5083 = vmatmul.mubr.f32.gmra.mrb[18].mxu1 %v8001_v55 }
 0x252   :  { %5776 = vmatpush3.bf16.msra.mxu1 %v7575_v0  ;;  %5085 = vmatprep.mubr.f32.mxu1 %v8017_v43 }
 0x253   :  { %5778 = vmatprep.subr.bf16.mxu1 %v7596_v59  ;;  %3065 = vperm.xlu0 %6269, %v8248_v10  }
 0x254   :  { %3077 = vperm.xlu1 %6270, %v6353_v14  }
 0x255   :  { %5086 = vmatmul.mubr.f32.gmra.mrb[20].mxu1 %v8026_v37 }
 0x256   :  { %5780 = vmatpush3.bf16.msra.mxu1 %v7596_v59  ;;  %5088 = vmatprep.mubr.f32.mxu1 %v8033_v23 }
 0x257   :  { %5782 = vmatprep.subr.bf16.mxu1 %v7618_v5  ;;  %3073 = vperm.xlu0 %6269, %v8261_v40  }
 0x258   :  { %6271 = vset.pattern.permute.xlu1 %v6381_v7 }
 0x259   :  { %5089 = vmatmul.mubr.f32.gmra.mrb[22].mxu1 %v8038_v8  ;;  %3102 = vperm.xlu1 %6271, %v8180_v9   ;;  %v8886_v9 = vld [vmem:[#allocation20_spill] sm:$0xff] }
 0x25a   :  { %5784 = vmatpush3.bf16.msra.mxu1 %v7618_v5  ;;  %5091 = vmatprep.mubr.f32.mxu1 %v8056_v27 }
 0x25b   :  { %5786 = vmatprep.subr.bf16.mxu1 %v7642_v36  ;;  %3081 = vperm.xlu0 %6269, %v8274_v34  }
 0x25d   :  { %5092 = vmatmul.mubr.f32.gmra.mrb[24].mxu1 %v8062_v35  ;;  %3110 = vperm.xlu1 %6271, %v8187_v15   ;;  %v8895_v15 = vand.u32 4294901760, %v8894_v32 }
 0x25e   :  { %5788 = vmatpush3.bf16.msra.mxu1 %v7642_v36  ;;  %5094 = vmatprep.mubr.f32.mxu1 %v8085_v57 }
 0x25f   :  { %5790 = vmatprep.subr.bf16.mxu1 %v8878_v45  ;;  %6272 = vset.pattern.permute.xlu0 %v6381_v7  ;;  %v8887_v7 = vand.u32 4294901760, %v8886_v9 }
 0x260   :  { %3106 = vperm.xlu0 %6272, %v8171_v38   ;;  %v8885_v38 = vand.u32 4294901760, %v7977_v4  ;;  %v8893_v4 = vand.u32 4294901760, %v8892_v48  ;;  %v8914_v48 = vand.u32 4294901760, %v8062_v35  ;;  %v8920_v35 = vand.u32 4294901760, %v8089_v16 }
 0x261   :  { %5095 = vmatmul.mubr.f32.gmra.mrb[26].mxu1 %v8089_v16  ;;  %v5805_v24 = vpack.c.bf16 %v8889_v41, %v8887_v7  ;;  %3114 = vperm.xlu1 %6271, %v8196_v29   ;;  %v8896_v41 = vand.u32 4294901760, %v8001_v55  ;;  %v8903_v55 = vand.u32 4294901760, %v8033_v23  ;;  %v8908_v7 = vand.u32 4294901760, %v8038_v8 }
 0x262   :  { %5792 = vmatpush3.bf16.msra.mxu1 %v8878_v45  ;;  %5097 = vmatprep.mubr.f32.mxu1 %v8104_v44  ;;  %v8915_v8 = vand.u32 4294901760, %v8085_v57  ;;  %v8922_v57 = vld [vmem:[#allocation15_spill] sm:$0xff]  ;;  %v8928_v16 = vand.u32 4294901760, %v8127_v47 }
 0x263   :  { %5794 = vmatprep.subr.bf16.mxu1 %v8879_v49 }
 0x264   :  { %3118 = vperm.xlu0 %6272, %v6343_v12   ;;  %v5809_v12 = vpack.c.bf16 %v8895_v15, %v8893_v4 }
 0x265   :  { %5098 = vmatmul.mubr.f32.gmra.mrb[28].mxu1 %v8111_v17  ;;  %3122 = vperm.xlu1 %6271, %v8209_v6   ;;  %v8906_v6 = vld [vmem:[#allocation30_spill] sm:$0xff] }
 0x266   :  { %5796 = vmatpush3.bf16.msra.mxu1 %v8879_v49  ;;  %5100 = vmatprep.mubr.f32.mxu1 %v8121_v22 }
 0x267   :  { %5798 = vmatprep.subr.bf16.mxu1 %v8880_v3 }
 0x268   :  { %3126 = vperm.xlu0 %6272, %v6345_v31  }
 0x269   :  { %5101 = vmatmul.mubr.f32.gmra.mrb[30].mxu1 %v8127_v47  ;;  %3130 = vperm.xlu1 %6271, %v8222_v25   ;;  %v8910_v25 = vld [vmem:[#allocation6_spill] sm:$0xff] }
 0x26a   :  { %5800 = vmatpush3.bf16.msra.mxu1 %v8880_v3  ;;  %5135 = vmatprep.mubr.f32.mxu1 %v8885_v38  ;;  %v8902_v38 = vand.u32 4294901760, %v8026_v37  ;;  %v8909_v37 = vand.u32 4294901760, %v8056_v27  ;;  %v8911_v23 = vand.u32 4294901760, %v8910_v25 }
 0x26b   :  { %5802 = vmatprep.subr.bf16.mxu1 %v5801_v18 }
 0x26c   :  { %3134 = vperm.xlu0 %6272, %v6347_v26   ;;  %v8907_v26 = vand.u32 4294901760, %v8906_v6 }
 0x26d   :  { %5136 = vmatmul.mubr.f32.vlgmr.msra.gmra.mrb[16].mxu1 %v8890_v30  ;;  %3138 = vperm.xlu1 %6271, %v8235_v53   ;;  %v8916_v53 = vld [vmem:[#allocation7_spill] sm:$0xff] }
 0x26e   :  { %5804 = vmatpush3.bf16.msra.mxu1 %v5801_v18  ;;  %5138 = vmatprep.mubr.f32.mxu1 %v8891_v11  ;;  %v8900_v18 = vld [vmem:[#allocation27_spill] sm:$0xff]  ;;  %v8917_v27 = vand.u32 4294901760, %v8916_v53 }
 0x26f   :  { %5806 = vmatprep.subr.bf16.mxu1 %v5805_v24  ;;  %v8901_v29 = vand.u32 4294901760, %v8900_v18 }
 0x270   :  { %3142 = vperm.xlu0 %6272, %v6349_v28   ;;  %v8912_v28 = vld [vmem:[#allocation33_spill] sm:$0xff] }
 0x271   :  { %5139 = vmatmul.mubr.f32.gmra.mrb[18].mxu1 %v8896_v41  ;;  %v5813_v31 = vpack.c.bf16 %v8901_v29, %v8899_v58  ;;  %v8913_v30 = vand.u32 4294901760, %v8912_v28  ;;  %3146 = vperm.xlu1 %6271, %v8248_v10   ;;  %v8921_v10 = vand.u32 4294901760, %v8104_v44  ;;  %v8924_v41 = vld [vmem:[#allocation16_spill] sm:$0xff]  ;;  %v8926_v58 = vand.u32 4294901760, %v8111_v17 }
 0x272   :  { %5808 = vmatpush3.bf16.msra.mxu1 %v5805_v24  ;;  %5141 = vmatprep.mubr.f32.mxu1 %v8897_v54  ;;  %v8904_v24 = vld [vmem:[#allocation31_spill] sm:$0xff]  ;;  %v8925_v54 = vand.u32 4294901760, %v8924_v41 }
 0x273   :  { %5810 = vmatprep.subr.bf16.mxu1 %v5809_v12  ;;  %v8905_v43 = vand.u32 4294901760, %v8904_v24  ;;  %v5821_v11 = vpack.c.bf16 %v8913_v30, %v8911_v23 }
 0x274   :  { %3150 = vperm.xlu0 %6272, %v6351_v60   ;;  %v8918_v60 = vld [vmem:[#allocation34_spill] sm:$0xff] }
 0x275   :  { %5142 = vmatmul.mubr.f32.gmra.mrb[20].mxu1 %v8902_v38  ;;  %v5817_v9 = vpack.c.bf16 %v8907_v26, %v8905_v43  ;;  %v8919_v4 = vand.u32 4294901760, %v8918_v60  ;;  %3154 = vperm.xlu1 %6271, %v8261_v40   ;;  %v8927_v40 = vand.u32 4294901760, %v8121_v22 }
 0x276   :  { %5812 = vmatpush3.bf16.msra.mxu1 %v5809_v12  ;;  %5144 = vmatprep.mubr.f32.mxu1 %v8903_v55 }
 0x277   :  { %5814 = vmatprep.subr.bf16.mxu1 %v5813_v31  ;;  %v5825_v32 = vpack.c.bf16 %v8919_v4, %v8917_v27 }
 0x278   :  { %3158 = vperm.xlu0 %6272, %v6353_v14   ;;  %v8923_v14 = vand.u32 4294901760, %v8922_v57 }
 0x279   :  { %5145 = vmatmul.mubr.f32.gmra.mrb[22].mxu1 %v8908_v7  ;;  %3162 = vperm.xlu1 %6271, %v8274_v34  }
 0x27a   :  { %5816 = vmatpush3.bf16.msra.mxu1 %v5813_v31  ;;  %5147 = vmatprep.mubr.f32.mxu1 %v8909_v37  ;;  %v5829_v1 = vpack.c.bf16 %v8925_v54, %v8923_v14  ;;  %v8461_v37 = vld [vmem:[%s8574_s5] ss:$0 sm:$0xff] }
 0x27b   :  { %5818 = vmatprep.subr.bf16.mxu1 %v5817_v9 }
 0x27d   :  { %5148 = vmatmul.mubr.f32.gmra.mrb[24].mxu1 %v8914_v48 }
 0x27e   :  { %5820 = vmatpush3.bf16.msra.mxu1 %v5817_v9  ;;  %5150 = vmatprep.mubr.f32.mxu1 %v8915_v8  ;;  %v8456_v9 = vld [vmem:[%s8575_s6] ss:$0 sm:$0xff] }
 0x27f   :  { %5822 = vmatprep.subr.bf16.mxu1 %v5821_v11  ;;  %v8345_v15 = vpop.f32.mrb[16].mxu0 }
 0x280   :  { %v8348_v12 = vpop.f32.mrb[17].mxu0 }
 0x281   :  { %5151 = vmatmul.mubr.f32.gmra.mrb[26].mxu1 %v8920_v35 }
 0x282   :  { %5824 = vmatpush3.bf16.msra.mxu1 %v5821_v11  ;;  %5153 = vmatprep.mubr.f32.mxu1 %v8921_v10 }
 0x283   :  { %5826 = vmatprep.subr.bf16.mxu1 %v5825_v32 }
 0x285   :  { %5154 = vmatmul.mubr.f32.gmra.mrb[28].mxu1 %v8926_v58 }
 0x286   :  { %5828 = vmatpush3.bf16.msra.mxu1 %v5825_v32  ;;  %5156 = vmatprep.mubr.f32.mxu1 %v8927_v40 }
 0x287   :  { %5830 = vmatprep.subr.bf16.mxu1 %v5829_v1 }
 0x289   :  { %5157 = vmatmul.mubr.f32.gmra.mrb[30].mxu1 %v8928_v16 }
 0x28a   :  { %5832 = vmatpush3.bf16.msra.mxu1 %v5829_v1  ;;  %5191 = vmatprep.mubr.f32.mxu1 %v7970_v13 }
 0x28b   :  { %5834 = vmatprep.subr.bf16.mxu1 %v7571_v62 }
 0x28d   :  { %5192 = vmatmul.mubr.f32.vlgmr.msra.gmra.mrb[16].mxu1 %v7948_v42 }
 0x28e   :  { %5836 = vmatpush3.bf16.msra.mxu1 %v7571_v62  ;;  %5194 = vmatprep.mubr.f32.mxu1 %v7992_v63  ;;  %v8929_v62 = vld [vmem:[#allocation8_spill] sm:$0xff] }
 0x28f   :  { %5838 = vmatprep.subr.bf16.mxu1 %v7575_v0 }
 0x291   :  { %5195 = vmatmul.mubr.f32.gmra.mrb[18].mxu1 %v7994_v50 }
 0x292   :  { %5840 = vmatpush3.bf16.msra.mxu1 %v7575_v0  ;;  %5197 = vmatprep.mubr.f32.mxu1 %v8005_v20  ;;  %v8930_v0 = vld [vmem:[#allocation17_spill] sm:$0xff] }
 0x293   :  { %5842 = vmatprep.subr.bf16.mxu1 %v7596_v59 }
 0x295   :  { %5198 = vmatmul.mubr.f32.gmra.mrb[20].mxu1 %v8009_v39 }
 0x296   :  { %5844 = vmatpush3.bf16.msra.mxu1 %v7596_v59  ;;  %5200 = vmatprep.mubr.f32.mxu1 %v8019_v52  ;;  %v8931_v59 = vld [vmem:[#allocation32_spill] sm:$0xff] }
 0x297   :  { %5846 = vmatprep.subr.bf16.mxu1 %v7618_v5 }
 0x299   :  { %5201 = vmatmul.mubr.f32.gmra.mrb[22].mxu1 %v8028_v51 }
 0x29a   :  { %5848 = vmatpush3.bf16.msra.mxu1 %v7618_v5  ;;  %5203 = vmatprep.mubr.f32.mxu1 %v8040_v33  ;;  %v8932_v5 = vld [vmem:[#allocation35_spill] sm:$0xff] }
 0x29b   :  { %5850 = vmatprep.subr.bf16.mxu1 %v7642_v36 }
 0x29d   :  { %5204 = vmatmul.mubr.f32.gmra.mrb[24].mxu1 %v8047_v2 }
 0x29e   :  { %5852 = vmatpush3.bf16.msra.mxu1 %v7642_v36  ;;  %5206 = vmatprep.mubr.f32.mxu1 %v8075_v61  ;;  %v8933_v36 = vld [vmem:[#allocation36_spill] sm:$0xff] }
 0x29f   :  { %5854 = vmatprep.subr.bf16.mxu1 %v8878_v45 }
 0x2a1   :  { %5207 = vmatmul.mubr.f32.gmra.mrb[26].mxu1 %v8078_v19 }
 0x2a2   :  { %5856 = vmatpush3.bf16.msra.mxu1 %v8878_v45  ;;  %5209 = vmatprep.mubr.f32.mxu1 %v8094_v21 }
 0x2a3   :  { %5858 = vmatprep.subr.bf16.mxu1 %v8879_v49 }
 0x2a5   :  { %5210 = vmatmul.mubr.f32.gmra.mrb[28].mxu1 %v8098_v46 }
 0x2a6   :  { %5860 = vmatpush3.bf16.msra.mxu1 %v8879_v49  ;;  %5212 = vmatprep.mubr.f32.mxu1 %v8113_v56 }
 0x2a7   :  { %5862 = vmatprep.subr.bf16.mxu1 %v8880_v3 }
 0x2a9   :  { %5213 = vmatmul.mubr.f32.gmra.mrb[30].mxu1 %v8929_v62 }
 0x2aa   :  { %5864 = vmatpush3.bf16.msra.mxu1 %v8880_v3  ;;  %5247 = vmatprep.mubr.f32.mxu1 %v7970_v13  ;;  %v8935_v13 = vld [vmem:[#allocation38_spill] sm:$0xff] }
 0x2ab   :  { %5866 = vmatprep.subr.bf16.mxu1 %v8930_v0 }
 0x2ad   :  { %5248 = vmatmul.mubr.f32.vlgmr.msra.gmra.mrb[16].mxu1 %v7948_v42  ;;  %v8934_v42 = vld [vmem:[#allocation37_spill] sm:$0xff] }
 0x2ae   :  { %5868 = vmatpush3.bf16.msra.mxu1 %v8930_v0  ;;  %5250 = vmatprep.mubr.f32.mxu1 %v7992_v63  ;;  %v8936_v63 = vld [vmem:[#allocation39_spill] sm:$0xff] }
 0x2af   :  { %5870 = vmatprep.subr.bf16.mxu1 %v8931_v59 }
 0x2b1   :  { %5251 = vmatmul.mubr.f32.gmra.mrb[18].mxu1 %v7994_v50  ;;  %v8937_v50 = vld [vmem:[#allocation18_spill] sm:$0xff] }
 0x2b2   :  { %5872 = vmatpush3.bf16.msra.mxu1 %v8931_v59  ;;  %5253 = vmatprep.mubr.f32.mxu1 %v8005_v20  ;;  %v8938_v20 = vand.u32 4294901760, %v8937_v50 }
 0x2b3   :  { %5874 = vmatprep.subr.bf16.mxu1 %v8932_v5 }
 0x2b5   :  { %5254 = vmatmul.mubr.f32.gmra.mrb[20].mxu1 %v8009_v39  ;;  %v3477_v39 = vsub.f32 %v8937_v50, %v8938_v20 }
 0x2b6   :  { %5876 = vmatpush3.bf16.msra.mxu1 %v8932_v5  ;;  %5256 = vmatprep.mubr.f32.mxu1 %v8019_v52  ;;  %v8939_v52 = vld [vmem:[#allocation13_spill] sm:$0xff] }
 0x2b7   :  { %5878 = vmatprep.subr.bf16.mxu1 %v8933_v36 }
 0x2b8   :  { %v3022_v17 = vpop.permute.xlu0 %3021 }
 0x2b9   :  { %5257 = vmatmul.mubr.f32.gmra.mrb[22].mxu1 %v8028_v51  ;;  %v8940_v51 = vand.u32 4294901760, %v8939_v52 }
 0x2ba   :  { %5880 = vmatpush3.bf16.msra.mxu1 %v8933_v36  ;;  %5259 = vmatprep.mubr.f32.mxu1 %v8040_v33 }
 0x2bb   :  { %5882 = vmatprep.subr.bf16.mxu1 %v8934_v42  ;;  %v3487_v33 = vsub.f32 %v8939_v52, %v8940_v51 }
 0x2bd   :  { %5260 = vmatmul.mubr.f32.gmra.mrb[24].mxu1 %v8047_v2  ;;  %v8941_v2 = vld [vmem:[#allocation40_spill] sm:$0xff] }
 0x2be   :  { %5884 = vmatpush3.bf16.msra.mxu1 %v8934_v42  ;;  %5262 = vmatprep.mubr.f32.mxu1 %v8075_v61  ;;  %v3478_v61 = vand.u32 4294901760, %v3477_v39 }
 0x2bf   :  { %5886 = vmatprep.subr.bf16.mxu1 %v8935_v13 }
 0x2c1   :  { %5263 = vmatmul.mubr.f32.gmra.mrb[26].mxu1 %v8078_v19  ;;  %v3488_v19 = vand.u32 4294901760, %v3487_v33 }
 0x2c2   :  { %5888 = vmatpush3.bf16.msra.mxu1 %v8935_v13  ;;  %5265 = vmatprep.mubr.f32.mxu1 %v8094_v21  ;;  %v3026_v21 = vpop.permute.xlu1 %3025 }
 0x2c3   :  { %5890 = vmatprep.subr.bf16.mxu1 %v8936_v63 }
 0x2c5   :  { %5266 = vmatmul.mubr.f32.gmra.mrb[28].mxu1 %v8098_v46 }
 0x2c6   :  { %5892 = vmatpush3.bf16.msra.mxu1 %v8936_v63  ;;  %5268 = vmatprep.mubr.f32.mxu1 %v8113_v56  ;;  %v3030_v46 = vpop.permute.xlu1 %3029  ;;  %v3034_v56 = vpop.permute.xlu0 %3033 }
 0x2c7   :  { %5894 = vmatprep.subr.bf16.mxu1 %v8941_v2 }
 0x2c9   :  { %5269 = vmatmul.mubr.f32.gmra.mrb[30].mxu1 %v8929_v62 }
 0x2ca   :  { %5896 = vmatpush3.bf16.msra.mxu1 %v8941_v2  ;;  %5303 = vmatprep.mubr.f32.mxu1 %v3478_v61  ;;  %v3038_v44 = vpop.permute.xlu1 %3037  ;;  %v3042_v3 = vpop.permute.xlu0 %3041 }
 0x2cd   :  { %5304 = vmatmul.mubr.f32.vlgmr.msra.gmra.mrb[32].mxu1 %v3488_v19 }
 0x2ce   :  { %v8435_v22 = vpop.permute.xlu1 %3045  ;;  %v3050_v34 = vpop.permute.xlu0 %3049 }
 0x2d2   :  { %v8437_v47 = vpop.permute.xlu1 %3053  ;;  %v8443_v18 = vpop.permute.xlu0 %3057 }
 0x2d6   :  { %v8439_v45 = vpop.permute.xlu1 %3061  ;;  %v8447_v31 = vpop.permute.xlu0 %3065 }
 0x2da   :  { %v8441_v49 = vpop.permute.xlu1 %3069  ;;  %v8449_v55 = vpop.permute.xlu0 %3073 }
 0x2de   :  { %v8445_v29 = vpop.permute.xlu1 %3077  ;;  %v8451_v43 = vpop.permute.xlu0 %3081 }
 0x2e2   :  { %v3103_v38 = vpop.permute.xlu1 %3102  ;;  %v3107_v26 = vpop.permute.xlu0 %3106 }
 0x2e3   :  { %v3172_v28 = vmul.f32 %v8456_v9, %v3107_v26  ;;  %v3171_v48 = vmul.f32 %v8456_v9, %v3103_v38 }
 0x2e6   :  { %v3111_v24 = vpop.permute.xlu1 %3110  ;;  %v3119_v25 = vpop.permute.xlu0 %3118 }
 0x2e7   :  { %v3173_v58 = vmul.f32 %v8456_v9, %v3111_v24  ;;  %v3175_v36 = vmul.f32 %v8456_v9, %v3119_v25 }
 0x2ea   :  { %v3115_v6 = vpop.permute.xlu1 %3114  ;;  %v3127_v32 = vpop.permute.xlu0 %3126 }
 0x2eb   :  { %v3174_v54 = vmul.f32 %v8456_v9, %v3115_v6 }
 0x2ee   :  { %v3123_v7 = vpop.permute.xlu1 %3122  ;;  %v3135_v50 = vpop.permute.xlu0 %3134 }
 0x2ef   :  { %v3176_v63 = vmul.f32 %v8456_v9, %v3123_v7 }
 0x2f2   :  { %v3131_v27 = vpop.permute.xlu1 %3130  ;;  %v3143_v38 = vpop.permute.xlu0 %3142 }
 0x2f6   :  { %v3139_v5 = vpop.permute.xlu1 %3138 }
 0x380   :  { %v5249_v23 = vpop.f32.mrb[16].mxu1 }
 0x381   :  { %v6089_v30 = vadd.f32 %v5249_v23, %v8461_v37  ;;  %v2926_v11 = vpop.f32.mrb[17].mxu1 }
 0x382   :  { %v6090_v8 = vadd.f32 %v8461_v37, %v2926_v11 }
 0x383   :  { %v3085_v53 = vadd.f32 %v6089_v30, %v3026_v21  ;;  %v3178_v21 = vmul.f32 %v8456_v9, %v3131_v27 }
 0x384   :  { %v3084_v60 = vadd.f32 %v6090_v8, %v3022_v17  ;;  %v5252_v4 = vpop.f32.mrb[18].mxu1  ;;  %v3147_v17 = vpop.permute.xlu1 %3146 }
 0x385   :  { %v3188_v35 = vadd.f32 %v3172_v28, %v3085_v53  ;;  %v6091_v10 = vadd.f32 %v5252_v4, %v8461_v37  ;;  %v2938_v57 = vpop.f32.mrb[19].mxu1  ;;  %v3179_v28 = vmul.f32 %v8456_v9, %v3135_v50  ;;  %v3182_v4 = vmul.f32 %v8456_v9, %v3147_v17 }
 0x386   :  { %v3187_v14 = vadd.f32 %v3171_v48, %v3084_v60  ;;  %v6092_v41 = vadd.f32 %v8461_v37, %v2938_v57 }
 0x387   :  { %3204 = vst [vmem:[%s8578_s9 + $0x8] sm:$0xff] %v3188_v35  ;;  %v3087_v1 = vadd.f32 %v6091_v10, %v3034_v56  ;;  %v3177_v56 = vmul.f32 %v8456_v9, %v3127_v32 }
 0x388   :  { %3203 = vst [vmem:[%s8578_s9] sm:$0xff] %v3187_v14  ;;  %v3086_v40 = vadd.f32 %v6092_v41, %v3030_v46  ;;  %v5255_v16 = vpop.f32.mrb[20].mxu1  ;;  %v3155_v53 = vpop.permute.xlu1 %3154 }
 0x389   :  { %v3190_v62 = vadd.f32 %v3174_v54, %v3087_v1  ;;  %v6093_v0 = vadd.f32 %v5255_v16, %v8461_v37  ;;  %v2950_v59 = vpop.f32.mrb[21].mxu1 }
 0x38a   :  { %v3189_v42 = vadd.f32 %v3173_v58, %v3086_v40  ;;  %v6094_v13 = vadd.f32 %v8461_v37, %v2950_v59  ;;  %v3184_v58 = vmul.f32 %v8456_v9, %v3155_v53 }
 0x38b   :  { %3206 = vst [vmem:[%s8578_s9 + $0x18] sm:$0xff] %v3190_v62  ;;  %v3089_v20 = vadd.f32 %v6093_v0, %v3042_v3 }
 0x38c   :  { %3205 = vst [vmem:[%s8578_s9 + $0x10] sm:$0xff] %v3189_v42  ;;  %v3088_v39 = vadd.f32 %v6094_v13, %v3038_v44  ;;  %v5258_v52 = vpop.f32.mrb[22].mxu1  ;;  %v3163_v40 = vpop.permute.xlu1 %3162 }
 0x38d   :  { %v3192_v51 = vadd.f32 %v3176_v63, %v3089_v20  ;;  %v6095_v33 = vadd.f32 %v5258_v52, %v8461_v37  ;;  %v2962_v2 = vpop.f32.mrb[23].mxu1  ;;  %v3186_v63 = vmul.f32 %v8456_v9, %v3163_v40 }
 0x38e   :  { %v3191_v61 = vadd.f32 %v3175_v36, %v3088_v39  ;;  %v6096_v19 = vadd.f32 %v8461_v37, %v2962_v2 }
 0x38f   :  { %3208 = vst [vmem:[%s8578_s9 + $0x28] sm:$0xff] %v3192_v51  ;;  %v3091_v46 = vadd.f32 %v6095_v33, %v3050_v34  ;;  %v3180_v34 = vmul.f32 %v8456_v9, %v3139_v5 }
 0x390   :  { %3207 = vst [vmem:[%s8578_s9 + $0x20] sm:$0xff] %v3191_v61  ;;  %v3090_v44 = vadd.f32 %v6096_v19, %v8435_v22  ;;  %v5261_v3 = vpop.f32.mrb[24].mxu1 }
 0x391   :  { %v3194_v24 = vadd.f32 %v3178_v21, %v3091_v46  ;;  %v6097_v6 = vadd.f32 %v5261_v3, %v8461_v37  ;;  %v2974_v26 = vpop.f32.mrb[25].mxu1 }
 0x392   :  { %v3193_v7 = vadd.f32 %v3177_v56, %v3090_v44  ;;  %v6098_v25 = vadd.f32 %v8461_v37, %v2974_v26 }
 0x393   :  { %3210 = vst [vmem:[%s8578_s9 + $0x38] sm:$0xff] %v3194_v24  ;;  %v3093_v23 = vadd.f32 %v6097_v6, %v8443_v18  ;;  %v3151_v18 = vpop.permute.xlu0 %3150 }
 0x394   :  { %3209 = vst [vmem:[%s8578_s9 + $0x30] sm:$0xff] %v3193_v7  ;;  %v3092_v22 = vadd.f32 %v6098_v25, %v8437_v47  ;;  %v5264_v30 = vpop.f32.mrb[26].mxu1  ;;  %v3181_v47 = vmul.f32 %v8456_v9, %v3143_v38  ;;  %v3183_v16 = vmul.f32 %v8456_v9, %v3151_v18 }
 0x395   :  { %v3196_v11 = vadd.f32 %v3180_v34, %v3093_v23  ;;  %v6099_v48 = vadd.f32 %v5264_v30, %v8461_v37  ;;  %v2986_v8 = vpop.f32.mrb[27].mxu1 }
 0x396   :  { %v3195_v27 = vadd.f32 %v3179_v28, %v3092_v22  ;;  %v6100_v60 = vadd.f32 %v8461_v37, %v2986_v8 }
 0x397   :  { %3212 = vst [vmem:[%s8578_s9 + $0x48] sm:$0xff] %v3196_v11  ;;  %v3095_v32 = vadd.f32 %v6099_v48, %v8447_v31  ;;  %v3159_v0 = vpop.permute.xlu0 %3158 }
 0x398   :  { %3211 = vst [vmem:[%s8578_s9 + $0x40] sm:$0xff] %v3195_v27  ;;  %v3094_v35 = vadd.f32 %v6100_v60, %v8439_v45  ;;  %v5267_v10 = vpop.f32.mrb[28].mxu1  ;;  %v3185_v50 = vmul.f32 %v8456_v9, %v3159_v0 }
 0x399   :  { %v3198_v57 = vadd.f32 %v3182_v4, %v3095_v32  ;;  %v6101_v14 = vadd.f32 %v5267_v10, %v8461_v37  ;;  %v2998_v41 = vpop.f32.mrb[29].mxu1 }
 0x39a   :  { %v3197_v54 = vadd.f32 %v3181_v47, %v3094_v35  ;;  %v6102_v1 = vadd.f32 %v8461_v37, %v2998_v41 }
 0x39b   :  { %3214 = vst [vmem:[%s8578_s9 + $0x58] sm:$0xff] %v3198_v57  ;;  %v3097_v31 = vadd.f32 %v6101_v14, %v8449_v55  ;;  %v4106_v55 = vld [vmem:[%s8577_s8] ss:$0 sm:$0xff]  ;;  %s6382_s8 = smov [#allocation2]  }
 0x39c   :  { %3213 = vst [vmem:[%s8578_s9 + $0x50] sm:$0xff] %v3197_v54  ;;  %v3096_v45 = vadd.f32 %v6102_v1, %v8441_v49  ;;  %v5270_v62 = vpop.f32.mrb[30].mxu1  ;;  %s4087_s11 = sshll.u32 %s6382_s8, 4  ;;  %s4088_s11 = int_to_ptr.vmem [resolvable:$true] %s4087_s11 }
 0x39d   :  { %v3200_v59 = vadd.f32 %v3184_v58, %v3097_v31  ;;  %v6103_v5 = vadd.f32 %v5270_v62, %v8461_v37  ;;  %v3010_v36 = vpop.f32.mrb[31].mxu1  ;;  %s6355_s15 = scalar_lea.vmem %s4088_s11, 256  ;;  %p6360_p1 = scmp.lt.s32.totalorder %s4088_s11, %s4088_s11 }
 0x39e   :  { %v3199_v42 = vadd.f32 %v3183_v16, %v3096_v45  ;;  %v6104_v13 = vadd.f32 %v8461_v37, %v3010_v36  ;;  %p6356_p0 = scmp.ne.s32.totalorder %s4088_s11, %s6355_s15  ;;  %p6361_p2 = scmp.lt.s32.totalorder %s6355_s15, %s6355_s15 }
 0x39f   :  { %3216 = vst [vmem:[%s8578_s9 + $0x68] sm:$0xff] %v3200_v59  ;;  %v3099_v49 = vadd.f32 %v6103_v5, %v8451_v43 }
 0x3a0   :  { %3215 = vst [vmem:[%s8578_s9 + $0x60] sm:$0xff] %v3199_v42  ;;  %v3098_v37 = vadd.f32 %v6104_v13, %v8445_v29  ;;  %v5305_v20 = vpop.f32.mrb[32].mxu1  ;;  %p6362_p3 = por %p6361_p2, %p6360_p1 }
 0x3a1   :  { %v3202_v39 = vadd.f32 %v3186_v63, %v3099_v49  ;;  %v3491_v52 = vadd.f32 %v5305_v20, %v4106_v55  ;;  %v3480_v51 = vpop.f32.mrb[33].mxu1 }
 0x3a2   :  { %v3201_v33 = vadd.f32 %v3185_v50, %v3098_v37  ;;  %v3481_v2 = vadd.f32 %v4106_v55, %v3480_v51  ;;  %p6363_p4 = pnand %p6362_p3, %p6356_p0 }
 0x3a3   :  { %3218 = vst [vmem:[%s8578_s9 + $0x78] sm:$0xff] %v3202_v39  ;;  %v6106_v43 = vadd.f32 %v8345_v15, %v3491_v52 }
 0x3a4   :  { %3217 = vst [vmem:[%s8578_s9 + $0x70] sm:$0xff] %v3201_v33  ;;  %v6108_v29 = vadd.f32 %v8348_v12, %v3481_v2 }
 0x3a5   :  { %4079 = vst.msk [vmem:[#allocation2 + $0x8] sm:$0xff] %vm4077_vm7, %v6106_v43 }
 0x3a6   :  { %4078 = vst.msk [vmem:[#allocation2] sm:$0xff] %vm4077_vm7, %v6108_v29 }
 0x3a7   :  { %6366 = shalt.err (!%p6363_p4)
}
 0x3a8   :  { %s6367_s17 = scalar_lea.hbm %s8579_s10, 256 }
 0x3a9   :  { %p6368_p5 = scmp.ne.s32.totalorder %s8579_s10, %s6367_s17  ;;  %p6371_p6 = scmp.lt.u32.totalorder %s6367_s17, %s8579_s10 }
 0x3ab   :  { %p6373_p7 = pnand %p6371_p6, %p6368_p5 }
 0x3ad   :  { %6376 = shalt.err (!%p6373_p7)
}
 0x3ae   :  { %s6383_s21 = smov 128   ;;  %s6384_s4 = smov 8  }
 0x3af   :  { %4093 = dma.vmem_to_hbm [thread:$0]  %s4088_s11, 256, %s8579_s10, [#allocation3], %s6383_s21, %s6383_s21, %s6384_s4  }
 0x3b0   :  { %6377 = dma.done.wait [#allocation3], 256  }
 0x3b1   :  { %6378 = vsyncadd [#allocation3], 4294967040 }
 0x3b2   :  { %4099 = vsyncpa [#allocation3], 1 }

</bundles_post_ra>
